<compile_context>
chip_gen: v5e
topology: v5e:2x2
jax: 0.10.0
libtpu: 0.0.40
codegen_flags: <defaults>
</compile_context>

<pallas_src>
import functools

import jax
import jax.numpy as jnp
from jax.experimental import pallas as pl
from jax.experimental.pallas import tpu as pltpu


def _round_up(x, m):
    return (x + m - 1) // m * m


def _dir_offsets(win, pad):
    """(row, col) offsets into the padded scratch for each direction group."""
    return (
        tuple((pad, k) for k in range(win)),           # 0: horizontal
        tuple((k, pad) for k in range(win)),           # 1: vertical
        tuple((k, k) for k in range(win)),             # 2: diagonal (\)
        tuple((k, 2 * pad - k) for k in range(win)),   # 3: anti-diagonal (/)
    )


def _dir2dir_sum_kernel(x_ref, o_ref, pad_ref, *, win, pad, H, W, flat):
    """One grid step: all 4 directions for one (batch, channel-tile) block.

    x_ref   : (4, Ct, H*W) if flat else (4, Ct, H, W)   input block
    o_ref   : same shape as x_ref                        output block
    pad_ref : (Ct, H+2p, W+2p) scratch in input dtype; zero border, interior
              rewritten per direction group.
    """
    Ct = pad_ref.shape[0]
    Wp = W + 2 * pad
    offsets = _dir_offsets(win, pad)

    if pad > 0:
        # Zero only the border strips once per grid step: the interior is
        # fully overwritten for every direction group.
        z_row = jnp.zeros((Ct, pad, Wp), pad_ref.dtype)
        z_col = jnp.zeros((Ct, H, pad), pad_ref.dtype)
        pad_ref[:, :pad, :] = z_row
        pad_ref[:, pad + H:, :] = z_row
        pad_ref[:, pad:pad + H, :pad] = z_col
        pad_ref[:, pad:pad + H, pad + W:] = z_col

    for g in range(4):  # static unroll over the 4 direction groups
        xg = x_ref[g]
        if flat:
            # One VMEM-local relayout (lane-dense flat -> 2-D) per group.
            xg = xg.reshape(Ct, H, W)
        pad_ref[:, pad:pad + H, pad:pad + W] = xg

        acc = jnp.zeros((Ct, H, W), jnp.float32)
        # TODO(synk): profile-gated — replace lane-offset slices with aligned
        # loads + pltpu.roll column shifts (XLU slot) and a running sum for
        # large win; at the default small windows the kernel is HBM-bound so
        # this is neutral.
        for (r, c) in offsets[g]:
            acc = acc + pad_ref[:, r:r + H, c:c + W].astype(jnp.float32)

        res = acc.astype(o_ref.dtype)
        if flat:
            # Lane-dense store: no masked vst for W < 128.
            res = res.reshape(Ct, H * W)
        o_ref[g] = res


def _vmem_capacity_bytes():
    try:
        cap = getattr(pltpu.get_tpu_info(), "vmem_capacity_bytes", None)
        if cap:
            return int(cap)
    except Exception:
        pass
    return 64 * 1024 * 1024  # conservative default (v7x per-TensorCore VMEM)


def _pick_channel_tile(N, C, H, W, pad, itemsize, budget_bytes, flat):
    """Largest valid channel tile whose double-buffered block footprint fits,
    preferring tiles that keep >= 4 grid steps (>= 2 per v7x TensorCore)."""
    L = H * W
    Hp, Wp = H + 2 * pad, W + 2 * pad

    def footprint(ct):
        if flat:
            blk = 4 * _round_up(ct, 8) * _round_up(L, 128) * itemsize
        else:
            blk = 4 * ct * _round_up(H, 8) * _round_up(W, 128) * itemsize
        scratch = ct * _round_up(Hp, 8) * _round_up(Wp, 128) * itemsize
        return 2 * (2 * blk) + scratch  # in + out blocks, double-buffered

    # The block's second-to-last (sublane-ish) dim must be a multiple of 8 or
    # equal to the full array dim, so candidate tiles are C or multiples of 8.
    cands = [C] + list(range(8, C, 8))
    feasible = [ct for ct in cands if footprint(ct) <= budget_bytes]
    if not feasible:
        feasible = [min(cands, key=footprint)]
    with_grid = [ct for ct in feasible if N * pl.cdiv(C, ct) >= 4]
    pool = with_grid if with_grid else feasible
    return max(pool)


def _run(x, C, win, pad, flat, budget_bytes, vmem_limit_bytes):
    N, _, H, W = x.shape
    L = H * W
    Hp, Wp = H + 2 * pad, W + 2 * pad

    Ct = _pick_channel_tile(N, C, H, W, pad, x.dtype.itemsize, budget_bytes, flat)
    Cb = pl.cdiv(C, Ct)

    if flat:
        arr = x.reshape(N, 4, C, L)            # free reshape (NCHW contiguous)
        blk = (None, 4, Ct, L)
        out_shape = jax.ShapeDtypeStruct((N, 4, C, L), x.dtype)
        index_map = lambda n, c: (n, 0, c, 0)
    else:
        arr = x.reshape(N, 4, C, H, W)
        blk = (None, 4, Ct, H, W)
        out_shape = jax.ShapeDtypeStruct((N, 4, C, H, W), x.dtype)
        index_map = lambda n, c: (n, 0, c, 0, 0)

    kernel = functools.partial(
        _dir2dir_sum_kernel, win=win, pad=pad, H=H, W=W, flat=flat)

    out = pl.pallas_call(
        kernel,
        out_shape=out_shape,
        grid_spec=pltpu.PrefetchScalarGridSpec(
            num_scalar_prefetch=0,
            grid=(N, Cb),
            in_specs=[pl.BlockSpec(blk, index_map)],
            out_specs=pl.BlockSpec(blk, index_map),
            # Scratch in the input dtype (halves footprint for bf16 inputs);
            # accumulation is f32 in the kernel.
            scratch_shapes=[pltpu.VMEM((Ct, Hp, Wp), x.dtype)],
        ),
        compiler_params=pltpu.CompilerParams(
            dimension_semantics=("parallel", "parallel"),
            vmem_limit_bytes=vmem_limit_bytes),
        # TODO(synk): on v7x, sweep pipeline_mode=pl.Buffered(3) on in_specs
        # once tiles are re-tuned for its 64 MiB VMEM.
    )(arr)

    return out.reshape(N, 4 * C, H, W)


def dir2dir_sum(x, in_channels_per_dir, win_length):
    """Pallas implementation of Dir2DirSum.forward.

    Args:
      x: (N, 4*C, H, W) float array (NCHW, like PyTorch).
      in_channels_per_dir: C.
      win_length: odd window length.
    Returns:
      (N, 4*C, H, W) array of directional window sums.
    """
    N, C4, H, W = x.shape
    C = in_channels_per_dir
    assert C4 == 4 * C, "channel dim must be 4 * in_channels_per_dir"
    assert win_length % 2 == 1, "win_length must be odd for 'same' padding"
    pad = win_length // 2

    # Generation-aware VMEM budgets: ~48/96 MiB on 128-MiB v5e/v6e,
    # ~24/48 MiB on 64-MiB v7x.
    vmem_cap = _vmem_capacity_bytes()
    budget = max(8 << 20, min(48 << 20, (vmem_cap * 3) // 8))
    vmem_limit = max(32 << 20, min(96 << 20, (vmem_cap * 3) // 4))

    use_flat = (W % 128) != 0  # lane-dense blocks are the win when W < 128
    if use_flat:
        try:
            out = _run(x, C, win_length, pad, True, budget, vmem_limit)
            return jax.block_until_ready(out)
        except Exception:
            # Fallback if Mosaic rejects the in-kernel flat<->2-D reshape for
            # this shape/dtype; the 4-D layout is slower (masked stores) but
            # always lowers.
            pass
    out = _run(x, C, win_length, pad, False, budget, vmem_limit)
    return jax.block_until_ready(out)


def _reference(x, C, win):
    """Pure-JAX reference (same semantics, f32 accumulation)."""
    pad = win // 2
    N, _, H, W = x.shape
    xg = x.reshape(N, 4, C, H, W).astype(jnp.float32)
    xp = jnp.pad(xg, ((0, 0), (0, 0), (0, 0), (pad, pad), (pad, pad)))
    offsets = _dir_offsets(win, pad)
    outs = []
    for g in range(4):
        acc = jnp.zeros((N, C, H, W), jnp.float32)
        for r, c in offsets[g]:
            acc = acc + xp[:, g, :, r:r + H, c:c + W]
        outs.append(acc)
    return jnp.stack(outs, axis=1).reshape(N, 4 * C, H, W).astype(x.dtype)


if __name__ == "__main__":
    # Config 1: the module's intended small test shape.
    N, C, H, W, win = 2, 4, 16, 16, 5
    x = jax.random.normal(jax.random.PRNGKey(0), (N, 4 * C, H, W),
                          dtype=jnp.float32)
    out = dir2dir_sum(x, in_channels_per_dir=C, win_length=win)
    out = jax.block_until_ready(out)
    ref = _reference(x, C, win)
    assert out.shape == (N, 4 * C, H, W)
    assert jnp.allclose(out, ref, atol=1e-5, rtol=1e-5), "mismatch vs reference"

    # Config 2: different pad / spatial sizes.
    x2 = jax.random.normal(jax.random.PRNGKey(1), (1, 4 * 8, 8, 24),
                           dtype=jnp.float32)
    out2 = jax.block_until_ready(dir2dir_sum(x2, 8, 3))
    assert jnp.allclose(out2, _reference(x2, 8, 3), atol=1e-5, rtol=1e-5), \
        "mismatch vs reference (cfg2)"

    # Config 3: C not a multiple of the chosen tile -> ragged last channel
    # block (exercises the cdiv grid + min-grid-steps tile selection).
    x3 = jax.random.normal(jax.random.PRNGKey(2), (2, 4 * 20, 8, 16),
                           dtype=jnp.float32)
    out3 = jax.block_until_ready(dir2dir_sum(x3, 20, 3))
    assert jnp.allclose(out3, _reference(x3, 20, 3), atol=1e-5, rtol=1e-5), \
        "mismatch vs reference (cfg3)"

    print("KERNEL_OK")
</pallas_src>

<mosaic_0001>
module attributes {stable_mosaic.version = 11 : i64} {
  func.func @_dir2dir_sum_kernel(%arg0: i32, %arg1: i32, %arg2: memref<1x4x4x256xf32, #tpu.memory_space<vmem>>, %arg3: memref<1x4x4x256xf32, #tpu.memory_space<vmem>>, %arg4: memref<4x20x20xf32, #tpu.memory_space<vmem>>) attributes {dimension_semantics = [#tpu.dimension_semantics<parallel>, #tpu.dimension_semantics<parallel>], iteration_bounds = array<i64: 2, 1>, scalar_prefetch = 0 : i64, scratch_operands = 1 : i64, tpu.core_type = #tpu.core_type<tc>, window_params = [{transform_indices = @transform_0, window_bounds = array<i64: 1, 4, 4, 256>}, {transform_indices = @transform_1, window_bounds = array<i64: 1, 4, 4, 256>}]} {
    %cst = arith.constant 0.000000e+00 : f32
    %0 = vector.broadcast %cst : f32 to vector<4x2x20xf32>
    %cst_0 = arith.constant 0.000000e+00 : f32
    %1 = vector.broadcast %cst_0 : f32 to vector<4x16x2xf32>
    %c0 = arith.constant 0 : index
    %c0_1 = arith.constant 0 : index
    %c0_2 = arith.constant 0 : index
    %2 = vector.load %arg4[%c0, %c0_1, %c0_2] : memref<4x20x20xf32, #tpu.memory_space<vmem>>, vector<4x2x20xf32>
    tpu.vector_store %arg4[%c0, %c0_1, %c0_2], %0 {strides = array<i32>} : memref<4x20x20xf32, #tpu.memory_space<vmem>>, vector<4x2x20xf32>,
    %c0_3 = arith.constant 0 : index
    %c18 = arith.constant 18 : index
    %c0_4 = arith.constant 0 : index
    %3 = vector.load %arg4[%c0_3, %c18, %c0_4] : memref<4x20x20xf32, #tpu.memory_space<vmem>>, vector<4x2x20xf32>
    tpu.vector_store %arg4[%c0_3, %c18, %c0_4], %0 {strides = array<i32>} : memref<4x20x20xf32, #tpu.memory_space<vmem>>, vector<4x2x20xf32>,
    %c0_5 = arith.constant 0 : index
    %c2 = arith.constant 2 : index
    %c0_6 = arith.constant 0 : index
    %4 = vector.load %arg4[%c0_5, %c2, %c0_6] : memref<4x20x20xf32, #tpu.memory_space<vmem>>, vector<4x16x2xf32>
    tpu.vector_store %arg4[%c0_5, %c2, %c0_6], %1 {strides = array<i32>} : memref<4x20x20xf32, #tpu.memory_space<vmem>>, vector<4x16x2xf32>,
    %c0_7 = arith.constant 0 : index
    %c2_8 = arith.constant 2 : index
    %c18_9 = arith.constant 18 : index
    %5 = vector.load %arg4[%c0_7, %c2_8, %c18_9] : memref<4x20x20xf32, #tpu.memory_space<vmem>>, vector<4x16x2xf32>
    tpu.vector_store %arg4[%c0_7, %c2_8, %c18_9], %1 {strides = array<i32>} : memref<4x20x20xf32, #tpu.memory_space<vmem>>, vector<4x16x2xf32>,
    %c0_10 = arith.constant 0 : index
    %c0_11 = arith.constant 0 : index
    %c0_12 = arith.constant 0 : index
    %c0_13 = arith.constant 0 : index
    %6 = vector.load %arg2[%c0_10, %c0_11, %c0_12, %c0_13] : memref<1x4x4x256xf32, #tpu.memory_space<vmem>>, vector<1x1x4x256xf32>
    %7 = vector.shape_cast %6 : vector<1x1x4x256xf32> to vector<4x256xf32>
    %8 = vector.shape_cast %7 : vector<4x256xf32> to vector<4x16x16xf32>
    %c0_14 = arith.constant 0 : index
    %c2_15 = arith.constant 2 : index
    %c2_16 = arith.constant 2 : index
    %9 = vector.load %arg4[%c0_14, %c2_15, %c2_16] : memref<4x20x20xf32, #tpu.memory_space<vmem>>, vector<4x16x16xf32>
    tpu.vector_store %arg4[%c0_14, %c2_15, %c2_16], %8 {strides = array<i32>} : memref<4x20x20xf32, #tpu.memory_space<vmem>>, vector<4x16x16xf32>,
    %cst_17 = arith.constant 0.000000e+00 : f32
    %10 = vector.broadcast %cst_17 : f32 to vector<4x16x16xf32>
    %c0_18 = arith.constant 0 : index
    %c2_19 = arith.constant 2 : index
    %c0_20 = arith.constant 0 : index
    %11 = vector.load %arg4[%c0_18, %c2_19, %c0_20] : memref<4x20x20xf32, #tpu.memory_space<vmem>>, vector<4x16x16xf32>
    %12 = arith.addf %10, %11 : vector<4x16x16xf32>
    %c0_21 = arith.constant 0 : index
    %c2_22 = arith.constant 2 : index
    %c1 = arith.constant 1 : index
    %13 = vector.load %arg4[%c0_21, %c2_22, %c1] : memref<4x20x20xf32, #tpu.memory_space<vmem>>, vector<4x16x16xf32>
    %14 = arith.addf %12, %13 : vector<4x16x16xf32>
    %c0_23 = arith.constant 0 : index
    %c2_24 = arith.constant 2 : index
    %c2_25 = arith.constant 2 : index
    %15 = vector.load %arg4[%c0_23, %c2_24, %c2_25] : memref<4x20x20xf32, #tpu.memory_space<vmem>>, vector<4x16x16xf32>
    %16 = arith.addf %14, %15 : vector<4x16x16xf32>
    %c0_26 = arith.constant 0 : index
    %c2_27 = arith.constant 2 : index
    %c3 = arith.constant 3 : index
    %17 = vector.load %arg4[%c0_26, %c2_27, %c3] : memref<4x20x20xf32, #tpu.memory_space<vmem>>, vector<4x16x16xf32>
    %18 = arith.addf %16, %17 : vector<4x16x16xf32>
    %c0_28 = arith.constant 0 : index
    %c2_29 = arith.constant 2 : index
    %c4 = arith.constant 4 : index
    %19 = vector.load %arg4[%c0_28, %c2_29, %c4] : memref<4x20x20xf32, #tpu.memory_space<vmem>>, vector<4x16x16xf32>
    %20 = arith.addf %18, %19 : vector<4x16x16xf32>
    %21 = vector.shape_cast %20 : vector<4x16x16xf32> to vector<4x256xf32>
    %c0_30 = arith.constant 0 : index
    %c0_31 = arith.constant 0 : index
    %c0_32 = arith.constant 0 : index
    %c0_33 = arith.constant 0 : index
    %22 = vector.load %arg3[%c0_30, %c0_31, %c0_32, %c0_33] : memref<1x4x4x256xf32, #tpu.memory_space<vmem>>, vector<1x1x4x256xf32>
    %23 = vector.shape_cast %22 : vector<1x1x4x256xf32> to vector<4x256xf32>
    %24 = vector.shape_cast %21 : vector<4x256xf32> to vector<1x1x4x256xf32>
    tpu.vector_store %arg3[%c0_30, %c0_31, %c0_32, %c0_33], %24 {strides = array<i32>} : memref<1x4x4x256xf32, #tpu.memory_space<vmem>>, vector<1x1x4x256xf32>,
    %c0_34 = arith.constant 0 : index
    %c1_35 = arith.constant 1 : index
    %c0_36 = arith.constant 0 : index
    %c0_37 = arith.constant 0 : index
    %25 = vector.load %arg2[%c0_34, %c1_35, %c0_36, %c0_37] : memref<1x4x4x256xf32, #tpu.memory_space<vmem>>, vector<1x1x4x256xf32>
    %26 = vector.shape_cast %25 : vector<1x1x4x256xf32> to vector<4x256xf32>
    %27 = vector.shape_cast %26 : vector<4x256xf32> to vector<4x16x16xf32>
    %c0_38 = arith.constant 0 : index
    %c2_39 = arith.constant 2 : index
    %c2_40 = arith.constant 2 : index
    %28 = vector.load %arg4[%c0_38, %c2_39, %c2_40] : memref<4x20x20xf32, #tpu.memory_space<vmem>>, vector<4x16x16xf32>
    tpu.vector_store %arg4[%c0_38, %c2_39, %c2_40], %27 {strides = array<i32>} : memref<4x20x20xf32, #tpu.memory_space<vmem>>, vector<4x16x16xf32>,
    %cst_41 = arith.constant 0.000000e+00 : f32
    %29 = vector.broadcast %cst_41 : f32 to vector<4x16x16xf32>
    %c0_42 = arith.constant 0 : index
    %c0_43 = arith.constant 0 : index
    %c2_44 = arith.constant 2 : index
    %30 = vector.load %arg4[%c0_42, %c0_43, %c2_44] : memref<4x20x20xf32, #tpu.memory_space<vmem>>, vector<4x16x16xf32>
    %31 = arith.addf %29, %30 : vector<4x16x16xf32>
    %c0_45 = arith.constant 0 : index
    %c1_46 = arith.constant 1 : index
    %c2_47 = arith.constant 2 : index
    %32 = vector.load %arg4[%c0_45, %c1_46, %c2_47] : memref<4x20x20xf32, #tpu.memory_space<vmem>>, vector<4x16x16xf32>
    %33 = arith.addf %31, %32 : vector<4x16x16xf32>
    %c0_48 = arith.constant 0 : index
    %c2_49 = arith.constant 2 : index
    %c2_50 = arith.constant 2 : index
    %34 = vector.load %arg4[%c0_48, %c2_49, %c2_50] : memref<4x20x20xf32, #tpu.memory_space<vmem>>, vector<4x16x16xf32>
    %35 = arith.addf %33, %34 : vector<4x16x16xf32>
    %c0_51 = arith.constant 0 : index
    %c3_52 = arith.constant 3 : index
    %c2_53 = arith.constant 2 : index
    %36 = vector.load %arg4[%c0_51, %c3_52, %c2_53] : memref<4x20x20xf32, #tpu.memory_space<vmem>>, vector<4x16x16xf32>
    %37 = arith.addf %35, %36 : vector<4x16x16xf32>
    %c0_54 = arith.constant 0 : index
    %c4_55 = arith.constant 4 : index
    %c2_56 = arith.constant 2 : index
    %38 = vector.load %arg4[%c0_54, %c4_55, %c2_56] : memref<4x20x20xf32, #tpu.memory_space<vmem>>, vector<4x16x16xf32>
    %39 = arith.addf %37, %38 : vector<4x16x16xf32>
    %40 = vector.shape_cast %39 : vector<4x16x16xf32> to vector<4x256xf32>
    %c0_57 = arith.constant 0 : index
    %c1_58 = arith.constant 1 : index
    %c0_59 = arith.constant 0 : index
    %c0_60 = arith.constant 0 : index
    %41 = vector.load %arg3[%c0_57, %c1_58, %c0_59, %c0_60] : memref<1x4x4x256xf32, #tpu.memory_space<vmem>>, vector<1x1x4x256xf32>
    %42 = vector.shape_cast %41 : vector<1x1x4x256xf32> to vector<4x256xf32>
    %43 = vector.shape_cast %40 : vector<4x256xf32> to vector<1x1x4x256xf32>
    tpu.vector_store %arg3[%c0_57, %c1_58, %c0_59, %c0_60], %43 {strides = array<i32>} : memref<1x4x4x256xf32, #tpu.memory_space<vmem>>, vector<1x1x4x256xf32>,
    %c0_61 = arith.constant 0 : index
    %c2_62 = arith.constant 2 : index
    %c0_63 = arith.constant 0 : index
    %c0_64 = arith.constant 0 : index
    %44 = vector.load %arg2[%c0_61, %c2_62, %c0_63, %c0_64] : memref<1x4x4x256xf32, #tpu.memory_space<vmem>>, vector<1x1x4x256xf32>
    %45 = vector.shape_cast %44 : vector<1x1x4x256xf32> to vector<4x256xf32>
    %46 = vector.shape_cast %45 : vector<4x256xf32> to vector<4x16x16xf32>
    %c0_65 = arith.constant 0 : index
    %c2_66 = arith.constant 2 : index
    %c2_67 = arith.constant 2 : index
    %47 = vector.load %arg4[%c0_65, %c2_66, %c2_67] : memref<4x20x20xf32, #tpu.memory_space<vmem>>, vector<4x16x16xf32>
    tpu.vector_store %arg4[%c0_65, %c2_66, %c2_67], %46 {strides = array<i32>} : memref<4x20x20xf32, #tpu.memory_space<vmem>>, vector<4x16x16xf32>,
    %cst_68 = arith.constant 0.000000e+00 : f32
    %48 = vector.broadcast %cst_68 : f32 to vector<4x16x16xf32>
    %c0_69 = arith.constant 0 : index
    %c0_70 = arith.constant 0 : index
    %c0_71 = arith.constant 0 : index
    %49 = vector.load %arg4[%c0_69, %c0_70, %c0_71] : memref<4x20x20xf32, #tpu.memory_space<vmem>>, vector<4x16x16xf32>
    %50 = arith.addf %48, %49 : vector<4x16x16xf32>
    %c0_72 = arith.constant 0 : index
    %c1_73 = arith.constant 1 : index
    %c1_74 = arith.constant 1 : index
    %51 = vector.load %arg4[%c0_72, %c1_73, %c1_74] : memref<4x20x20xf32, #tpu.memory_space<vmem>>, vector<4x16x16xf32>
    %52 = arith.addf %50, %51 : vector<4x16x16xf32>
    %c0_75 = arith.constant 0 : index
    %c2_76 = arith.constant 2 : index
    %c2_77 = arith.constant 2 : index
    %53 = vector.load %arg4[%c0_75, %c2_76, %c2_77] : memref<4x20x20xf32, #tpu.memory_space<vmem>>, vector<4x16x16xf32>
    %54 = arith.addf %52, %53 : vector<4x16x16xf32>
    %c0_78 = arith.constant 0 : index
    %c3_79 = arith.constant 3 : index
    %c3_80 = arith.constant 3 : index
    %55 = vector.load %arg4[%c0_78, %c3_79, %c3_80] : memref<4x20x20xf32, #tpu.memory_space<vmem>>, vector<4x16x16xf32>
    %56 = arith.addf %54, %55 : vector<4x16x16xf32>
    %c0_81 = arith.constant 0 : index
    %c4_82 = arith.constant 4 : index
    %c4_83 = arith.constant 4 : index
    %57 = vector.load %arg4[%c0_81, %c4_82, %c4_83] : memref<4x20x20xf32, #tpu.memory_space<vmem>>, vector<4x16x16xf32>
    %58 = arith.addf %56, %57 : vector<4x16x16xf32>
    %59 = vector.shape_cast %58 : vector<4x16x16xf32> to vector<4x256xf32>
    %c0_84 = arith.constant 0 : index
    %c2_85 = arith.constant 2 : index
    %c0_86 = arith.constant 0 : index
    %c0_87 = arith.constant 0 : index
    %60 = vector.load %arg3[%c0_84, %c2_85, %c0_86, %c0_87] : memref<1x4x4x256xf32, #tpu.memory_space<vmem>>, vector<1x1x4x256xf32>
    %61 = vector.shape_cast %60 : vector<1x1x4x256xf32> to vector<4x256xf32>
    %62 = vector.shape_cast %59 : vector<4x256xf32> to vector<1x1x4x256xf32>
    tpu.vector_store %arg3[%c0_84, %c2_85, %c0_86, %c0_87], %62 {strides = array<i32>} : memref<1x4x4x256xf32, #tpu.memory_space<vmem>>, vector<1x1x4x256xf32>,
    %c0_88 = arith.constant 0 : index
    %c3_89 = arith.constant 3 : index
    %c0_90 = arith.constant 0 : index
    %c0_91 = arith.constant 0 : index
    %63 = vector.load %arg2[%c0_88, %c3_89, %c0_90, %c0_91] : memref<1x4x4x256xf32, #tpu.memory_space<vmem>>, vector<1x1x4x256xf32>
    %64 = vector.shape_cast %63 : vector<1x1x4x256xf32> to vector<4x256xf32>
    %65 = vector.shape_cast %64 : vector<4x256xf32> to vector<4x16x16xf32>
    %c0_92 = arith.constant 0 : index
    %c2_93 = arith.constant 2 : index
    %c2_94 = arith.constant 2 : index
    %66 = vector.load %arg4[%c0_92, %c2_93, %c2_94] : memref<4x20x20xf32, #tpu.memory_space<vmem>>, vector<4x16x16xf32>
    tpu.vector_store %arg4[%c0_92, %c2_93, %c2_94], %65 {strides = array<i32>} : memref<4x20x20xf32, #tpu.memory_space<vmem>>, vector<4x16x16xf32>,
    %cst_95 = arith.constant 0.000000e+00 : f32
    %67 = vector.broadcast %cst_95 : f32 to vector<4x16x16xf32>
    %c0_96 = arith.constant 0 : index
    %c0_97 = arith.constant 0 : index
    %c4_98 = arith.constant 4 : index
    %68 = vector.load %arg4[%c0_96, %c0_97, %c4_98] : memref<4x20x20xf32, #tpu.memory_space<vmem>>, vector<4x16x16xf32>
    %69 = arith.addf %67, %68 : vector<4x16x16xf32>
    %c0_99 = arith.constant 0 : index
    %c1_100 = arith.constant 1 : index
    %c3_101 = arith.constant 3 : index
    %70 = vector.load %arg4[%c0_99, %c1_100, %c3_101] : memref<4x20x20xf32, #tpu.memory_space<vmem>>, vector<4x16x16xf32>
    %71 = arith.addf %69, %70 : vector<4x16x16xf32>
    %c0_102 = arith.constant 0 : index
    %c2_103 = arith.constant 2 : index
    %c2_104 = arith.constant 2 : index
    %72 = vector.load %arg4[%c0_102, %c2_103, %c2_104] : memref<4x20x20xf32, #tpu.memory_space<vmem>>, vector<4x16x16xf32>
    %73 = arith.addf %71, %72 : vector<4x16x16xf32>
    %c0_105 = arith.constant 0 : index
    %c3_106 = arith.constant 3 : index
    %c1_107 = arith.constant 1 : index
    %74 = vector.load %arg4[%c0_105, %c3_106, %c1_107] : memref<4x20x20xf32, #tpu.memory_space<vmem>>, vector<4x16x16xf32>
    %75 = arith.addf %73, %74 : vector<4x16x16xf32>
    %c0_108 = arith.constant 0 : index
    %c4_109 = arith.constant 4 : index
    %c0_110 = arith.constant 0 : index
    %76 = vector.load %arg4[%c0_108, %c4_109, %c0_110] : memref<4x20x20xf32, #tpu.memory_space<vmem>>, vector<4x16x16xf32>
    %77 = arith.addf %75, %76 : vector<4x16x16xf32>
    %78 = vector.shape_cast %77 : vector<4x16x16xf32> to vector<4x256xf32>
    %c0_111 = arith.constant 0 : index
    %c3_112 = arith.constant 3 : index
    %c0_113 = arith.constant 0 : index
    %c0_114 = arith.constant 0 : index
    %79 = vector.load %arg3[%c0_111, %c3_112, %c0_113, %c0_114] : memref<1x4x4x256xf32, #tpu.memory_space<vmem>>, vector<1x1x4x256xf32>
    %80 = vector.shape_cast %79 : vector<1x1x4x256xf32> to vector<4x256xf32>
    %81 = vector.shape_cast %78 : vector<4x256xf32> to vector<1x1x4x256xf32>
    tpu.vector_store %arg3[%c0_111, %c3_112, %c0_113, %c0_114], %81 {strides = array<i32>} : memref<1x4x4x256xf32, #tpu.memory_space<vmem>>, vector<1x1x4x256xf32>,
    return
  }
  func.func @transform_0(%arg0: i32, %arg1: i32) -> (i32, i32, i32, i32) {
    %c0_i32 = arith.constant 0 : i32
    %c0_i32_0 = arith.constant 0 : i32
    %c0_i32_1 = arith.constant 0 : i32
    return %arg0, %c0_i32, %arg1, %c0_i32_0 : i32, i32, i32, i32
  }
  func.func @transform_1(%arg0: i32, %arg1: i32) -> (i32, i32, i32, i32) {
    %c0_i32 = arith.constant 0 : i32
    %c0_i32_0 = arith.constant 0 : i32
    %c0_i32_1 = arith.constant 0 : i32
    return %arg0, %c0_i32, %arg1, %c0_i32_0 : i32, i32, i32, i32
  }
}

module attributes {stable_mosaic.version = 11 : i64} {
  func.func @_dir2dir_sum_kernel(%arg0: i32, %arg1: i32, %arg2: memref<1x4x4x16x16xf32, #tpu.memory_space<vmem>>, %arg3: memref<1x4x4x16x16xf32, #tpu.memory_space<vmem>>, %arg4: memref<4x20x20xf32, #tpu.memory_space<vmem>>) attributes {dimension_semantics = [#tpu.dimension_semantics<parallel>, #tpu.dimension_semantics<parallel>], iteration_bounds = array<i64: 2, 1>, scalar_prefetch = 0 : i64, scratch_operands = 1 : i64, tpu.core_type = #tpu.core_type<tc>, window_params = [{transform_indices = @transform_0, window_bounds = array<i64: 1, 4, 4, 16, 16>}, {transform_indices = @transform_1, window_bounds = array<i64: 1, 4, 4, 16, 16>}]} {
    %cst = arith.constant 0.000000e+00 : f32
    %0 = vector.broadcast %cst : f32 to vector<4x2x20xf32>
    %cst_0 = arith.constant 0.000000e+00 : f32
    %1 = vector.broadcast %cst_0 : f32 to vector<4x16x2xf32>
    %c0 = arith.constant 0 : index
    %c0_1 = arith.constant 0 : index
    %c0_2 = arith.constant 0 : index
    %2 = vector.load %arg4[%c0, %c0_1, %c0_2] : memref<4x20x20xf32, #tpu.memory_space<vmem>>, vector<4x2x20xf32>
    tpu.vector_store %arg4[%c0, %c0_1, %c0_2], %0 {strides = array<i32>} : memref<4x20x20xf32, #tpu.memory_space<vmem>>, vector<4x2x20xf32>,
    %c0_3 = arith.constant 0 : index
    %c18 = arith.constant 18 : index
    %c0_4 = arith.constant 0 : index
    %3 = vector.load %arg4[%c0_3, %c18, %c0_4] : memref<4x20x20xf32, #tpu.memory_space<vmem>>, vector<4x2x20xf32>
    tpu.vector_store %arg4[%c0_3, %c18, %c0_4], %0 {strides = array<i32>} : memref<4x20x20xf32, #tpu.memory_space<vmem>>, vector<4x2x20xf32>,
    %c0_5 = arith.constant 0 : index
    %c2 = arith.constant 2 : index
    %c0_6 = arith.constant 0 : index
    %4 = vector.load %arg4[%c0_5, %c2, %c0_6] : memref<4x20x20xf32, #tpu.memory_space<vmem>>, vector<4x16x2xf32>
    tpu.vector_store %arg4[%c0_5, %c2, %c0_6], %1 {strides = array<i32>} : memref<4x20x20xf32, #tpu.memory_space<vmem>>, vector<4x16x2xf32>,
    %c0_7 = arith.constant 0 : index
    %c2_8 = arith.constant 2 : index
    %c18_9 = arith.constant 18 : index
    %5 = vector.load %arg4[%c0_7, %c2_8, %c18_9] : memref<4x20x20xf32, #tpu.memory_space<vmem>>, vector<4x16x2xf32>
    tpu.vector_store %arg4[%c0_7, %c2_8, %c18_9], %1 {strides = array<i32>} : memref<4x20x20xf32, #tpu.memory_space<vmem>>, vector<4x16x2xf32>,
    %c0_10 = arith.constant 0 : index
    %c0_11 = arith.constant 0 : index
    %c0_12 = arith.constant 0 : index
    %c0_13 = arith.constant 0 : index
    %c0_14 = arith.constant 0 : index
    %6 = vector.load %arg2[%c0_10, %c0_11, %c0_12, %c0_13, %c0_14] : memref<1x4x4x16x16xf32, #tpu.memory_space<vmem>>, vector<1x1x4x16x16xf32>
    %7 = vector.shape_cast %6 : vector<1x1x4x16x16xf32> to vector<4x16x16xf32>
    %c0_15 = arith.constant 0 : index
    %c2_16 = arith.constant 2 : index
    %c2_17 = arith.constant 2 : index
    %8 = vector.load %arg4[%c0_15, %c2_16, %c2_17] : memref<4x20x20xf32, #tpu.memory_space<vmem>>, vector<4x16x16xf32>
    tpu.vector_store %arg4[%c0_15, %c2_16, %c2_17], %7 {strides = array<i32>} : memref<4x20x20xf32, #tpu.memory_space<vmem>>, vector<4x16x16xf32>,
    %cst_18 = arith.constant 0.000000e+00 : f32
    %9 = vector.broadcast %cst_18 : f32 to vector<4x16x16xf32>
    %c0_19 = arith.constant 0 : index
    %c2_20 = arith.constant 2 : index
    %c0_21 = arith.constant 0 : index
    %10 = vector.load %arg4[%c0_19, %c2_20, %c0_21] : memref<4x20x20xf32, #tpu.memory_space<vmem>>, vector<4x16x16xf32>
    %11 = arith.addf %9, %10 : vector<4x16x16xf32>
    %c0_22 = arith.constant 0 : index
    %c2_23 = arith.constant 2 : index
    %c1 = arith.constant 1 : index
    %12 = vector.load %arg4[%c0_22, %c2_23, %c1] : memref<4x20x20xf32, #tpu.memory_space<vmem>>, vector<4x16x16xf32>
    %13 = arith.addf %11, %12 : vector<4x16x16xf32>
    %c0_24 = arith.constant 0 : index
    %c2_25 = arith.constant 2 : index
    %c2_26 = arith.constant 2 : index
    %14 = vector.load %arg4[%c0_24, %c2_25, %c2_26] : memref<4x20x20xf32, #tpu.memory_space<vmem>>, vector<4x16x16xf32>
    %15 = arith.addf %13, %14 : vector<4x16x16xf32>
    %c0_27 = arith.constant 0 : index
    %c2_28 = arith.constant 2 : index
    %c3 = arith.constant 3 : index
    %16 = vector.load %arg4[%c0_27, %c2_28, %c3] : memref<4x20x20xf32, #tpu.memory_space<vmem>>, vector<4x16x16xf32>
    %17 = arith.addf %15, %16 : vector<4x16x16xf32>
    %c0_29 = arith.constant 0 : index
    %c2_30 = arith.constant 2 : index
    %c4 = arith.constant 4 : index
    %18 = vector.load %arg4[%c0_29, %c2_30, %c4] : memref<4x20x20xf32, #tpu.memory_space<vmem>>, vector<4x16x16xf32>
    %19 = arith.addf %17, %18 : vector<4x16x16xf32>
    %c0_31 = arith.constant 0 : index
    %c0_32 = arith.constant 0 : index
    %c0_33 = arith.constant 0 : index
    %c0_34 = arith.constant 0 : index
    %c0_35 = arith.constant 0 : index
    %20 = vector.load %arg3[%c0_31, %c0_32, %c0_33, %c0_34, %c0_35] : memref<1x4x4x16x16xf32, #tpu.memory_space<vmem>>, vector<1x1x4x16x16xf32>
    %21 = vector.shape_cast %20 : vector<1x1x4x16x16xf32> to vector<4x16x16xf32>
    %22 = vector.shape_cast %19 : vector<4x16x16xf32> to vector<1x1x4x16x16xf32>
    tpu.vector_store %arg3[%c0_31, %c0_32, %c0_33, %c0_34, %c0_35], %22 {strides = array<i32>} : memref<1x4x4x16x16xf32, #tpu.memory_space<vmem>>, vector<1x1x4x16x16xf32>,
    %c0_36 = arith.constant 0 : index
    %c1_37 = arith.constant 1 : index
    %c0_38 = arith.constant 0 : index
    %c0_39 = arith.constant 0 : index
    %c0_40 = arith.constant 0 : index
    %23 = vector.load %arg2[%c0_36, %c1_37, %c0_38, %c0_39, %c0_40] : memref<1x4x4x16x16xf32, #tpu.memory_space<vmem>>, vector<1x1x4x16x16xf32>
    %24 = vector.shape_cast %23 : vector<1x1x4x16x16xf32> to vector<4x16x16xf32>
    %c0_41 = arith.constant 0 : index
    %c2_42 = arith.constant 2 : index
    %c2_43 = arith.constant 2 : index
    %25 = vector.load %arg4[%c0_41, %c2_42, %c2_43] : memref<4x20x20xf32, #tpu.memory_space<vmem>>, vector<4x16x16xf32>
    tpu.vector_store %arg4[%c0_41, %c2_42, %c2_43], %24 {strides = array<i32>} : memref<4x20x20xf32, #tpu.memory_space<vmem>>, vector<4x16x16xf32>,
    %cst_44 = arith.constant 0.000000e+00 : f32
    %26 = vector.broadcast %cst_44 : f32 to vector<4x16x16xf32>
    %c0_45 = arith.constant 0 : index
    %c0_46 = arith.constant 0 : index
    %c2_47 = arith.constant 2 : index
    %27 = vector.load %arg4[%c0_45, %c0_46, %c2_47] : memref<4x20x20xf32, #tpu.memory_space<vmem>>, vector<4x16x16xf32>
    %28 = arith.addf %26, %27 : vector<4x16x16xf32>
    %c0_48 = arith.constant 0 : index
    %c1_49 = arith.constant 1 : index
    %c2_50 = arith.constant 2 : index
    %29 = vector.load %arg4[%c0_48, %c1_49, %c2_50] : memref<4x20x20xf32, #tpu.memory_space<vmem>>, vector<4x16x16xf32>
    %30 = arith.addf %28, %29 : vector<4x16x16xf32>
    %c0_51 = arith.constant 0 : index
    %c2_52 = arith.constant 2 : index
    %c2_53 = arith.constant 2 : index
    %31 = vector.load %arg4[%c0_51, %c2_52, %c2_53] : memref<4x20x20xf32, #tpu.memory_space<vmem>>, vector<4x16x16xf32>
    %32 = arith.addf %30, %31 : vector<4x16x16xf32>
    %c0_54 = arith.constant 0 : index
    %c3_55 = arith.constant 3 : index
    %c2_56 = arith.constant 2 : index
    %33 = vector.load %arg4[%c0_54, %c3_55, %c2_56] : memref<4x20x20xf32, #tpu.memory_space<vmem>>, vector<4x16x16xf32>
    %34 = arith.addf %32, %33 : vector<4x16x16xf32>
    %c0_57 = arith.constant 0 : index
    %c4_58 = arith.constant 4 : index
    %c2_59 = arith.constant 2 : index
    %35 = vector.load %arg4[%c0_57, %c4_58, %c2_59] : memref<4x20x20xf32, #tpu.memory_space<vmem>>, vector<4x16x16xf32>
    %36 = arith.addf %34, %35 : vector<4x16x16xf32>
    %c0_60 = arith.constant 0 : index
    %c1_61 = arith.constant 1 : index
    %c0_62 = arith.constant 0 : index
    %c0_63 = arith.constant 0 : index
    %c0_64 = arith.constant 0 : index
    %37 = vector.load %arg3[%c0_60, %c1_61, %c0_62, %c0_63, %c0_64] : memref<1x4x4x16x16xf32, #tpu.memory_space<vmem>>, vector<1x1x4x16x16xf32>
    %38 = vector.shape_cast %37 : vector<1x1x4x16x16xf32> to vector<4x16x16xf32>
    %39 = vector.shape_cast %36 : vector<4x16x16xf32> to vector<1x1x4x16x16xf32>
    tpu.vector_store %arg3[%c0_60, %c1_61, %c0_62, %c0_63, %c0_64], %39 {strides = array<i32>} : memref<1x4x4x16x16xf32, #tpu.memory_space<vmem>>, vector<1x1x4x16x16xf32>,
    %c0_65 = arith.constant 0 : index
    %c2_66 = arith.constant 2 : index
    %c0_67 = arith.constant 0 : index
    %c0_68 = arith.constant 0 : index
    %c0_69 = arith.constant 0 : index
    %40 = vector.load %arg2[%c0_65, %c2_66, %c0_67, %c0_68, %c0_69] : memref<1x4x4x16x16xf32, #tpu.memory_space<vmem>>, vector<1x1x4x16x16xf32>
    %41 = vector.shape_cast %40 : vector<1x1x4x16x16xf32> to vector<4x16x16xf32>
    %c0_70 = arith.constant 0 : index
    %c2_71 = arith.constant 2 : index
    %c2_72 = arith.constant 2 : index
    %42 = vector.load %arg4[%c0_70, %c2_71, %c2_72] : memref<4x20x20xf32, #tpu.memory_space<vmem>>, vector<4x16x16xf32>
    tpu.vector_store %arg4[%c0_70, %c2_71, %c2_72], %41 {strides = array<i32>} : memref<4x20x20xf32, #tpu.memory_space<vmem>>, vector<4x16x16xf32>,
    %cst_73 = arith.constant 0.000000e+00 : f32
    %43 = vector.broadcast %cst_73 : f32 to vector<4x16x16xf32>
    %c0_74 = arith.constant 0 : index
    %c0_75 = arith.constant 0 : index
    %c0_76 = arith.constant 0 : index
    %44 = vector.load %arg4[%c0_74, %c0_75, %c0_76] : memref<4x20x20xf32, #tpu.memory_space<vmem>>, vector<4x16x16xf32>
    %45 = arith.addf %43, %44 : vector<4x16x16xf32>
    %c0_77 = arith.constant 0 : index
    %c1_78 = arith.constant 1 : index
    %c1_79 = arith.constant 1 : index
    %46 = vector.load %arg4[%c0_77, %c1_78, %c1_79] : memref<4x20x20xf32, #tpu.memory_space<vmem>>, vector<4x16x16xf32>
    %47 = arith.addf %45, %46 : vector<4x16x16xf32>
    %c0_80 = arith.constant 0 : index
    %c2_81 = arith.constant 2 : index
    %c2_82 = arith.constant 2 : index
    %48 = vector.load %arg4[%c0_80, %c2_81, %c2_82] : memref<4x20x20xf32, #tpu.memory_space<vmem>>, vector<4x16x16xf32>
    %49 = arith.addf %47, %48 : vector<4x16x16xf32>
    %c0_83 = arith.constant 0 : index
    %c3_84 = arith.constant 3 : index
    %c3_85 = arith.constant 3 : index
    %50 = vector.load %arg4[%c0_83, %c3_84, %c3_85] : memref<4x20x20xf32, #tpu.memory_space<vmem>>, vector<4x16x16xf32>
    %51 = arith.addf %49, %50 : vector<4x16x16xf32>
    %c0_86 = arith.constant 0 : index
    %c4_87 = arith.constant 4 : index
    %c4_88 = arith.constant 4 : index
    %52 = vector.load %arg4[%c0_86, %c4_87, %c4_88] : memref<4x20x20xf32, #tpu.memory_space<vmem>>, vector<4x16x16xf32>
    %53 = arith.addf %51, %52 : vector<4x16x16xf32>
    %c0_89 = arith.constant 0 : index
    %c2_90 = arith.constant 2 : index
    %c0_91 = arith.constant 0 : index
    %c0_92 = arith.constant 0 : index
    %c0_93 = arith.constant 0 : index
    %54 = vector.load %arg3[%c0_89, %c2_90, %c0_91, %c0_92, %c0_93] : memref<1x4x4x16x16xf32, #tpu.memory_space<vmem>>, vector<1x1x4x16x16xf32>
    %55 = vector.shape_cast %54 : vector<1x1x4x16x16xf32> to vector<4x16x16xf32>
    %56 = vector.shape_cast %53 : vector<4x16x16xf32> to vector<1x1x4x16x16xf32>
    tpu.vector_store %arg3[%c0_89, %c2_90, %c0_91, %c0_92, %c0_93], %56 {strides = array<i32>} : memref<1x4x4x16x16xf32, #tpu.memory_space<vmem>>, vector<1x1x4x16x16xf32>,
    %c0_94 = arith.constant 0 : index
    %c3_95 = arith.constant 3 : index
    %c0_96 = arith.constant 0 : index
    %c0_97 = arith.constant 0 : index
    %c0_98 = arith.constant 0 : index
    %57 = vector.load %arg2[%c0_94, %c3_95, %c0_96, %c0_97, %c0_98] : memref<1x4x4x16x16xf32, #tpu.memory_space<vmem>>, vector<1x1x4x16x16xf32>
    %58 = vector.shape_cast %57 : vector<1x1x4x16x16xf32> to vector<4x16x16xf32>
    %c0_99 = arith.constant 0 : index
    %c2_100 = arith.constant 2 : index
    %c2_101 = arith.constant 2 : index
    %59 = vector.load %arg4[%c0_99, %c2_100, %c2_101] : memref<4x20x20xf32, #tpu.memory_space<vmem>>, vector<4x16x16xf32>
    tpu.vector_store %arg4[%c0_99, %c2_100, %c2_101], %58 {strides = array<i32>} : memref<4x20x20xf32, #tpu.memory_space<vmem>>, vector<4x16x16xf32>,
    %cst_102 = arith.constant 0.000000e+00 : f32
    %60 = vector.broadcast %cst_102 : f32 to vector<4x16x16xf32>
    %c0_103 = arith.constant 0 : index
    %c0_104 = arith.constant 0 : index
    %c4_105 = arith.constant 4 : index
    %61 = vector.load %arg4[%c0_103, %c0_104, %c4_105] : memref<4x20x20xf32, #tpu.memory_space<vmem>>, vector<4x16x16xf32>
    %62 = arith.addf %60, %61 : vector<4x16x16xf32>
    %c0_106 = arith.constant 0 : index
    %c1_107 = arith.constant 1 : index
    %c3_108 = arith.constant 3 : index
    %63 = vector.load %arg4[%c0_106, %c1_107, %c3_108] : memref<4x20x20xf32, #tpu.memory_space<vmem>>, vector<4x16x16xf32>
    %64 = arith.addf %62, %63 : vector<4x16x16xf32>
    %c0_109 = arith.constant 0 : index
    %c2_110 = arith.constant 2 : index
    %c2_111 = arith.constant 2 : index
    %65 = vector.load %arg4[%c0_109, %c2_110, %c2_111] : memref<4x20x20xf32, #tpu.memory_space<vmem>>, vector<4x16x16xf32>
    %66 = arith.addf %64, %65 : vector<4x16x16xf32>
    %c0_112 = arith.constant 0 : index
    %c3_113 = arith.constant 3 : index
    %c1_114 = arith.constant 1 : index
    %67 = vector.load %arg4[%c0_112, %c3_113, %c1_114] : memref<4x20x20xf32, #tpu.memory_space<vmem>>, vector<4x16x16xf32>
    %68 = arith.addf %66, %67 : vector<4x16x16xf32>
    %c0_115 = arith.constant 0 : index
    %c4_116 = arith.constant 4 : index
    %c0_117 = arith.constant 0 : index
    %69 = vector.load %arg4[%c0_115, %c4_116, %c0_117] : memref<4x20x20xf32, #tpu.memory_space<vmem>>, vector<4x16x16xf32>
    %70 = arith.addf %68, %69 : vector<4x16x16xf32>
    %c0_118 = arith.constant 0 : index
    %c3_119 = arith.constant 3 : index
    %c0_120 = arith.constant 0 : index
    %c0_121 = arith.constant 0 : index
    %c0_122 = arith.constant 0 : index
    %71 = vector.load %arg3[%c0_118, %c3_119, %c0_120, %c0_121, %c0_122] : memref<1x4x4x16x16xf32, #tpu.memory_space<vmem>>, vector<1x1x4x16x16xf32>
    %72 = vector.shape_cast %71 : vector<1x1x4x16x16xf32> to vector<4x16x16xf32>
    %73 = vector.shape_cast %70 : vector<4x16x16xf32> to vector<1x1x4x16x16xf32>
    tpu.vector_store %arg3[%c0_118, %c3_119, %c0_120, %c0_121, %c0_122], %73 {strides = array<i32>} : memref<1x4x4x16x16xf32, #tpu.memory_space<vmem>>, vector<1x1x4x16x16xf32>,
    return
  }
  func.func @transform_0(%arg0: i32, %arg1: i32) -> (i32, i32, i32, i32, i32) {
    %c0_i32 = arith.constant 0 : i32
    %c0_i32_0 = arith.constant 0 : i32
    %c0_i32_1 = arith.constant 0 : i32
    %c0_i32_2 = arith.constant 0 : i32
    return %arg0, %c0_i32, %arg1, %c0_i32_0, %c0_i32_1 : i32, i32, i32, i32, i32
  }
  func.func @transform_1(%arg0: i32, %arg1: i32) -> (i32, i32, i32, i32, i32) {
    %c0_i32 = arith.constant 0 : i32
    %c0_i32_0 = arith.constant 0 : i32
    %c0_i32_1 = arith.constant 0 : i32
    %c0_i32_2 = arith.constant 0 : i32
    return %arg0, %c0_i32, %arg1, %c0_i32_0, %c0_i32_1 : i32, i32, i32, i32, i32
  }
}

</mosaic_0001>

<bundles_post_ra>
// kernel: tpu_custom_call.1
= control target key start
LH: loop header
LB: loop body
LE: loop exit
PB: predicated region body
PF: predicated region fallthrough
CT: control target
= control target key end

     0   :  { %6 = vsyncpa [#allocation4], 0  ;;  %s4289_s0 = inlined_call_operand.hbm [shape: f32[2,4,4,256], index: 0, kind: input, shape index: {}]   ;;  %s4290_s1 = inlined_call_operand.hbm [shape: f32[2,4,4,256], index: 1, kind: output, shape index: {}]  }
   0x1   :  { %8 = vsyncpa [#allocation4 + $0x1], 0 }
   0x2   :  { %9 = vsyncpa [#allocation5], 0 }
   0x3   :  { %11 = vsyncpa [#allocation5 + $0x1], 0  ;;  %s2957_s6 = smov 0   ;;  %s2959_s7 = smov 0  }
   0x4   :  { %s2961_s8 = smov 0   ;;  %s2963_s9 = smov 0  }
   0x5   :  { %s2965_s10 = smov 0   ;;  %s2967_s11 = smov 0  }
   0x6 LB: > { %s2687_s12 = sadd.s32 4294967295, %s2923_s11   ;;  %s2688_s13 = sadd.s32 4294967294, %s2923_s11   ;;  %s2923_s11 = sphi %s2967_s11, %s17_s11   ;;  %s2919_s10 = sphi %s2965_s10, %s4336_s10   ;;  %s2915_s9 = sphi %s2963_s9, %s4335_s9   ;;  %s2911_s8 = sphi %s2961_s8, %s4334_s8   ;;  %s2907_s7 = sphi %s2959_s7, %s4333_s7   ;;  %s2903_s6 = sphi %s2957_s6, %s4332_s6  }
   0x7   : > { %s29_s14 = sadd.s32 1, %s2919_s10  ;;  %s38_s15 = sadd.s32 1, %s2911_s8 }
   0x8   : > { %p31_p0 = scmp.ge.s32.totalorder %s29_s14, 2  ;;  %p45_p1 = scmp.ne.s32.totalorder %s2911_s8, %s2907_s7 }
   0x9   : > { %p46_p2 = scmp.eq.s32.totalorder %s2923_s11, 0  ;;  %p51_p3 = scmp.ne.s32.totalorder %s2907_s7, %s2903_s6 }
   0xa   : > { %s4338_s14 = smov (%p31_p0, %s29_s14), 0  ;;  %p52_p5 = scmp.eq.s32.totalorder %s2687_s12, 0 }
   0xb   : > { %p2998_p4 = por %p46_p2, %p45_p1  ;;  %s33_s17 = ssub.s32 %s2919_s10, %s4338_s14 }
   0xc   : > { %p77_p6 = scmp.eq.s32.totalorder %s2687_s12, 1  ;;  %p36_p7 = scmp.eq.s32.totalorder %s33_s17, 0 }
   0xd   : > { %p3004_p8 = por %p52_p5, %p51_p3  ;;  %p83_p10 = scmp.eq.s32.totalorder %s2688_s13, 1 }
   0xe   : > { %p3008_p9 = por %p77_p6, %p45_p1  ;;  %p2690_p12 = scmp.ge.s32.totalorder %s2923_s11, 2 }
   0xf   : > { %s3013_s20 = scalar_select %p36_p7, %s2911_s8, %s38_s15  }
  0x10   : > { %p3015_p11 = por %p83_p10, %p51_p3  ;;  %p2738_p13 = scmp.lt.s32.totalorder %s2923_s11, 2 }
  0x11   : > { %s103_s22 = sand.u32 1, %s2911_s8   ;;  %s2724_s24 = sshll.u32 %s2919_s10, 5 }
  0x12   : > { %s2691_s23 = sshll.u32 %s103_s22, 5  ;;  %s114_s27 = scalar_lea.hbm %s4289_s0, %s2724_s24 }
  0x13   : > { %s107_s28 = scalar_lea.vmem [#allocation3], %s2691_s23  ;;  %s115_s30 = sshll.u32 %s114_s27, 4  ;;  %s116_s30 = int_to_ptr.hbm [resolvable:$true] %s115_s30 }
  0x14   : > { %s117_s29 = sshll.u32 %s107_s28, 4  ;;  %p2731_p0 = pnand %p2738_p13, %p2998_p4  ;;  %s118_s29 = int_to_ptr.vmem [resolvable:$true] %s117_s29 }
  0x15   : > { %p2694_p1 = scmp.ge.s32.totalorder %s2923_s11, 1  ;;  %s104_s2 = scalar_lea.sflag [#allocation4], %s103_s22 }
  0x16   : > { %s2925_s3 = smov 128   ;;  %s2926_s4 = smov 8  }
  0x17   : > { %2733 = dma.hbm_to_vmem [thread:$0]  (!%p2731_p0), %s116_s30, 512, %s118_s29, %s104_s2, %s2925_s3, %s2925_s3, %s2926_s4  }
  0x18   : > { %p125_p2 = scmp.lt.s32.totalorder %s2923_s11, 3 }
  0x1a   : > { %p126_p3 = pnand %p2694_p1, %p125_p2 }
  0x1c   : > { %129 = sbr.rel (%p126_p3) target bundleno = 1330 (0x532), region = 24 }
  0x21   : > { %s3031_s5 = sand.u32 1, %s2907_s7  }
  0x22   : > { %s2695_s12 = sshll.u32 %s3031_s5, 5  ;;  %s132_s13 = scalar_lea.sflag [#allocation4], %s3031_s5 }
  0x23   : > { %s3037_s15 = scalar_lea.vmem [#allocation3], %s2695_s12 }
  0x24   : > { %2894 = dma.done.wait (%p3004_p8), %s132_s13, 512  }
  0x25   : > { %2896 = vsyncadd (%p3004_p8), %s132_s13, 4294966784  ;;  %v3044_v0 = vld [vmem:[%s3037_s15] sm:$0xff]  ;;  %s2927_s16 = smov 80   ;;  %s2928_s17 = smov 112   ;;  %v3059_v1 = vld [vmem:[%s3037_s15 + $0x8] sm:$0xff]  ;;  %vm222_vm0 = vcmask 1047556  }
  0x26   : > { %194 = vrot.lane.b32.xlu1 %v3044_v0, %s2927_s16  ;;  %186 = vrot.lane.b32.xlu0 %v3044_v0, %s2928_s17  ;;  %s2929_s22 = smov 48   ;;  %s2930_s23 = smov 96   ;;  %v3078_v2 = vld [vmem:[%s3037_s15 + $0x10] sm:$0xff]  ;;  %v3095_v3 = vld [vmem:[%s3037_s15 + $0x18] sm:$0xff]  ;;  %v2934_v6 = vmov 1983009808  }
  0x27   : > { %202 = vrot.lane.b32.xlu2 %v3044_v0, %s2929_s22  ;;  %s2931_s18 = smov 64   ;;  %s2932_s24 = smov 32   ;;  %v225_v7 = vunpack.c.l.s4 %v2934_v6  ;;  %v2935_v16 = vmov 1934713408   ;;  %v184_v18 = vrot.slane %v3044_v0, 4  ;;  %v765_v59 = vrot.slane %v3059_v1, 4 }
  0x28   : > { %s2933_s25 = smov 16   ;;  %v239_v17 = vunpack.c.l.s4 %v2935_v16  ;;  %s2936_s26 = smov 2   ;;  %vm164_vm1 = vcmask 15360   ;;  %vm173_vm2 = vcmask 162960   ;;  %vm405_vm3 = vcmask 146448  }
  0x29   : > { %v3107_v12 = vunpack.c.0.s8 %v225_v7  ;;  %s2938_s27 = smov 127   ;;  %vm155_vm4 = vcmask 156672   ;;  %s2939_s28 = smov 125   ;;  %vm734_vm5 = vcmask 130048   ;;  %vm736_vm6 = vcmask 261120  }
  0x2a   : > { %v3120_v23 = vunpack.c.0.s8 %v239_v17  ;;  %s2940_s29 = smov 126   ;;  %s2941_s30 = smov 124   ;;  %vm738_vm7 = vcmask 392192   ;;  %vm740_vm8 = vcmask 523264   ;;  %vm742_vm9 = vcmask 654336  }
  0x2b   : > { %s2942_s2 = smov 1   ;;  %vm744_vm10 = vcmask 785408   ;;  %vm746_vm11 = vcmask 916480   ;;  %vm758_vm12 = vcmask 1043456   ;;  %s4097_s3 = scalar_lea.vmem [#allocation6], %s2695_s12 }
  0x2c   : > { %s2943_s4 = smov 3   ;;  %s2944_s12 = smov 4  }
  0x2d   : > { %s2725_s13 = sshll.u32 %s2915_s9, 5 }
  0x2e   : > { %190 = vrot.lane.b32.xlu0 %v3044_v0, %s2930_s23  ;;  %198 = vrot.lane.b32.xlu1 %v3044_v0, %s2931_s18 }
  0x2f   : > { %206 = vrot.lane.b32.xlu2 %v3044_v0, %s2932_s24 }
  0x36   : > { %210 = vrot.lane.b32.xlu0 %v3044_v0, %s2933_s25  ;;  %767 = vrot.lane.b32.xlu1 %v3059_v1, %s2928_s17 }
  0x37   : > { %771 = vrot.lane.b32.xlu2 %v3059_v1, %s2930_s23 }
  0x3e   : > { %779 = vrot.lane.b32.xlu1 %v3059_v1, %s2931_s18  ;;  %775 = vrot.lane.b32.xlu0 %v3059_v1, %s2927_s16 }
  0x3f   : > { %783 = vrot.lane.b32.xlu2 %v3059_v1, %s2929_s22 }
  0x46   : > { %791 = vrot.lane.b32.xlu1 %v3059_v1, %s2933_s25  ;;  %787 = vrot.lane.b32.xlu0 %v3059_v1, %s2932_s24 }
  0x47   : > { %1299 = vrot.lane.b32.xlu2 %v3078_v2, %s2928_s17 }
  0x4e   : > { %1303 = vrot.lane.b32.xlu0 %v3078_v2, %s2930_s23  ;;  %1307 = vrot.lane.b32.xlu1 %v3078_v2, %s2927_s16 }
  0x4f   : > { %1311 = vrot.lane.b32.xlu2 %v3078_v2, %s2931_s18 }
  0x56   : > { %1315 = vrot.lane.b32.xlu0 %v3078_v2, %s2929_s22  ;;  %1319 = vrot.lane.b32.xlu1 %v3078_v2, %s2932_s24 }
  0x57   : > { %1323 = vrot.lane.b32.xlu2 %v3078_v2, %s2933_s25 }
  0x5e   : > { %1935 = vrot.lane.b32.xlu0 %v3095_v3, %s2927_s16  ;;  %1943 = vrot.lane.b32.xlu1 %v3095_v3, %s2929_s22 }
  0x5f   : > { %1927 = vrot.lane.b32.xlu2 %v3095_v3, %s2928_s17 }
  0x66   : > { %1931 = vrot.lane.b32.xlu0 %v3095_v3, %s2930_s23 }
  0x67   : > { %1951 = vrot.lane.b32.xlu2 %v3095_v3, %s2933_s25 }
  0x81   : > { %v203_v4 = vpop.permute.xlu2 %202 }
  0x82   : > { %v204_v41 = vrot.slane %v203_v4, 4 }
  0x89   : > { %v207_v5 = vpop.permute.xlu2 %206 }
  0x8a   : > { %v250_v30 = vrot.slane %v207_v5, 4 }
  0x91   : > { %v3110_v14 = vpop.permute.xlu2 %771 }
  0x92   : > { %v802_v53 = vrot.slane %v3110_v14, 4  ;;  %v859_v17 = vsel %vm222_vm0, %v3110_v14, %v765_v59 }
  0x98   : > { %v195_v8 = vpop.permute.xlu1 %194  ;;  %v187_v9 = vpop.permute.xlu0 %186 }
  0x99   : > { %v228_v10 = vrot.slane %v195_v8, 4  ;;  %v188_v11 = vrot.slane %v187_v9, 4  ;;  %v3131_v35 = vpop.permute.xlu2 %783 }
  0x9b   : > { %v285_v13 = vsel %vm222_vm0, %v195_v8, %v188_v11  ;;  %v229_v15 = vsel %vm222_vm0, %v228_v10, %v187_v9 }
  0x9c   : > { %v3115_v19 = vperm.slane %v285_v13, %v3107_v12  ;;  %v3118_v20 = vperm.slane %v229_v15, %v3107_v12 }
  0x9e   : > { %v290_v26 = vrot.slane %v3115_v19, 4  ;;  %v234_v31 = vrot.slane %v3118_v20, 4 }
  0xa0   : > { %v191_v21 = vpop.permute.xlu0 %190  ;;  %v199_v22 = vpop.permute.xlu1 %198 }
  0xa1   : > { %v221_v24 = vrot.slane %v191_v21, 4  ;;  %v279_v25 = vsel %vm222_vm0, %v191_v21, %v184_v18  ;;  %v200_v28 = vrot.slane %v199_v22, 4  ;;  %v251_v40 = vsel %vm222_vm0, %v250_v30, %v199_v22 }
  0xa2   : > { %v283_v27 = vperm.slane %v279_v25, %v3107_v12  ;;  %v255_v47 = vperm.slane %v251_v40, %v3107_v12 }
  0xa3   : > { %v223_v29 = vsel %vm222_vm0, %v221_v24, %v3044_v0  ;;  %v307_v37 = vsel %vm222_vm0, %v207_v5, %v200_v28  ;;  %v3148_v0 = vpop.permute.xlu2 %1299 }
  0xa4   : > { %v227_v32 = vperm.slane %v223_v29, %v3107_v12  ;;  %v291_v33 = vsel %vm222_vm0, %v290_v26, %v283_v27  ;;  %v311_v46 = vperm.slane %v307_v37, %v3107_v12  ;;  %v264_v58 = vrot.slane %v255_v47, 4 }
  0xa5   : > { %v297_v34 = vperm.slane %v291_v33, %v3120_v23  ;;  %v292_v61 = vrot.slane %v283_v27, 4 }
  0xa6   : > { %v235_v36 = vsel %vm222_vm0, %v234_v31, %v227_v32  ;;  %v320_v54 = vrot.slane %v311_v46, 4  ;;  %v236_v60 = vrot.slane %v227_v32, 4  ;;  %v3182_v31 = vperm.slane %v859_v17, %v3107_v12 }
  0xa7   : > { %v241_v38 = vperm.slane %v235_v36, %v3120_v23  ;;  %v302_v39 = vrot.slane %v297_v34, 4  ;;  %354 = vst [vmem:[#allocation1 + $0x10] ss:$2 sm:$0xff] %v297_v34  ;;  %v293_v18 = vsel %vm222_vm0, %v3115_v19, %v292_v61 }
  0xa8   : > { %v211_v42 = vpop.permute.xlu0 %210  ;;  %v768_v43 = vpop.permute.xlu1 %767  ;;  %v301_v28 = vperm.slane %v293_v18, %v3120_v23  ;;  %v872_v59 = vrot.slane %v3182_v31, 4 }
  0xa9   : > { %v246_v44 = vrot.slane %v241_v38, 4  ;;  %v303_v45 = vsel %vm222_vm0, 0.0, %v302_v39  ;;  %350 = vst [vmem:[#allocation1] ss:$2 sm:$0xff] %v241_v38  ;;  %v256_v48 = vrot.slane %v211_v42, 4  ;;  %v313_v49 = vsel %vm222_vm0, %v211_v42, %v204_v41 }
  0xaa   : > { %364 = vst [vmem:[#allocation1 + $0x30] ss:$2 sm:$0xff] %v303_v45  ;;  %v317_v51 = vperm.slane %v313_v49, %v3107_v12  ;;  %v769_v57 = vrot.slane %v768_v43, 4  ;;  %v304_v45 = vrot.slane %v301_v28, 4 }
  0xab   : > { %v247_v50 = vsel %vm222_vm0, 0.0, %v246_v44  ;;  %v257_v52 = vsel %vm222_vm0, %v256_v48, %v203_v4  ;;  %v803_v4 = vsel %vm222_vm0, %v802_v53, %v3059_v1  ;;  %v237_v1 = vsel %vm222_vm0, %v3118_v20, %v236_v60 }
  0xac   : > { %360 = vst [vmem:[#allocation1 + $0x20] ss:$2 sm:$0xff] %v247_v50  ;;  %v261_v55 = vperm.slane %v257_v52, %v3107_v12  ;;  %v318_v56 = vrot.slane %v317_v51, 4  ;;  %v321_v9 = vsel %vm222_vm0, %v317_v51, %v320_v54  ;;  %v785_v20 = vrot.slane %v3131_v35, 4 }
  0xad   : > { %v329_v25 = vperm.slane %v321_v9, %v3120_v23  ;;  %v245_v19 = vperm.slane %v237_v1, %v3120_v23  ;;  %v3179_v30 = vperm.slane %v803_v4, %v3107_v12  ;;  %v1301_v1 = vrot.slane %v3148_v0, 4 }
  0xae   : > { %v262_v62 = vrot.slane %v261_v55, 4  ;;  %v319_v63 = vsel %vm222_vm0, %v318_v56, %v311_v46  ;;  %v265_v13 = vsel %vm222_vm0, %v261_v55, %v264_v58 }
  0xaf   : > { %v325_v5 = vperm.slane %v319_v63, %v3120_v23  ;;  %v273_v14 = vperm.slane %v265_v13, %v3120_v23  ;;  %v332_v36 = vrot.slane %v329_v25, 4  ;;  %v248_v44 = vrot.slane %v245_v19, 4 }
  0xb0   : > { %v780_v6 = vpop.permute.xlu1 %779  ;;  %v776_v7 = vpop.permute.xlu0 %775  ;;  %v263_v8 = vsel %vm222_vm0, %v262_v62, %v255_v47 }
  0xb1   : > { %v808_v10 = vrot.slane %v776_v7, 4  ;;  %v865_v11 = vsel %vm222_vm0, %v776_v7, %v769_v57  ;;  %v269_v15 = vperm.slane %v263_v8, %v3120_v23  ;;  %v330_v16 = vrot.slane %v325_v5, 4  ;;  %356 = vst [vmem:[#allocation1 + $0x11] ss:$2 sm:$0xff] %v325_v5 }
  0xb2   : > { %v3166_v22 = vperm.slane %v865_v11, %v3107_v12  ;;  %v781_v32 = vrot.slane %v780_v6, 4  ;;  %v276_v39 = vrot.slane %v273_v14, 4  ;;  %v333_v53 = vsel %vm222_vm0, 0.0, %v332_v36 }
  0xb3   : > { %v809_v21 = vsel %vm222_vm0, %v808_v10, %v768_v43  ;;  %v274_v24 = vrot.slane %v269_v15, 4  ;;  %v331_v26 = vsel %vm222_vm0, 0.0, %v330_v16  ;;  %352 = vst [vmem:[#allocation1 + $0x1] ss:$2 sm:$0xff] %v269_v15  ;;  %v3187_v43 = vpop.permute.xlu2 %1311  ;;  %v249_v5 = vsel %vm222_vm0, 0.0, %v248_v44 }
  0xb4   : > { %v3171_v27 = vperm.slane %v809_v21, %v3107_v12  ;;  %366 = vst [vmem:[#allocation1 + $0x31] ss:$2 sm:$0xff] %v331_v26  ;;  %v870_v34 = vrot.slane %v3166_v22, 4  ;;  %v277_v58 = vsel %vm222_vm0, 0.0, %v276_v39  ;;  %v305_v8 = vsel %vm222_vm0, 0.0, %v304_v45 }
  0xb5   : > { %v275_v29 = vsel %vm222_vm0, 0.0, %v274_v24  ;;  %v816_v24 = vrot.slane %v3179_v30, 4 }
  0xb6   : > { %362 = vst [vmem:[#allocation1 + $0x21] ss:$2 sm:$0xff] %v275_v29  ;;  %v814_v33 = vrot.slane %v3171_v27, 4  ;;  %v871_v50 = vsel %vm222_vm0, %v870_v34, %v3182_v31  ;;  %v1297_v31 = vrot.slane %v3078_v2, 4 }
  0xb7   : > { %v877_v4 = vperm.slane %v871_v50, %v3120_v23  ;;  %v1313_v50 = vrot.slane %v3187_v43, 4 }
  0xb8   : > { %v792_v37 = vpop.permute.xlu1 %791  ;;  %v788_v38 = vpop.permute.xlu0 %787  ;;  %v358_v40 = vld.sshfl [vmem:[#allocation1 + $0x10] sm:$0xff pattern:$0x75316420]  ;;  %v815_v49 = vsel %vm222_vm0, %v814_v33, %v3179_v30 }
  0xb9   : > { %v836_v41 = vrot.slane %v792_v37, 4  ;;  %v893_v42 = vsel %vm222_vm0, %v792_v37, %v785_v20  ;;  %372 = vst [vmem:[#allocation1 + $0x11] ss:$2 sm:$0xff] %v329_v25  ;;  %383 = vrot.lane.b32.xlu2 %v358_v40, %s2936_s26  ;;  %v830_v47 = vrot.slane %v788_v38, 4  ;;  %v887_v52 = vsel %vm222_vm0, %v788_v38, %v781_v32 }
  0xba   : > { %v897_v46 = vperm.slane %v893_v42, %v3107_v12  ;;  %v357_v48 = vld.sshfl [vmem:[#allocation1] sm:$0xff pattern:$0x75316420]  ;;  %371 = vst [vmem:[#allocation1 + $0x10] ss:$2 sm:$0xff] %v301_v28  ;;  %v891_v57 = vperm.slane %v887_v52, %v3107_v12  ;;  %v821_v62 = vperm.slane %v815_v49, %v3120_v23  ;;  %v882_v21 = vrot.slane %v877_v4, 4 }
  0xbb   : > { %v837_v51 = vsel %vm222_vm0, %v836_v41, %v3131_v35  ;;  %v368_v54 = vld.sshfl [vmem:[#allocation1 + $0x30] sm:$0xff pattern:$0x75316420]  ;;  %370 = vst [vmem:[#allocation1 + $0x1] ss:$2 sm:$0xff] %v273_v14  ;;  %381 = vrot.lane.b32.xlu1 %v357_v48, %s2936_s26  ;;  %v831_v56 = vsel %vm222_vm0, %v830_v47, %v780_v6  ;;  %v1324_v20 = vpop.permute.xlu2 %1323  ;;  %v873_v28 = vsel %vm222_vm0, %v3166_v22, %v872_v59 }
  0xbc   : > { %v841_v55 = vperm.slane %v837_v51, %v3107_v12  ;;  %378 = vst [vmem:[#allocation1 + $0x31] ss:$2 sm:$0xff] %v333_v53  ;;  %v898_v35 = vrot.slane %v897_v46, 4  ;;  %v835_v60 = vperm.slane %v831_v56, %v3107_v12  ;;  %v900_v7 = vrot.slane %v891_v57, 4 }
  0xbd   : > { %v367_v61 = vld.sshfl [vmem:[#allocation1 + $0x20] sm:$0xff pattern:$0x75316420]  ;;  %369 = vst [vmem:[#allocation1] ss:$2 sm:$0xff] %v245_v19  ;;  %v826_v9 = vrot.slane %v821_v62, 4  ;;  %v817_v40 = vsel %vm222_vm0, %v3171_v27, %v816_v24  ;;  %v881_v41 = vperm.slane %v873_v28, %v3120_v23 }
  0xbe   : > { %v842_v63 = vrot.slane %v841_v55, 4  ;;  %376 = vst [vmem:[#allocation1 + $0x21] ss:$2 sm:$0xff] %v277_v58  ;;  %v899_v6 = vsel %vm222_vm0, %v898_v35, %v891_v57  ;;  %385 = vrot.lane.b32.xlu0 %v367_v61, %s2936_s26  ;;  %v844_v16 = vrot.slane %v835_v60, 4  ;;  %v901_v26 = vsel %vm222_vm0, %v897_v46, %v900_v7 }
  0xbf   : > { %375 = vst [vmem:[#allocation1 + $0x20] ss:$2 sm:$0xff] %v249_v5  ;;  %v905_v11 = vperm.slane %v899_v6, %v3120_v23  ;;  %v827_v19 = vsel %vm222_vm0, 0.0, %v826_v9  ;;  %v883_v37 = vsel %vm222_vm0, 0.0, %v882_v21  ;;  %v909_v22 = vperm.slane %v901_v26, %v3120_v23 }
  0xc0   : > { %v843_v10 = vsel %vm222_vm0, %v842_v63, %v835_v60  ;;  %v1304_v13 = vpop.permute.xlu0 %1303  ;;  %v1308_v15 = vpop.permute.xlu1 %1307  ;;  %377 = vst [vmem:[#allocation1 + $0x30] ss:$2 sm:$0xff] %v305_v8  ;;  %v845_v30 = vsel %vm222_vm0, %v841_v55, %v844_v16  ;;  %v1368_v38 = vrot.slane %v1324_v20, 4  ;;  %v825_v57 = vperm.slane %v817_v40, %v3120_v23 }
  0xc1   : > { %v849_v17 = vperm.slane %v843_v10, %v3120_v23  ;;  %v374_v18 = vld.sshfl [vmem:[#allocation1 + $0x10] sm:$0xff pattern:$0x75316420]  ;;  %v1340_v14 = vrot.slane %v1308_v15, 4  ;;  %v910_v29 = vrot.slane %v905_v11, 4  ;;  %v1334_v33 = vrot.slane %v1304_v13, 4 }
  0xc2   : > { %934 = vst [vmem:[#allocation1 + $0x10] ss:$2 sm:$0xff] %v877_v4  ;;  %v1397_v36 = vsel %vm222_vm0, %v1308_v15, %v1301_v1  ;;  %v853_v45 = vperm.slane %v845_v30, %v3120_v23  ;;  %v1391_v47 = vsel %vm222_vm0, %v1304_v13, %v1297_v31  ;;  %v828_v5 = vrot.slane %v825_v57, 4 }
  0xc3   : > { %v854_v25 = vrot.slane %v849_v17, 4  ;;  %936 = vst [vmem:[#allocation1 + $0x11] ss:$2 sm:$0xff] %v905_v11  ;;  %387 = vrot.lane.b32.xlu1 %v368_v54, %s2936_s26  ;;  %v1341_v34 = vsel %vm222_vm0, %v1340_v14, %v3148_v0  ;;  %v3236_v0 = vperm.slane %v1397_v36, %v3107_v12  ;;  %v911_v46 = vsel %vm222_vm0, 0.0, %v910_v29 }
  0xc4   : > { %v373_v32 = vld.sshfl [vmem:[#allocation1] sm:$0xff pattern:$0x75316420]  ;;  %v3242_v27 = vperm.slane %v1341_v34, %v3107_v12  ;;  %v1335_v51 = vsel %vm222_vm0, %v1334_v33, %v3078_v2  ;;  %v856_v53 = vrot.slane %v853_v45, 4  ;;  %v912_v54 = vrot.slane %v909_v22, 4 }
  0xc5   : > { %930 = vst [vmem:[#allocation1] ss:$2 sm:$0xff] %v821_v62  ;;  %389 = vrot.lane.b32.xlu2 %v373_v32, %s2936_s26  ;;  %v855_v42 = vsel %vm222_vm0, 0.0, %v854_v25  ;;  %v1395_v58 = vperm.slane %v1391_v47, %v3107_v12  ;;  %v1402_v59 = vrot.slane %v3236_v0, 4  ;;  %v3255_v2 = vperm.slane %v1335_v51, %v3107_v12  ;;  %v1928_v32 = vpop.permute.xlu2 %1927 }
  0xc6   : > { %v379_v39 = vld.sshfl [vmem:[#allocation1 + $0x20] sm:$0xff pattern:$0x75316420]  ;;  %932 = vst [vmem:[#allocation1 + $0x1] ss:$2 sm:$0xff] %v849_v17  ;;  %391 = vrot.lane.b32.xlu0 %v374_v18, %s2936_s26  ;;  %v1346_v61 = vrot.slane %v3242_v27, 4 }
  0xc7   : > { %v380_v44 = vld.sshfl [vmem:[#allocation1 + $0x30] sm:$0xff pattern:$0x75316420]  ;;  %940 = vst [vmem:[#allocation1 + $0x20] ss:$2 sm:$0xff] %v827_v19  ;;  %v884_v6 = vrot.slane %v881_v41, 4  ;;  %v1403_v13 = vsel %vm222_vm0, %v1402_v59, %v1395_v58 }
  0xc8   : > { %v1316_v48 = vpop.permute.xlu0 %1315  ;;  %v1320_v49 = vpop.permute.xlu1 %1319  ;;  %944 = vst [vmem:[#allocation1 + $0x30] ss:$2 sm:$0xff] %v883_v37  ;;  %v857_v11 = vsel %vm222_vm0, 0.0, %v856_v53  ;;  %v913_v16 = vsel %vm222_vm0, 0.0, %v912_v54  ;;  %v1347_v17 = vsel %vm222_vm0, %v1346_v61, %v3255_v2  ;;  %v829_v1 = vsel %vm222_vm0, 0.0, %v828_v5 }
  0xc9   : > { %v1317_v52 = vrot.slane %v1316_v48, 4  ;;  %942 = vst [vmem:[#allocation1 + $0x21] ss:$2 sm:$0xff] %v855_v42  ;;  %v1369_v55 = vsel %vm222_vm0, %v1368_v38, %v1316_v48  ;;  %v1362_v56 = vrot.slane %v1320_v49, 4  ;;  %v1419_v10 = vsel %vm222_vm0, %v1320_v49, %v1313_v50 }
  0xca   : > { %946 = vst [vmem:[#allocation1 + $0x31] ss:$2 sm:$0xff] %v911_v46  ;;  %v938_v35 = vld.sshfl [vmem:[#allocation1 + $0x10] sm:$0xff pattern:$0x75316420]  ;;  %v3252_v60 = vperm.slane %v1369_v55, %v3107_v12  ;;  %v1423_v15 = vperm.slane %v1419_v10, %v3107_v12  ;;  %v885_v24 = vsel %vm222_vm0, 0.0, %v884_v6  ;;  %v1409_v26 = vperm.slane %v1403_v13, %v3120_v23 }
  0xcb   : > { %393 = vrot.lane.b32.xlu1 %v379_v39, %s2936_s26  ;;  %951 = vst [vmem:[#allocation1 + $0x10] ss:$2 sm:$0xff] %v881_v41  ;;  %v1425_v62 = vsel %vm222_vm0, %v1324_v20, %v1317_v52  ;;  %v1363_v63 = vsel %vm222_vm0, %v1362_v56, %v3187_v43  ;;  %v1404_v20 = vrot.slane %v1395_v58, 4  ;;  %v1353_v19 = vperm.slane %v1347_v17, %v3120_v23 }
  0xcc   : > { %952 = vst [vmem:[#allocation1 + $0x11] ss:$2 sm:$0xff] %v909_v22  ;;  %v1429_v4 = vperm.slane %v1425_v62, %v3107_v12  ;;  %v1374_v8 = vrot.slane %v3252_v60, 4  ;;  %v1367_v9 = vperm.slane %v1363_v63, %v3107_v12  ;;  %v1432_v29 = vrot.slane %v1423_v15, 4 }
  0xcd   : > { %v937_v7 = vld.sshfl [vmem:[#allocation1] sm:$0xff pattern:$0x75316420]  ;;  %395 = vrot.lane.b32.xlu2 %v380_v44, %s2936_s26  ;;  %v1358_v30 = vrot.slane %v1353_v19, 4  ;;  %v1929_v34 = vrot.slane %v1928_v32, 4  ;;  %v1348_v36 = vrot.slane %v3255_v2, 4  ;;  %v1405_v38 = vsel %vm222_vm0, %v3236_v0, %v1404_v20 }
  0xce   : > { %950 = vst [vmem:[#allocation1 + $0x1] ss:$2 sm:$0xff] %v853_v45  ;;  %963 = vrot.lane.b32.xlu0 %v938_v35, %s2936_s26  ;;  %v1430_v43 = vrot.slane %v1429_v4, 4  ;;  %v1375_v14 = vsel %vm222_vm0, %v1374_v8, %v1367_v9  ;;  %v1414_v37 = vrot.slane %v1409_v26, 4  ;;  %v1376_v22 = vrot.slane %v1367_v9, 4 }
  0xcf   : > { %949 = vst [vmem:[#allocation1] ss:$2 sm:$0xff] %v825_v57  ;;  %v1381_v33 = vperm.slane %v1375_v14, %v3120_v23  ;;  %v1433_v41 = vsel %vm222_vm0, %v1429_v4, %v1432_v29  ;;  %v1359_v44 = vsel %vm222_vm0, 0.0, %v1358_v30  ;;  %v1349_v0 = vsel %vm222_vm0, %v3242_v27, %v1348_v36 }
  0xd0   : > { %v947_v18 = vld.sshfl [vmem:[#allocation1 + $0x20] sm:$0xff pattern:$0x75316420]  ;;  %v1431_v21 = vsel %vm222_vm0, %v1430_v43, %v1423_v15  ;;  %v1936_v42 = vpop.permute.xlu0 %1935  ;;  %v1413_v47 = vperm.slane %v1405_v38, %v3120_v23  ;;  %v1415_v48 = vsel %vm222_vm0, 0.0, %v1414_v37  ;;  %v1377_v49 = vsel %vm222_vm0, %v3252_v60, %v1376_v22  ;;  %v3371_v22 = vpop.permute.xlu2 %1951 }
  0xd1   : > { %v948_v25 = vld.sshfl [vmem:[#allocation1 + $0x30] sm:$0xff pattern:$0x75316420]  ;;  %956 = vst [vmem:[#allocation1 + $0x21] ss:$2 sm:$0xff] %v857_v11  ;;  %v1437_v28 = vperm.slane %v1431_v21, %v3120_v23  ;;  %v1968_v45 = vrot.slane %v1936_v42, 4  ;;  %v2025_v46 = vsel %vm222_vm0, %v1936_v42, %v1929_v34  ;;  %v1441_v52 = vperm.slane %v1433_v41, %v3120_v23  ;;  %v3379_v41 = vpop.permute.xlu1 %1943 }
  0xd2   : > { %958 = vst [vmem:[#allocation1 + $0x31] ss:$2 sm:$0xff] %v913_v16  ;;  %v2937_v50 = vmov 0.0   ;;  %v1386_v51 = vrot.slane %v1381_v33, 4  ;;  %v2029_v56 = vperm.slane %v2025_v46, %v3107_v12  ;;  %v1357_v57 = vperm.slane %v1349_v0, %v3120_v23 }
  0xd3   : > { %955 = vst [vmem:[#allocation1 + $0x20] ss:$2 sm:$0xff] %v829_v1  ;;  %965 = vrot.lane.b32.xlu1 %v947_v18, %s2936_s26  ;;  %v954_v31 = vld.sshfl [vmem:[#allocation1 + $0x10] sm:$0xff pattern:$0x75316420]  ;;  %v1442_v39 = vrot.slane %v1437_v28, 4  ;;  %v1969_v55 = vsel %vm222_vm0, %v1968_v45, %v1928_v32  ;;  %v1385_v59 = vperm.slane %v1377_v49, %v3120_v23 }
  0xd4   : > { %957 = vst [vmem:[#allocation1 + $0x30] ss:$2 sm:$0xff] %v885_v24  ;;  %v1925_v58 = vrot.slane %v3095_v3, 4  ;;  %v1973_v60 = vperm.slane %v1969_v55, %v3107_v12  ;;  %v1416_v2 = vrot.slane %v1413_v47, 4  ;;  %v1387_v61 = vsel %vm222_vm0, 0.0, %v1386_v51 }
  0xd5   : > { %1466 = vst [vmem:[#allocation1 + $0x10] ss:$2 sm:$0xff] %v1409_v26  ;;  %961 = vrot.lane.b32.xlu2 %v937_v7, %s2936_s26  ;;  %v1443_v53 = vsel %vm222_vm0, 0.0, %v1442_v39  ;;  %v1444_v62 = vrot.slane %v1441_v52, 4  ;;  %v2030_v5 = vrot.slane %v2029_v56, 4  ;;  %v1360_v10 = vrot.slane %v1357_v57, 4 }
  0xd6   : > { %v953_v40 = vld.sshfl [vmem:[#allocation1] sm:$0xff pattern:$0x75316420]  ;;  %1468 = vst [vmem:[#allocation1 + $0x11] ss:$2 sm:$0xff] %v1437_v28  ;;  %v1974_v8 = vrot.slane %v1973_v60, 4 }
  0xd7   : > { %1462 = vst [vmem:[#allocation1] ss:$2 sm:$0xff] %v1353_v19  ;;  %969 = vrot.lane.b32.xlu0 %v953_v40, %s2936_s26  ;;  %v1417_v11 = vsel %vm222_vm0, 0.0, %v1416_v2  ;;  %v1445_v43 = vsel %vm222_vm0, 0.0, %v1444_v62  ;;  %v1388_v1 = vrot.slane %v1385_v59, 4  ;;  %v1361_v20 = vsel %vm222_vm0, 0.0, %v1360_v10 }
  0xd8   : > { %1464 = vst [vmem:[#allocation1 + $0x1] ss:$2 sm:$0xff] %v1381_v33  ;;  %v1932_v4 = vpop.permute.xlu0 %1931 }
  0xd9   : > { %166 = vst.msk [vmem:[#allocation2 + $0xa] sm:$0xff] %vm164_vm1, %v2937_v50  ;;  %v1962_v6 = vrot.slane %v1932_v4, 4  ;;  %v2019_v7 = vsel %vm222_vm0, %v1932_v4, %v1925_v58  ;;  %v1389_v29 = vsel %vm222_vm0, 0.0, %v1388_v1 }
  0xda   : > { %v959_v54 = vld.sshfl [vmem:[#allocation1 + $0x20] sm:$0xff pattern:$0x75316420]  ;;  %175 = vst.msk [vmem:[#allocation2 + $0xa] sm:$0xff] %vm173_vm2, %v2937_v50  ;;  %v2023_v9 = vperm.slane %v2019_v7, %v3107_v12 }
  0xdb   : > { %971 = vrot.lane.b32.xlu1 %v954_v31, %s2936_s26  ;;  %v960_v27 = vld.sshfl [vmem:[#allocation1 + $0x30] sm:$0xff pattern:$0x75316420]  ;;  %1472 = vst [vmem:[#allocation1 + $0x20] ss:$2 sm:$0xff] %v1359_v44  ;;  %v1963_v13 = vsel %vm222_vm0, %v1962_v6, %v3095_v3 }
  0xdc   : > { %1476 = vst [vmem:[#allocation1 + $0x30] ss:$2 sm:$0xff] %v1415_v48  ;;  %v1967_v15 = vperm.slane %v1963_v13, %v3107_v12  ;;  %v2031_v16 = vsel %vm222_vm0, %v2030_v5, %v2023_v9  ;;  %v2032_v17 = vrot.slane %v2023_v9, 4 }
  0xdd   : > { %1478 = vst [vmem:[#allocation1 + $0x31] ss:$2 sm:$0xff] %v1443_v53  ;;  %v1470_v35 = vld.sshfl [vmem:[#allocation1 + $0x10] sm:$0xff pattern:$0x75316420]  ;;  %967 = vrot.lane.b32.xlu2 %v948_v25, %s2936_s26  ;;  %v2037_v21 = vperm.slane %v2031_v16, %v3120_v23 }
  0xde   : > { %1483 = vst [vmem:[#allocation1 + $0x10] ss:$2 sm:$0xff] %v1413_v47  ;;  %v1975_v3 = vsel %vm222_vm0, %v1974_v8, %v1967_v15  ;;  %v1976_v24 = vrot.slane %v1967_v15, 4  ;;  %v3330_v25 = vsel %vm222_vm0, %v2029_v56, %v2032_v17 }
  0xdf   : > { %975 = vrot.lane.b32.xlu0 %v960_v27, %s2936_s26  ;;  %1484 = vst [vmem:[#allocation1 + $0x11] ss:$2 sm:$0xff] %v1441_v52  ;;  %v1469_v63 = vld.sshfl [vmem:[#allocation1] sm:$0xff pattern:$0x75316420]  ;;  %v1981_v14 = vperm.slane %v1975_v3, %v3120_v23  ;;  %v2042_v28 = vrot.slane %v2037_v21, 4 }
  0xe0   : > { %1481 = vst [vmem:[#allocation1] ss:$2 sm:$0xff] %v1357_v57  ;;  %v3336_v19 = vsel %vm222_vm0, %v1973_v60, %v1976_v24 }
  0xe1   : > { %1482 = vst [vmem:[#allocation1 + $0x1] ss:$2 sm:$0xff] %v1385_v59  ;;  %v2043_v30 = vsel %vm222_vm0, 0.0, %v2042_v28  ;;  %v1986_v33 = vrot.slane %v1981_v14, 4 }
  0xe2   : > { %1474 = vst [vmem:[#allocation1 + $0x21] ss:$2 sm:$0xff] %v1387_v61 }
  0xe3   : > { %1495 = vrot.lane.b32.xlu1 %v1470_v35, %s2936_s26  ;;  %165 = vst.msk [vmem:[#allocation2 + $0x2] sm:$0xff] %vm164_vm1, %v2937_v50  ;;  %v1987_v36 = vsel %vm222_vm0, 0.0, %v1986_v33 }
  0xe4   : > { %v1480_v18 = vld.sshfl [vmem:[#allocation1 + $0x30] sm:$0xff pattern:$0x75316420]  ;;  %167 = vst.msk [vmem:[#allocation2 + $0x1a] sm:$0xff] %vm164_vm1, %v2937_v50 }
  0xe5   : > { %1489 = vst [vmem:[#allocation1 + $0x30] ss:$2 sm:$0xff] %v1417_v11  ;;  %973 = vrot.lane.b32.xlu2 %v959_v54, %s2936_s26 }
  0xe6   : > { %1490 = vst [vmem:[#allocation1 + $0x31] ss:$2 sm:$0xff] %v1445_v43  ;;  %v1486_v26 = vld.sshfl [vmem:[#allocation1 + $0x10] sm:$0xff pattern:$0x75316420] }
  0xe7   : > { %1493 = vrot.lane.b32.xlu0 %v1469_v63, %s2936_s26  ;;  %2094 = vst [vmem:[#allocation1 + $0x10] ss:$2 sm:$0xff] %v2037_v21 }
  0xe8   : > { %v1485_v31 = vld.sshfl [vmem:[#allocation1] sm:$0xff pattern:$0x75316420]  ;;  %168 = vst.msk [vmem:[#allocation2 + $0x22] sm:$0xff] %vm164_vm1, %v2937_v50 }
  0xe9   : > { %v1479_v32 = vld.sshfl [vmem:[#allocation1 + $0x20] sm:$0xff pattern:$0x75316420]  ;;  %2090 = vst [vmem:[#allocation1] ss:$2 sm:$0xff] %v1981_v14 }
  0xea   : > { %1487 = vst [vmem:[#allocation1 + $0x20] ss:$2 sm:$0xff] %v1361_v20 }
  0xeb   : > { %1501 = vrot.lane.b32.xlu1 %v1485_v31, %s2936_s26  ;;  %1488 = vst [vmem:[#allocation1 + $0x21] ss:$2 sm:$0xff] %v1389_v29 }
  0xec   : > { %169 = vst.msk [vmem:[#allocation2 + $0x32] sm:$0xff] %vm164_vm1, %v2937_v50 }
  0xed   : > { %1497 = vrot.lane.b32.xlu2 %v1479_v32, %s2936_s26  ;;  %v1492_v34 = vld.sshfl [vmem:[#allocation1 + $0x30] sm:$0xff pattern:$0x75316420]  ;;  %170 = vst.msk [vmem:[#allocation2 + $0x3a] sm:$0xff] %vm164_vm1, %v2937_v50 }
  0xee   : > { %2104 = vst [vmem:[#allocation1 + $0x30] ss:$2 sm:$0xff] %v2043_v30 }
  0xef   : > { %1499 = vrot.lane.b32.xlu0 %v1480_v18, %s2936_s26  ;;  %171 = vst.msk [vmem:[#allocation2 + $0x4a] sm:$0xff] %vm164_vm1, %v2937_v50 }
  0xf0   : > { %172 = vst.msk [vmem:[#allocation2 + $0x52] sm:$0xff] %vm164_vm1, %v2937_v50 }
  0xf1   : > { %174 = vst.msk [vmem:[#allocation2 + $0x2] sm:$0xff] %vm173_vm2, %v2937_v50 }
  0xf2   : > { %v1491_v37 = vld.sshfl [vmem:[#allocation1 + $0x20] sm:$0xff pattern:$0x75316420]  ;;  %176 = vst.msk [vmem:[#allocation2 + $0x1a] sm:$0xff] %vm173_vm2, %v2937_v50 }
  0xf3   : > { %1507 = vrot.lane.b32.xlu1 %v1492_v34, %s2936_s26  ;;  %2100 = vst [vmem:[#allocation1 + $0x20] ss:$2 sm:$0xff] %v1987_v36 }
  0xf4   : > { %177 = vst.msk [vmem:[#allocation2 + $0x22] sm:$0xff] %vm173_vm2, %v2937_v50 }
  0xf5   : > { %1503 = vrot.lane.b32.xlu2 %v1486_v26, %s2936_s26  ;;  %178 = vst.msk [vmem:[#allocation2 + $0x32] sm:$0xff] %vm173_vm2, %v2937_v50 }
  0xf6   : > { %179 = vst.msk [vmem:[#allocation2 + $0x3a] sm:$0xff] %vm173_vm2, %v2937_v50 }
  0xf7   : > { %1505 = vrot.lane.b32.xlu0 %v1491_v37, %s2936_s26  ;;  %180 = vst.msk [vmem:[#allocation2 + $0x4a] sm:$0xff] %vm173_vm2, %v2937_v50 }
  0xf8   : > { %181 = vst.msk [vmem:[#allocation2 + $0x52] sm:$0xff] %vm173_vm2, %v2937_v50 }
  0xf9   : > { %160 = vst.msk [vmem:[#allocation2 + $0x12] sm:$0x3] %vm155_vm4, %v2937_v50 }
  0xfa   : > { %156 = vst.msk [vmem:[#allocation2] sm:$0x3] %vm155_vm4, %v2937_v50 }
  0xfb   : > { %157 = vst.msk [vmem:[#allocation2 + $0x18] sm:$0x3] %vm155_vm4, %v2937_v50 }
  0xfc   : > { %158 = vst.msk [vmem:[#allocation2 + $0x30] sm:$0x3] %vm155_vm4, %v2937_v50 }
  0xfd   : > { %159 = vst.msk [vmem:[#allocation2 + $0x48] sm:$0x3] %vm155_vm4, %v2937_v50 }
  0xfe   : > { %161 = vst.msk [vmem:[#allocation2 + $0x2a] sm:$0x3] %vm155_vm4, %v2937_v50 }
  0xff   : > { %162 = vst.msk [vmem:[#allocation2 + $0x42] sm:$0x3] %vm155_vm4, %v2937_v50 }
 0x100   : > { %163 = vst.msk [vmem:[#allocation2 + $0x5a] sm:$0x3] %vm155_vm4, %v2937_v50 }
 0x113   : > { %v384_v38 = vpop.permute.xlu2 %383 }
 0x114   : > { %407 = vst.msk [vmem:[#allocation2 + $0xa] sm:$0xff] %vm405_vm3, %v384_v38 }
 0x11b   : > { %v3374_v39 = vld [vmem:[#allocation2 + $0xa] sm:$0xff] }
 0x11c   : > { %440 = vrot.lane.b32.xlu1 %v3374_v39, %s2938_s27 }
 0x11f   : > { %v390_v40 = vpop.permute.xlu2 %389 }
 0x120   : > { %410 = vst.msk [vmem:[#allocation2 + $0x32] sm:$0xff] %vm405_vm3, %v390_v40 }
 0x127   : > { %v396_v42 = vpop.permute.xlu2 %395  ;;  %v3426_v57 = vld [vmem:[#allocation2 + $0x32] sm:$0xff] }
 0x128   : > { %413 = vst.msk [vmem:[#allocation2 + $0x52] sm:$0xff] %vm405_vm3, %v396_v42 }
 0x12d   : > { %v382_v44 = vpop.permute.xlu1 %381 }
 0x12e   : > { %406 = vst.msk [vmem:[#allocation2 + $0x2] sm:$0xff] %vm405_vm3, %v382_v44 }
 0x12f   : > { %v962_v45 = vpop.permute.xlu2 %961  ;;  %v3453_v7 = vld [vmem:[#allocation2 + $0x52] sm:$0xff] }
 0x130   : > { %v386_v46 = vpop.permute.xlu0 %385 }
 0x131   : > { %408 = vst.msk [vmem:[#allocation2 + $0x1a] sm:$0xff] %vm405_vm3, %v386_v46 }
 0x135   : > { %v388_v0 = vpop.permute.xlu1 %387  ;;  %v3392_v47 = vld [vmem:[#allocation2 + $0x2] sm:$0xff] }
 0x136   : > { %409 = vst.msk [vmem:[#allocation2 + $0x22] sm:$0xff] %vm405_vm3, %v388_v0  ;;  %502 = vrot.lane.b32.xlu1 %v3392_v47, %s2939_s28  ;;  %470 = vrot.lane.b32.xlu2 %v3392_v47, %s2940_s29 }
 0x137   : > { %438 = vrot.lane.b32.xlu0 %v3392_v47, %s2938_s27  ;;  %985 = vst.msk [vmem:[#allocation2 + $0x2] sm:$0xff] %vm405_vm3, %v962_v45  ;;  %v968_v49 = vpop.permute.xlu2 %967 }
 0x138   : > { %v392_v48 = vpop.permute.xlu0 %391  ;;  %v3414_v55 = vld [vmem:[#allocation2 + $0x1a] sm:$0xff] }
 0x139   : > { %411 = vst.msk [vmem:[#allocation2 + $0x3a] sm:$0xff] %vm405_vm3, %v392_v48 }
 0x13d   : > { %v394_v50 = vpop.permute.xlu1 %393  ;;  %v3408_v51 = vld [vmem:[#allocation2 + $0x22] sm:$0xff] }
 0x13e   : > { %412 = vst.msk [vmem:[#allocation2 + $0x4a] sm:$0xff] %vm405_vm3, %v394_v50  ;;  %536 = vrot.lane.b32.xlu1 %v3374_v39, %s2941_s30  ;;  %504 = vrot.lane.b32.xlu2 %v3374_v39, %s2939_s28  ;;  %v993_v28 = vld [vmem:[#allocation2] sm:$0xff] }
 0x13f   : > { %472 = vrot.lane.b32.xlu0 %v3374_v39, %s2940_s29  ;;  %988 = vst.msk [vmem:[#allocation2 + $0x22] sm:$0xff] %vm405_vm3, %v968_v49  ;;  %v974_v53 = vpop.permute.xlu2 %973  ;;  %v1009_v29 = vld [vmem:[#allocation2 + $0x1] sm:$0xff] }
 0x140   : > { %v964_v52 = vpop.permute.xlu0 %963  ;;  %v3429_v35 = vld [vmem:[#allocation2 + $0x3a] sm:$0xff]  ;;  %v1025_v31 = vld [vmem:[#allocation2 + $0x2] sm:$0xff] }
 0x141   : > { %986 = vst.msk [vmem:[#allocation2 + $0xa] sm:$0xff] %vm405_vm3, %v964_v52 }
 0x145   : > { %v966_v54 = vpop.permute.xlu1 %965  ;;  %v3421_v27 = vld [vmem:[#allocation2 + $0x4a] sm:$0xff] }
 0x146   : > { %987 = vst.msk [vmem:[#allocation2 + $0x1a] sm:$0xff] %vm405_vm3, %v966_v54  ;;  %474 = vrot.lane.b32.xlu1 %v3414_v55, %s2940_s29  ;;  %442 = vrot.lane.b32.xlu2 %v3414_v55, %s2938_s27  ;;  %v1028_v37 = vld [vmem:[#allocation2 + $0x22] sm:$0xff] }
 0x147   : > { %534 = vrot.lane.b32.xlu0 %v3392_v47, %s2941_s30  ;;  %991 = vst.msk [vmem:[#allocation2 + $0x4a] sm:$0xff] %vm405_vm3, %v974_v53  ;;  %v1498_v58 = vpop.permute.xlu2 %1497  ;;  %v1044_v38 = vld [vmem:[#allocation2 + $0x23] sm:$0xff] }
 0x148   : > { %v994_v8 = vld [vmem:[#allocation2 + $0x8] sm:$0xff] }
 0x149   : > { %v970_v56 = vpop.permute.xlu0 %969  ;;  %v1010_v9 = vld [vmem:[#allocation2 + $0x9] sm:$0xff] }
 0x14a   : > { %989 = vst.msk [vmem:[#allocation2 + $0x32] sm:$0xff] %vm405_vm3, %v970_v56  ;;  %v1026_v10 = vld [vmem:[#allocation2 + $0xa] sm:$0xff] }
 0x14b   : > { %v3456_v11 = vld [vmem:[#allocation2 + $0xb] sm:$0xff]  ;;  %v3460_v43 = vld [vmem:[#allocation2 + $0x3] sm:$0xff] }
 0x14c   : > { %v3458_v13 = vld [vmem:[#allocation2 + $0xc] sm:$0xff]  ;;  %v3462_v15 = vld [vmem:[#allocation2 + $0x4] sm:$0xff] }
 0x14d   : > { %v972_v59 = vpop.permute.xlu1 %971  ;;  %v3431_v60 = vld [vmem:[#allocation2 + $0x18] sm:$0xff]  ;;  %v3448_v5 = vld [vmem:[#allocation2 + $0x20] sm:$0xff] }
 0x14e   : > { %990 = vst.msk [vmem:[#allocation2 + $0x3a] sm:$0xff] %vm405_vm3, %v972_v59  ;;  %508 = vrot.lane.b32.xlu1 %v3408_v51, %s2939_s28  ;;  %476 = vrot.lane.b32.xlu2 %v3408_v51, %s2940_s29  ;;  %v3438_v2 = vld [vmem:[#allocation2 + $0x19] sm:$0xff]  ;;  %v3450_v4 = vld [vmem:[#allocation2 + $0x21] sm:$0xff]  ;;  %v1015_v54 = vld [vmem:[#allocation2 + $0x49] sm:$0xff]  ;;  %v1017_v59 = vadd.f32 %v1009_v29, %v993_v28 }
 0x14f   : > { %v3440_v61 = vld [vmem:[#allocation2 + $0x1a] sm:$0xff]  ;;  %444 = vrot.lane.b32.xlu0 %v3408_v51, %s2938_s27  ;;  %v1504_v17 = vpop.permute.xlu2 %1503  ;;  %v1060_v40 = vld [vmem:[#allocation2 + $0x24] sm:$0xff] }
 0x150   : > { %v3442_v62 = vld [vmem:[#allocation2 + $0x1b] sm:$0xff]  ;;  %v999_v53 = vld [vmem:[#allocation2 + $0x48] sm:$0xff] }
 0x151   : > { %v3446_v63 = vld [vmem:[#allocation2 + $0x1c] sm:$0xff]  ;;  %v976_v6 = vpop.permute.xlu0 %975  ;;  %v997_v32 = vld [vmem:[#allocation2 + $0x30] sm:$0xff] }
 0x152   : > { %1519 = vst.msk [vmem:[#allocation2 + $0x1a] sm:$0xff] %vm405_vm3, %v1498_v58  ;;  %v1013_v30 = vld [vmem:[#allocation2 + $0x31] sm:$0xff]  ;;  %v1018_v58 = vadd.f32 %v1010_v9, %v994_v8  ;;  %v1020_v8 = vadd.f32 %v3450_v4, %v3448_v5  ;;  %v1019_v9 = vadd.f32 %v3438_v2, %v3431_v60 }
 0x153   : > { %992 = vst.msk [vmem:[#allocation2 + $0x52] sm:$0xff] %vm405_vm3, %v976_v6  ;;  %v1029_v33 = vld [vmem:[#allocation2 + $0x32] sm:$0xff]  ;;  %v1031_v56 = vld [vmem:[#allocation2 + $0x4a] sm:$0xff] }
 0x154   : > { %v1034_v6 = vadd.f32 %v1026_v10, %v1018_v58 }
 0x155   : > { %v1496_v16 = vpop.permute.xlu1 %1495  ;;  %v3464_v1 = vld [vmem:[#allocation2 + $0x33] sm:$0xff]  ;;  %v3479_v26 = vld [vmem:[#allocation2 + $0x3b] sm:$0xff] }
 0x156   : > { %v3466_v18 = vld [vmem:[#allocation2 + $0x34] sm:$0xff]  ;;  %446 = vrot.lane.b32.xlu1 %v3426_v57, %s2938_s27  ;;  %538 = vrot.lane.b32.xlu2 %v3414_v55, %s2941_s30  ;;  %1518 = vst.msk [vmem:[#allocation2 + $0xa] sm:$0xff] %vm405_vm3, %v1496_v16  ;;  %v3483_v14 = vld [vmem:[#allocation2 + $0x3c] sm:$0xff]  ;;  %v1033_v16 = vadd.f32 %v1025_v31, %v1017_v59  ;;  %v1036_v31 = vadd.f32 %v1028_v37, %v1020_v8 }
 0x157   : > { %v3468_v21 = vld [vmem:[#allocation2 + $0x38] sm:$0xff]  ;;  %506 = vrot.lane.b32.xlu0 %v3414_v55, %s2939_s28 }
 0x158   : > { %v3475_v3 = vld [vmem:[#allocation2 + $0x39] sm:$0xff]  ;;  %v1052_v4 = vadd.f32 %v1044_v38, %v1036_v31 }
 0x159   : > { %v3477_v24 = vld [vmem:[#allocation2 + $0x3a] sm:$0xff]  ;;  %v1494_v20 = vpop.permute.xlu0 %1493  ;;  %v1022_v2 = vadd.f32 %v3475_v3, %v3468_v21 }
 0x15a   : > { %1522 = vst.msk [vmem:[#allocation2 + $0x3a] sm:$0xff] %vm405_vm3, %v1504_v17  ;;  %v3495_v42 = vld [vmem:[#allocation2 + $0x4b] sm:$0xff]  ;;  %v3505_v49 = vld [vmem:[#allocation2 + $0x53] sm:$0xff]  ;;  %v1050_v17 = vadd.f32 %v3456_v11, %v1034_v6 }
 0x15b   : > { %1517 = vst.msk [vmem:[#allocation2 + $0x2] sm:$0xff] %vm405_vm3, %v1494_v20  ;;  %v3497_v44 = vld [vmem:[#allocation2 + $0x4c] sm:$0xff]  ;;  %v3507_v50 = vld [vmem:[#allocation2 + $0x54] sm:$0xff]  ;;  %v1049_v20 = vadd.f32 %v3460_v43, %v1033_v16  ;;  %v1038_v43 = vadd.f32 %v3477_v24, %v1022_v2 }
 0x15c   : > { %v3499_v45 = vld [vmem:[#allocation2 + $0x50] sm:$0xff]  ;;  %v1066_v10 = vadd.f32 %v3458_v13, %v1050_v17  ;;  %v1068_v13 = vadd.f32 %v1060_v40, %v1052_v4  ;;  %v1591_v17 = vld [vmem:[#allocation2 + $0x1a] sm:$0xff] }
 0x15d   : > { %v1502_v34 = vpop.permute.xlu1 %1501  ;;  %v3501_v46 = vld [vmem:[#allocation2 + $0x51] sm:$0xff]  ;;  %v1065_v28 = vadd.f32 %v3462_v15, %v1049_v20 }
 0x15e   : > { %480 = vrot.lane.b32.xlu1 %v3429_v35, %s2940_s29  ;;  %448 = vrot.lane.b32.xlu2 %v3429_v35, %s2938_s27  ;;  %1521 = vst.msk [vmem:[#allocation2 + $0x32] sm:$0xff] %vm405_vm3, %v1502_v34  ;;  %v3503_v48 = vld [vmem:[#allocation2 + $0x52] sm:$0xff]  ;;  %v1021_v34 = vadd.f32 %v1013_v30, %v997_v32  ;;  %v1590_v24 = vld [vmem:[#allocation2 + $0xa] sm:$0xff]  ;;  %v1024_v38 = vadd.f32 %v3501_v46, %v3499_v45 }
 0x15f   : > { %540 = vrot.lane.b32.xlu0 %v3408_v51, %s2941_s30  ;;  %v1638_v32 = vld [vmem:[#allocation2 + $0xb] sm:$0xff]  ;;  %v1543_v45 = vld [vmem:[#allocation2 + $0x19] sm:$0xff] }
 0x160   : > { %v1037_v29 = vadd.f32 %v1029_v33, %v1021_v34  ;;  %v1686_v46 = vld [vmem:[#allocation2 + $0xc] sm:$0xff] }
 0x161   : > { %v1500_v36 = vpop.permute.xlu0 %1499 }
 0x162   : > { %1520 = vst.msk [vmem:[#allocation2 + $0x22] sm:$0xff] %vm405_vm3, %v1500_v36  ;;  %v1035_v36 = vadd.f32 %v3440_v61, %v1019_v9  ;;  %v1053_v5 = vadd.f32 %v3464_v1, %v1037_v29  ;;  %v1541_v21 = vld [vmem:[#allocation2 + $0x1] sm:$0xff]  ;;  %v1542_v30 = vld [vmem:[#allocation2 + $0x9] sm:$0xff] }
 0x163   : > { %v1589_v3 = vld [vmem:[#allocation2 + $0x2] sm:$0xff] }
 0x164   : > { %v1051_v60 = vadd.f32 %v3442_v62, %v1035_v36  ;;  %v1069_v11 = vadd.f32 %v3466_v18, %v1053_v5  ;;  %v1054_v62 = vadd.f32 %v3479_v26, %v1038_v43  ;;  %v1023_v18 = vadd.f32 %v1015_v54, %v999_v53  ;;  %v1637_v53 = vld [vmem:[#allocation2 + $0x3] sm:$0xff]  ;;  %v1594_v43 = vld [vmem:[#allocation2 + $0x3a] sm:$0xff] }
 0x165   : > { %v1508_v0 = vpop.permute.xlu1 %1507  ;;  %v1593_v36 = vld [vmem:[#allocation2 + $0x32] sm:$0xff] }
 0x166   : > { %542 = vrot.lane.b32.xlu1 %v3426_v57, %s2941_s30  ;;  %510 = vrot.lane.b32.xlu2 %v3426_v57, %s2939_s28  ;;  %1524 = vst.msk [vmem:[#allocation2 + $0x52] sm:$0xff] %vm405_vm3, %v1508_v0  ;;  %v1067_v61 = vadd.f32 %v3446_v63, %v1051_v60  ;;  %v1070_v1 = vadd.f32 %v3483_v14, %v1054_v62  ;;  %v1546_v5 = vld [vmem:[#allocation2 + $0x39] sm:$0xff]  ;;  %v1545_v4 = vld [vmem:[#allocation2 + $0x31] sm:$0xff] }
 0x167   : > { %478 = vrot.lane.b32.xlu0 %v3426_v57, %s2940_s29  ;;  %v1039_v26 = vadd.f32 %v1031_v56, %v1023_v18  ;;  %v1040_v0 = vadd.f32 %v3503_v48, %v1024_v38 }
 0x169   : > { %v1506_v52 = vpop.permute.xlu0 %1505  ;;  %v1055_v37 = vadd.f32 %v3495_v42, %v1039_v26  ;;  %v1056_v42 = vadd.f32 %v3505_v49, %v1040_v0  ;;  %v1544_v16 = vld [vmem:[#allocation2 + $0x21] sm:$0xff] }
 0x16a   : > { %1523 = vst.msk [vmem:[#allocation2 + $0x4a] sm:$0xff] %vm405_vm3, %v1506_v52  ;;  %v1685_v52 = vld [vmem:[#allocation2 + $0x4] sm:$0xff]  ;;  %v1639_v8 = vld [vmem:[#allocation2 + $0x1b] sm:$0xff] }
 0x16b   : > { %v1071_v40 = vadd.f32 %v3497_v44, %v1055_v37  ;;  %v1072_v44 = vadd.f32 %v3507_v50, %v1056_v42  ;;  %v1592_v49 = vld [vmem:[#allocation2 + $0x22] sm:$0xff] }
 0x16c   : > { %v1687_v9 = vld [vmem:[#allocation2 + $0x1c] sm:$0xff]  ;;  %v1688_v42 = vld [vmem:[#allocation2 + $0x24] sm:$0xff] }
 0x16d   : > { %v1596_v37 = vld [vmem:[#allocation2 + $0x52] sm:$0xff] }
 0x16e   : > { %452 = vrot.lane.b32.xlu1 %v3453_v7, %s2938_s27  ;;  %544 = vrot.lane.b32.xlu2 %v3429_v35, %s2941_s30  ;;  %v1644_v38 = vld [vmem:[#allocation2 + $0x53] sm:$0xff] }
 0x16f   : > { %512 = vrot.lane.b32.xlu0 %v3429_v35, %s2939_s28 }
 0x171   : > { %v1595_v18 = vld [vmem:[#allocation2 + $0x4a] sm:$0xff] }
 0x176   : > { %514 = vrot.lane.b32.xlu1 %v3421_v27, %s2939_s28  ;;  %482 = vrot.lane.b32.xlu2 %v3421_v27, %s2940_s29 }
 0x177   : > { %450 = vrot.lane.b32.xlu0 %v3421_v27, %s2938_s27 }
 0x17e   : > { %548 = vrot.lane.b32.xlu1 %v3453_v7, %s2941_s30  ;;  %516 = vrot.lane.b32.xlu2 %v3453_v7, %s2939_s28 }
 0x17f   : > { %484 = vrot.lane.b32.xlu0 %v3453_v7, %s2940_s29 }
 0x186   : > { %1083 = vrot.lane.b32.xlu2 %v1066_v10, %s2940_s29  ;;  %1081 = vrot.lane.b32.xlu1 %v1065_v28, %s2940_s29  ;;  %v1640_v10 = vld [vmem:[#allocation2 + $0x23] sm:$0xff] }
 0x187   : > { %546 = vrot.lane.b32.xlu0 %v3421_v27, %s2941_s30 }
 0x18e   : > { %1089 = vrot.lane.b32.xlu2 %v1069_v11, %s2940_s29  ;;  %1087 = vrot.lane.b32.xlu1 %v1068_v13, %s2940_s29  ;;  %v3570_v14 = vpop.permute.xlu1 %440  ;;  %v1642_v13 = vld [vmem:[#allocation2 + $0x3b] sm:$0xff] }
 0x18f   : > { %1085 = vrot.lane.b32.xlu0 %v1067_v61, %s2940_s29  ;;  %v1641_v61 = vld [vmem:[#allocation2 + $0x33] sm:$0xff] }
 0x190   : > { %v3558_v15 = vpop.permute.xlu2 %470 }
 0x196   : > { %1557 = vrot.lane.b32.xlu2 %v1541_v21, %s2938_s27  ;;  %1605 = vrot.lane.b32.xlu1 %v1589_v3, %s2940_s29  ;;  %v1547_v3 = vld [vmem:[#allocation2 + $0x49] sm:$0xff] }
 0x197   : > { %1091 = vrot.lane.b32.xlu0 %v1070_v1, %s2940_s29 }
 0x198   : > { %v3565_v63 = vpop.permute.xlu2 %504 }
 0x19e   : > { %1607 = vrot.lane.b32.xlu2 %v1590_v24, %s2940_s29  ;;  %1655 = vrot.lane.b32.xlu1 %v1638_v32, %s2939_s28  ;;  %v1548_v24 = vld [vmem:[#allocation2 + $0x51] sm:$0xff] }
 0x19f   : > { %1559 = vrot.lane.b32.xlu0 %v1542_v30, %s2938_s27 }
 0x1a0   : > { %v3572_v33 = vpop.permute.xlu2 %442 }
 0x1a6   : > { %1701 = vrot.lane.b32.xlu2 %v1685_v52, %s2941_s30  ;;  %1093 = vrot.lane.b32.xlu1 %v1071_v40, %s2940_s29  ;;  %v1643_v40 = vld [vmem:[#allocation2 + $0x4b] sm:$0xff] }
 0x1a7   : > { %1653 = vrot.lane.b32.xlu0 %v1637_v53, %s2939_s28 }
 0x1a8   : > { %v3582_v54 = vpop.permute.xlu1 %502  ;;  %v3584_v56 = vpop.permute.xlu2 %476 }
 0x1a9   : > { %v3587_v58 = vpop.permute.xlu0 %438 }
 0x1ae   : > { %1095 = vrot.lane.b32.xlu2 %v1072_v44, %s2940_s29  ;;  %1561 = vrot.lane.b32.xlu1 %v1543_v45, %s2938_s27  ;;  %v2810_v44 = vld [vmem:[%s3037_s15 + $0x18] sm:$0xff] }
 0x1af   : > { %1703 = vrot.lane.b32.xlu0 %v1686_v46, %s2941_s30 }
 0x1b0   : > { %v3593_v48 = vpop.permute.xlu1 %536  ;;  %v3595_v59 = vpop.permute.xlu2 %538 }
 0x1b1   : > { %4296 = vst [vmem:[#allocation9_spill] sm:$0xff] %v3595_v59  ;;  %v3597_v6 = vpop.permute.xlu0 %472 }
 0x1b6   : > { %1563 = vrot.lane.b32.xlu2 %v1544_v16, %s2938_s27  ;;  %1611 = vrot.lane.b32.xlu1 %v1592_v49, %s2940_s29  ;;  %v1690_v49 = vld [vmem:[#allocation2 + $0x3c] sm:$0xff] }
 0x1b7   : > { %1609 = vrot.lane.b32.xlu0 %v1591_v17, %s2940_s29  ;;  %v1689_v17 = vld [vmem:[#allocation2 + $0x34] sm:$0xff] }
 0x1b8   : > { %v3602_v50 = vpop.permute.xlu1 %474  ;;  %v3604_v20 = vpop.permute.xlu2 %448 }
 0x1b9   : > { %v3606_v34 = vpop.permute.xlu0 %534 }
 0x1be   : > { %1657 = vrot.lane.b32.xlu2 %v1639_v8, %s2939_s28  ;;  %1705 = vrot.lane.b32.xlu1 %v1687_v9, %s2941_s30  ;;  %v1691_v8 = vld [vmem:[#allocation2 + $0x4c] sm:$0xff] }
 0x1bf   : > { %1659 = vrot.lane.b32.xlu0 %v1640_v10, %s2939_s28 }
 0x1c0   : > { %v3611_v28 = vpop.permute.xlu1 %508  ;;  %v3613_v29 = vpop.permute.xlu2 %510 }
 0x1c1   : > { %v3615_v31 = vpop.permute.xlu0 %444 }
 0x1c6   : > { %1613 = vrot.lane.b32.xlu2 %v1593_v36, %s2940_s29  ;;  %1567 = vrot.lane.b32.xlu1 %v1546_v5, %s2938_s27  ;;  %v1692_v5 = vld [vmem:[#allocation2 + $0x54] sm:$0xff] }
 0x1c7   : > { %1565 = vrot.lane.b32.xlu0 %v1545_v4, %s2938_s27 }
 0x1c8   : > { %v3620_v60 = vpop.permute.xlu1 %446  ;;  %v3622_v2 = vpop.permute.xlu2 %544 }
 0x1c9   : > { %4297 = vst [vmem:[#allocation10_spill] sm:$0xff] %v3622_v2  ;;  %v3624_v11 = vpop.permute.xlu0 %506 }
 0x1ce   : > { %1663 = vrot.lane.b32.xlu2 %v1642_v13, %s2939_s28  ;;  %1661 = vrot.lane.b32.xlu1 %v1641_v61, %s2939_s28 }
 0x1cf   : > { %1615 = vrot.lane.b32.xlu0 %v1594_v43, %s2940_s29 }
 0x1d0   : > { %v3629_v62 = vpop.permute.xlu1 %480  ;;  %v3631_v1 = vpop.permute.xlu2 %482 }
 0x1d1   : > { %4298 = vst [vmem:[#allocation11_spill] sm:$0xff] %v3629_v62  ;;  %v3633_v21 = vpop.permute.xlu0 %540 }
 0x1d6   : > { %1569 = vrot.lane.b32.xlu2 %v1547_v3, %s2938_s27  ;;  %1617 = vrot.lane.b32.xlu1 %v1595_v18, %s2940_s29 }
 0x1d7   : > { %1571 = vrot.lane.b32.xlu0 %v1548_v24, %s2938_s27  ;;  %s2861_s27 = scalar_lea.hbm %s4290_s1, 64 }
 0x1d8   : > { %v3638_v32 = vpop.permute.xlu1 %542  ;;  %v3640_v30 = vpop.permute.xlu2 %516 }
 0x1d9   : > { %4299 = vst [vmem:[#allocation12_spill] sm:$0xff] %v3640_v30  ;;  %v3642_v26 = vpop.permute.xlu0 %478 }
 0x1de   : > { %1619 = vrot.lane.b32.xlu2 %v1596_v37, %s2940_s29  ;;  %1667 = vrot.lane.b32.xlu1 %v1644_v38, %s2939_s28 }
 0x1df   : > { %1665 = vrot.lane.b32.xlu0 %v1643_v40, %s2939_s28 }
 0x1e0   : > { %v3647_v0 = vpop.permute.xlu1 %452  ;;  %v1084_v52 = vpop.permute.xlu2 %1083 }
 0x1e1   : > { %v3649_v53 = vpop.permute.xlu0 %512 }
 0x1e2   : > { %4300 = vst [vmem:[#allocation13_spill] sm:$0xff] %v3649_v53 }
 0x1e6   : > { %1947 = vrot.lane.b32.xlu2 %v2810_v44, %s2932_s24  ;;  %1939 = vrot.lane.b32.xlu1 %v2810_v44, %s2931_s18 }
 0x1e7   : > { %1707 = vrot.lane.b32.xlu0 %v1688_v42, %s2941_s30  ;;  %v1525_v42 = vld [vmem:[#allocation2] sm:$0xff] }
 0x1e8   : > { %v3655_v45 = vpop.permute.xlu1 %514  ;;  %v1090_v46 = vpop.permute.xlu2 %1089 }
 0x1e9   : > { %4301 = vst [vmem:[#allocation14_spill] sm:$0xff] %v3655_v45  ;;  %v3657_v16 = vpop.permute.xlu0 %450  ;;  %v1105_v4 = vrot.slane %v1090_v46, 4 }
 0x1ee   : > { %1711 = vrot.lane.b32.xlu2 %v1690_v49, %s2941_s30  ;;  %1709 = vrot.lane.b32.xlu1 %v1689_v17, %s2941_s30  ;;  %v1163_v17 = vrot.slane %v1084_v52, 4 }
 0x1ef   : > { %1713 = vrot.lane.b32.xlu0 %v1691_v8, %s2941_s30 }
 0x1f0   : > { %v3662_v9 = vpop.permute.xlu1 %548  ;;  %v1558_v10 = vpop.permute.xlu2 %1557 }
 0x1f1   : > { %4302 = vst [vmem:[#allocation15_spill] sm:$0xff] %v3662_v9  ;;  %v3664_v36 = vpop.permute.xlu0 %484  ;;  %v1581_v44 = vadd.f32 %v1558_v10, %v1525_v42 }
 0x1f2   : > { %4303 = vst [vmem:[#allocation16_spill] sm:$0xff] %v3664_v36 }
 0x1f6   : > { %1715 = vrot.lane.b32.xlu1 %v1692_v5, %s2941_s30 }
 0x1f8   : > { %v1608_v13 = vpop.permute.xlu2 %1607  ;;  %v1082_v61 = vpop.permute.xlu1 %1081 }
 0x1f9   : > { %v3667_v43 = vpop.permute.xlu0 %546  ;;  %v1106_v3 = vsel %vm222_vm0, %v1105_v4, %v1082_v61  ;;  %v1107_v18 = vrot.slane %v1082_v61, 4 }
 0x1fa   : > { %4304 = vst [vmem:[#allocation17_spill] sm:$0xff] %v3667_v43 }
 0x1fb   : > { %v1108_v24 = vsel %vm222_vm0, %v1090_v46, %v1107_v18 }
 0x200   : > { %v1702_v37 = vpop.permute.xlu2 %1701  ;;  %v1088_v38 = vpop.permute.xlu1 %1087 }
 0x201   : > { %v1086_v40 = vpop.permute.xlu0 %1085  ;;  %v1175_v49 = vrot.slane %v1088_v38, 4 }
 0x208   : > { %v1096_v8 = vpop.permute.xlu2 %1095  ;;  %v1606_v9 = vpop.permute.xlu1 %1605 }
 0x209   : > { %v1092_v5 = vpop.permute.xlu0 %1091  ;;  %v1173_v2 = vrot.slane %v1096_v8, 4  ;;  %v1176_v30 = vsel %vm222_vm0, %v1096_v8, %v1175_v49  ;;  %v1629_v53 = vadd.f32 %v1606_v9, %v1581_v44 }
 0x20a   : > { %v1161_v59 = vrot.slane %v1092_v5, 4  ;;  %v1164_v4 = vsel %vm222_vm0, %v1092_v5, %v1163_v17  ;;  %v1184_v61 = vperm.slane %v1176_v30, %v3107_v12 }
 0x20b   : > { %v1172_v46 = vperm.slane %v1164_v4, %v3107_v12  ;;  %v1174_v18 = vsel %vm222_vm0, %v1173_v2, %v1088_v38  ;;  %v1116_v4 = vperm.slane %v1108_v24, %v3107_v12 }
 0x20c   : > { %v1162_v10 = vsel %vm222_vm0, %v1161_v59, %v1084_v52  ;;  %v1180_v42 = vperm.slane %v1174_v18, %v3107_v12  ;;  %v1197_v43 = vrot.slane %v1184_v61, 4  ;;  %v1526_v52 = vld [vmem:[#allocation2 + $0x8] sm:$0xff]  ;;  %v1119_v18 = vrot.slane %v1086_v40, 4 }
 0x20d   : > { %v1168_v36 = vperm.slane %v1162_v10, %v3107_v12  ;;  %v1199_v62 = vrot.slane %v1172_v46, 4 }
 0x20e   : > { %v1185_v45 = vrot.slane %v1180_v42, 4  ;;  %v3680_v9 = vsel %vm222_vm0, %v1197_v43, %v1172_v46  ;;  %v1112_v46 = vperm.slane %v1106_v3, %v3107_v12 }
 0x20f   : > { %4305 = vst [vmem:[#allocation18_spill] sm:$0xff] %v3680_v9  ;;  %v1187_v44 = vrot.slane %v1168_v36, 4  ;;  %v3683_v49 = vsel %vm222_vm0, %v1184_v61, %v1199_v62 }
 0x210   : > { %4306 = vst [vmem:[#allocation19_spill] sm:$0xff] %v3683_v49  ;;  %v1564_v30 = vpop.permute.xlu2 %1563  ;;  %v1656_v17 = vpop.permute.xlu1 %1655  ;;  %v3686_v2 = vsel %vm222_vm0, %v1185_v45, %v1168_v36  ;;  %v1143_v36 = vrot.slane %v1116_v4, 4 }
 0x211   : > { %4307 = vst [vmem:[#allocation20_spill] sm:$0xff] %v3686_v2  ;;  %v1560_v59 = vpop.permute.xlu0 %1559  ;;  %v3689_v38 = vsel %vm222_vm0, %v1180_v42, %v1187_v44  ;;  %v1131_v42 = vrot.slane %v1112_v46, 4 }
 0x212   : > { %4308 = vst [vmem:[#allocation21_spill] sm:$0xff] %v3689_v38  ;;  %v1582_v8 = vadd.f32 %v1560_v59, %v1526_v52 }
 0x214   : > { %v1630_v5 = vadd.f32 %v1608_v13, %v1582_v8 }
 0x216   : > { %v1678_v43 = vadd.f32 %v1656_v17, %v1630_v5 }
 0x218   : > { %v1658_v62 = vpop.permute.xlu2 %1657  ;;  %v1094_v61 = vpop.permute.xlu1 %1093 }
 0x219   : > { %v1654_v10 = vpop.permute.xlu0 %1653  ;;  %v1117_v9 = vrot.slane %v1094_v61, 4  ;;  %v1120_v45 = vsel %vm222_vm0, %v1094_v61, %v1119_v18  ;;  %v1527_v61 = vld [vmem:[#allocation2 + $0x18] sm:$0xff] }
 0x21a   : > { %v1677_v2 = vadd.f32 %v1654_v10, %v1629_v53  ;;  %v1128_v49 = vperm.slane %v1120_v45, %v3107_v12 }
 0x21b   : > { %v1118_v44 = vsel %vm222_vm0, %v1117_v9, %v1086_v40  ;;  %v1528_v9 = vld [vmem:[#allocation2 + $0x20] sm:$0xff] }
 0x21c   : > { %v3696_v13 = vadd.f32 %v1702_v37, %v1677_v2  ;;  %v1124_v24 = vperm.slane %v1118_v44, %v3107_v12  ;;  %v1141_v17 = vrot.slane %v1128_v49, 4  ;;  %v3700_v3 = vsel %vm222_vm0, %v1128_v49, %v1143_v36 }
 0x21d   : > { %4309 = vst [vmem:[#allocation22_spill] sm:$0xff] %v3700_v3  ;;  %v1584_v2 = vadd.f32 %v1564_v30, %v1528_v9  ;;  %v1530_v9 = vld [vmem:[#allocation2 + $0x38] sm:$0xff] }
 0x21e   : > { %v1129_v59 = vrot.slane %v1124_v24, 4  ;;  %v3703_v52 = vsel %vm222_vm0, %v1141_v17, %v1116_v4  ;;  %v3706_v8 = vsel %vm222_vm0, %v1124_v24, %v1131_v42 }
 0x21f   : > { %4310 = vst [vmem:[#allocation23_spill] sm:$0xff] %v3703_v52  ;;  %v466_v52 = vadd.f32 %v3620_v60, %v3426_v57  ;;  %v463_v57 = vadd.f32 %v3570_v14, %v3374_v39  ;;  %v462_v60 = vadd.f32 %v3587_v58, %v3392_v47  ;;  %v465_v39 = vadd.f32 %v3615_v31, %v3408_v51 }
 0x220   : > { %4311 = vst [vmem:[#allocation24_spill] sm:$0xff] %v3706_v8  ;;  %v1614_v53 = vpop.permute.xlu2 %1613  ;;  %v1562_v5 = vpop.permute.xlu1 %1561  ;;  %v3709_v18 = vsel %vm222_vm0, %v1129_v59, %v1112_v46 }
 0x221   : > { %4312 = vst [vmem:[#allocation25_spill] sm:$0xff] %v3709_v18  ;;  %v1704_v37 = vpop.permute.xlu0 %1703  ;;  %v1583_v10 = vadd.f32 %v1562_v5, %v1527_v61  ;;  %v494_v58 = vadd.f32 %v3558_v15, %v462_v60  ;;  %v464_v15 = vadd.f32 %v3572_v33, %v3414_v55  ;;  %v467_v33 = vadd.f32 %v3604_v20, %v3429_v35  ;;  %v4314_v35 = vld [vmem:[#allocation14_spill] sm:$0xff] }
 0x222   : > { %v1726_v40 = vadd.f32 %v1704_v37, %v1678_v43  ;;  %v1529_v37 = vld [vmem:[#allocation2 + $0x30] sm:$0xff] }
 0x228   : > { %v1664_v49 = vpop.permute.xlu2 %1663  ;;  %v1612_v45 = vpop.permute.xlu1 %1611 }
 0x229   : > { %v1610_v36 = vpop.permute.xlu0 %1609  ;;  %v3711_v44 = vadd.f32 %v1612_v45, %v1584_v2 }
 0x22a   : > { %v1631_v4 = vadd.f32 %v1610_v36, %v1583_v10 }
 0x22c   : > { %v1679_v17 = vadd.f32 %v1658_v62, %v1631_v4  ;;  %v1531_v4 = vld [vmem:[#allocation2 + $0x48] sm:$0xff] }
 0x230   : > { %v1570_v42 = vpop.permute.xlu2 %1569  ;;  %v1706_v24 = vpop.permute.xlu1 %1705 }
 0x231   : > { %v3713_v38 = vpop.permute.xlu0 %1659  ;;  %v3715_v3 = vadd.f32 %v1706_v24, %v1679_v17  ;;  %v1587_v8 = vadd.f32 %v1570_v42, %v1531_v4 }
 0x233   : > { %4313 = vst [vmem:[#allocation26_spill] sm:$0xff] %v3715_v3  ;;  %v1791_v3 = vrot.slane %v1726_v40, 4 }
 0x238   : > { %v1620_v46 = vpop.permute.xlu2 %1619  ;;  %v1568_v59 = vpop.permute.xlu1 %1567 }
 0x239   : > { %v1566_v43 = vpop.permute.xlu0 %1565  ;;  %v1586_v61 = vadd.f32 %v1568_v59, %v1530_v9  ;;  %v1532_v59 = vld [vmem:[#allocation2 + $0x50] sm:$0xff] }
 0x23a   : > { %v1585_v30 = vadd.f32 %v1566_v43, %v1529_v37 }
 0x23c   : > { %v1633_v5 = vadd.f32 %v1614_v53, %v1585_v30  ;;  %v498_v30 = vadd.f32 %v3642_v26, %v466_v52  ;;  %v1945_v26 = vrot.slane %v3379_v41, 4 }
 0x23e   : > { %v2053_v51 = vsel %vm222_vm0, %v3371_v22, %v1945_v26 }
 0x240   : > { %v3717_v18 = vpop.permute.xlu2 %1947  ;;  %v1662_v2 = vpop.permute.xlu1 %1661 }
 0x241   : > { %v1616_v45 = vpop.permute.xlu0 %1615  ;;  %v3719_v10 = vadd.f32 %v1662_v2, %v1633_v5 }
 0x242   : > { %v1634_v62 = vadd.f32 %v1616_v45, %v1586_v61 }
 0x244   : > { %v1682_v36 = vadd.f32 %v1664_v49, %v1634_v62  ;;  %v1996_v49 = vrot.slane %v3371_v22, 4  ;;  %v1990_v62 = vrot.slane %v3717_v18, 4 }
 0x246   : > { %v1997_v2 = vsel %vm222_vm0, %v1996_v49, %v3379_v41 }
 0x248   : > { %v1712_v17 = vpop.permute.xlu2 %1711  ;;  %v1618_v24 = vpop.permute.xlu1 %1617 }
 0x249   : > { %v1572_v43 = vpop.permute.xlu0 %1571  ;;  %v1730_v37 = vadd.f32 %v1712_v17, %v1682_v36  ;;  %v3723_v53 = vadd.f32 %v1618_v24, %v1587_v8  ;;  %v3739_v8 = vperm.slane %v3330_v25, %v3120_v23  ;;  %v3752_v25 = vperm.slane %v3336_v19, %v3120_v23 }
 0x24a   : > { %v1588_v9 = vadd.f32 %v1572_v43, %v1532_v59  ;;  %v497_v19 = vadd.f32 %v3584_v56, %v465_v39  ;;  %v526_v36 = vadd.f32 %v3582_v54, %v494_v58  ;;  %v469_v43 = vadd.f32 %v3647_v0, %v3453_v7  ;;  %v4317_v0 = vld [vmem:[#allocation17_spill] sm:$0xff] }
 0x24b   : > { %v1789_v5 = vrot.slane %v1730_v37, 4  ;;  %v3727_v61 = vsel %vm222_vm0, %v1730_v37, %v1791_v3  ;;  %v530_v3 = vadd.f32 %v3613_v29, %v498_v30  ;;  %v468_v29 = vadd.f32 %v3657_v16, %v3421_v27 }
 0x24c   : > { %v1636_v52 = vadd.f32 %v1620_v46, %v1588_v9  ;;  %v2044_v41 = vrot.slane %v3739_v8, 4  ;;  %v1988_v27 = vrot.slane %v3752_v25, 4  ;;  %v2057_v16 = vperm.slane %v2053_v51, %v3107_v12  ;;  %v4315_v9 = vld [vmem:[#allocation11_spill] sm:$0xff] }
 0x24d   : > { %v3731_v42 = vsel %vm222_vm0, %v1789_v5, %v1726_v40  ;;  %v495_v40 = vadd.f32 %v3597_v6, %v463_v57  ;;  %v2001_v6 = vperm.slane %v1997_v2, %v3107_v12  ;;  %v3762_v31 = vadd.f32 %v3638_v32, %v530_v3  ;;  %v4316_v5 = vld [vmem:[#allocation16_spill] sm:$0xff]  ;;  %v4318_v2 = vld [vmem:[#allocation9_spill] sm:$0xff] }
 0x24e   : > { %v500_v22 = vadd.f32 %v3631_v1, %v468_v29  ;;  %v3774_v32 = vsel %vm222_vm0, 0.0, %v2044_v41  ;;  %v3784_v17 = vadd.f32 %v3606_v34, %v526_v36  ;;  %v529_v54 = vadd.f32 %v3611_v28, %v497_v19 }
 0x24f   : > { %v527_v46 = vadd.f32 %v3565_v63, %v495_v40  ;;  %v2002_v4 = vrot.slane %v2001_v6, 4  ;;  %v496_v63 = vadd.f32 %v3602_v50, %v464_v15  ;;  %v566_v56 = vrot.slane %v3762_v31, 4 }
 0x250   : > { %v1668_v14 = vpop.permute.xlu1 %1667  ;;  %v3792_v30 = vadd.f32 %v3633_v21, %v529_v54  ;;  %v532_v20 = vadd.f32 %v4314_v35, %v500_v22  ;;  %v499_v28 = vadd.f32 %v4315_v9, %v467_v33  ;;  %v501_v49 = vadd.f32 %v4316_v5, %v469_v43  ;;  %v4323_v5 = vld [vmem:[#allocation15_spill] sm:$0xff] }
 0x251   : > { %v1666_v45 = vpop.permute.xlu0 %1665  ;;  %v3748_v47 = vadd.f32 %v1668_v14, %v1636_v52  ;;  %v3779_v55 = vadd.f32 %v3593_v48, %v527_v46  ;;  %v528_v24 = vadd.f32 %v3624_v11, %v496_v63  ;;  %v2058_v48 = vrot.slane %v2057_v16, 4  ;;  %v4319_v14 = vld [vmem:[#allocation13_spill] sm:$0xff] }
 0x252   : > { %v567_v11 = vsel %vm222_vm0, %v566_v56, %v3784_v17  ;;  %v3803_v57 = vadd.f32 %v4317_v0, %v532_v20  ;;  %v3808_v3 = vsel %vm222_vm0, 0.0, %v1988_v27  ;;  %v531_v58 = vadd.f32 %v4319_v14, %v499_v28 }
 0x253   : > { %v624_v52 = vrot.slane %v3779_v55, 4  ;;  %v3812_v40 = vadd.f32 %v4318_v2, %v528_v24  ;;  %v3821_v15 = vperm.slane %v567_v11, %v3107_v12  ;;  %v1683_v22 = vadd.f32 %v1666_v45, %v3723_v53  ;;  %v4321_v24 = vld [vmem:[#allocation26_spill] sm:$0xff] }
 0x254   : > { %v578_v36 = vrot.slane %v3803_v57, 4  ;;  %v1735_v56 = vrot.slane %v3696_v13, 4  ;;  %v1747_v43 = vrot.slane %v4321_v24, 4  ;;  %v4322_v45 = vld [vmem:[#allocation10_spill] sm:$0xff] }
 0x256   : > { %v579_v28 = vsel %vm222_vm0, %v578_v36, %v3812_v40 }
 0x258   : > { %v1940_v1 = vpop.permute.xlu1 %1939 }
 0x259   : > { %v1708_v50 = vpop.permute.xlu0 %1707  ;;  %v1941_v37 = vrot.slane %v1940_v1, 4  ;;  %v1991_v59 = vsel %vm222_vm0, %v1990_v62, %v1940_v1  ;;  %v4320_v62 = vld [vmem:[#allocation12_spill] sm:$0xff] }
 0x25a   : > { %v1995_v34 = vperm.slane %v1991_v59, %v3107_v12  ;;  %v533_v27 = vadd.f32 %v4320_v62, %v501_v49 }
 0x25b   : > { %v2047_v7 = vsel %vm222_vm0, %v3717_v18, %v1941_v37  ;;  %v636_v18 = vrot.slane %v3792_v30, 4 }
 0x25c   : > { %v2003_v21 = vsel %vm222_vm0, %v2002_v4, %v1995_v34  ;;  %v2004_v60 = vrot.slane %v1995_v34, 4  ;;  %v2051_v26 = vperm.slane %v2047_v7, %v3107_v12  ;;  %v3847_v49 = vadd.f32 %v4323_v5, %v533_v27 }
 0x25d   : > { %v2009_v39 = vperm.slane %v2003_v21, %v3120_v23 }
 0x25e   : > { %v2059_v29 = vsel %vm222_vm0, %v2058_v48, %v2051_v26  ;;  %v2060_v41 = vrot.slane %v2051_v26, 4  ;;  %v2005_v51 = vsel %vm222_vm0, %v2001_v6, %v2004_v60  ;;  %v1680_v6 = vadd.f32 %v3713_v38, %v3711_v44 }
 0x25f   : > { %v2014_v46 = vrot.slane %v2009_v39, 4  ;;  %v2065_v19 = vperm.slane %v2059_v29, %v3120_v23  ;;  %2092 = vst [vmem:[#allocation1 + $0x1] ss:$2 sm:$0xff] %v2009_v39  ;;  %v2013_v37 = vperm.slane %v2005_v51, %v3120_v23  ;;  %v1800_v29 = vperm.slane %v3727_v61, %v3107_v12 }
 0x260   : > { %v2061_v4 = vsel %vm222_vm0, %v2057_v16, %v2060_v41  ;;  %v1710_v63 = vpop.permute.xlu1 %1709  ;;  %v3835_v16 = vadd.f32 %v4322_v45, %v531_v58  ;;  %v1728_v48 = vadd.f32 %v1708_v50, %v1680_v6  ;;  %v592_v50 = vrot.slane %v3821_v15, 4 }
 0x261   : > { %v2015_v33 = vsel %vm222_vm0, 0.0, %v2014_v46  ;;  %v2070_v54 = vrot.slane %v2065_v19, 4  ;;  %2096 = vst [vmem:[#allocation1 + $0x11] ss:$2 sm:$0xff] %v2065_v19  ;;  %v1714_v1 = vpop.permute.xlu0 %1713  ;;  %v1729_v53 = vadd.f32 %v1710_v63, %v3719_v10  ;;  %v2069_v35 = vperm.slane %v2061_v4, %v3120_v23 }
 0x262   : > { %2102 = vst [vmem:[#allocation1 + $0x21] ss:$2 sm:$0xff] %v2015_v33  ;;  %v1731_v59 = vadd.f32 %v1714_v1, %v1683_v22  ;;  %v2016_v7 = vrot.slane %v2013_v37, 4  ;;  %v3859_v58 = vperm.slane %v579_v28, %v3107_v12  ;;  %v1803_v41 = vrot.slane %v1728_v48, 4 }
 0x263   : > { %v2071_v38 = vsel %vm222_vm0, 0.0, %v2070_v54  ;;  %v1733_v34 = vrot.slane %v1729_v53, 4  ;;  %v1736_v9 = vsel %vm222_vm0, %v1729_v53, %v1735_v56  ;;  %v2072_v51 = vrot.slane %v2069_v35, 4 }
 0x264   : > { %2106 = vst [vmem:[#allocation1 + $0x31] ss:$2 sm:$0xff] %v2071_v38  ;;  %v1745_v44 = vrot.slane %v1731_v59, 4  ;;  %v1748_v20 = vsel %vm222_vm0, %v1731_v59, %v1747_v43  ;;  %v1744_v11 = vperm.slane %v1736_v9, %v3107_v12  ;;  %v1796_v22 = vperm.slane %v3731_v42, %v3107_v12 }
 0x265   : > { %v1756_v10 = vperm.slane %v1748_v20, %v3107_v12  ;;  %v1734_v21 = vsel %vm222_vm0, %v1733_v34, %v3696_v13  ;;  %v2017_v61 = vsel %vm222_vm0, 0.0, %v2016_v7  ;;  %v625_v42 = vsel %vm222_vm0, %v3835_v16, %v624_v52 }
 0x266   : > { %v1746_v0 = vsel %vm222_vm0, %v1745_v44, %v4321_v24  ;;  %v3853_v60 = vld.sshfl [vmem:[#allocation1] sm:$0xff pattern:$0x75316420]  ;;  %v1740_v39 = vperm.slane %v1734_v21, %v3107_v12  ;;  %v1771_v14 = vrot.slane %v1744_v11, 4  ;;  %v1827_v24 = vrot.slane %v1800_v29, 4 }
 0x267   : > { %v1752_v26 = vperm.slane %v1746_v0, %v3107_v12  ;;  %v1769_v2 = vrot.slane %v1756_v10, 4  ;;  %2109 = vst [vmem:[#allocation1] ss:$2 sm:$0xff] %v3752_v25  ;;  %v637_v25 = vsel %vm222_vm0, %v3847_v49, %v636_v18  ;;  %v1815_v59 = vrot.slane %v1796_v22, 4 }
 0x268   : > { %v1716_v46 = vpop.permute.xlu1 %1715  ;;  %2110 = vst [vmem:[#allocation1 + $0x1] ss:$2 sm:$0xff] %v2013_v37  ;;  %v1759_v19 = vrot.slane %v1740_v39, 4  ;;  %v3865_v36 = vsel %vm222_vm0, %v1756_v10, %v1771_v14  ;;  %v645_v1 = vperm.slane %v637_v25, %v3107_v12  ;;  %v593_v37 = vsel %vm222_vm0, %v3859_v58, %v592_v50 }
 0x269   : > { %v1757_v13 = vrot.slane %v1752_v26, 4  ;;  %v1732_v62 = vadd.f32 %v1716_v46, %v3748_v47  ;;  %v2107_v27 = vld.sshfl [vmem:[#allocation1 + $0x20] sm:$0xff pattern:$0x75316420]  ;;  %v3875_v4 = vsel %vm222_vm0, %v1769_v2, %v1744_v11  ;;  %v601_v44 = vperm.slane %v593_v37, %v3120_v23 }
 0x26a   : > { %2125 = vrot.lane.b32.xlu0 %v2107_v27, %s2936_s26  ;;  %2115 = vst [vmem:[#allocation1 + $0x20] ss:$2 sm:$0xff] %v3808_v3  ;;  %v3877_v47 = vld.sshfl [vmem:[#allocation1 + $0x10] sm:$0xff pattern:$0x75316420]  ;;  %v3881_v18 = vsel %vm222_vm0, %v1752_v26, %v1759_v19  ;;  %v2073_v3 = vsel %vm222_vm0, 0.0, %v2072_v51 }
 0x26b   : > { %v1801_v63 = vrot.slane %v1732_v62, 4  ;;  %v1804_v56 = vsel %vm222_vm0, %v1732_v62, %v1803_v41  ;;  %2116 = vst [vmem:[#allocation1 + $0x21] ss:$2 sm:$0xff] %v2017_v61  ;;  %v2108_v6 = vld.sshfl [vmem:[#allocation1 + $0x30] sm:$0xff pattern:$0x75316420]  ;;  %v3891_v54 = vsel %vm222_vm0, %v1757_v13, %v1740_v39 }
 0x26c   : > { %v1812_v33 = vperm.slane %v1804_v56, %v3107_v12  ;;  %2117 = vst [vmem:[#allocation1 + $0x30] ss:$2 sm:$0xff] %v3774_v32  ;;  %v633_v32 = vperm.slane %v625_v42, %v3107_v12  ;;  %v580_v34 = vrot.slane %v3812_v40, 4  ;;  %v658_v9 = vrot.slane %v645_v1, 4 }
 0x26d   : > { %v1802_v43 = vsel %vm222_vm0, %v1801_v63, %v1728_v48  ;;  %2118 = vst [vmem:[#allocation1 + $0x31] ss:$2 sm:$0xff] %v2073_v3  ;;  %v568_v28 = vrot.slane %v3784_v17, 4  ;;  %v634_v17 = vrot.slane %v3847_v49, 4  ;;  %v622_v26 = vrot.slane %v3835_v16, 4 }
 0x26e   : > { %v1808_v52 = vperm.slane %v1802_v43, %v3107_v12  ;;  %v1825_v53 = vrot.slane %v1812_v33, 4  ;;  %2111 = vst [vmem:[#allocation1 + $0x10] ss:$2 sm:$0xff] %v3739_v8  ;;  %v3901_v45 = vsel %vm222_vm0, %v1812_v33, %v1827_v24  ;;  %v581_v10 = vsel %vm222_vm0, %v3803_v57, %v580_v34 }
 0x26f   : > { %2112 = vst [vmem:[#allocation1 + $0x11] ss:$2 sm:$0xff] %v2069_v35  ;;  %v660_v50 = vrot.slane %v633_v32, 4  ;;  %v569_v5 = vsel %vm222_vm0, %v3762_v31, %v568_v28  ;;  %v659_v40 = vsel %vm222_vm0, %v658_v9, %v633_v32  ;;  %v589_v7 = vperm.slane %v581_v10, %v3107_v12  ;;  %v2113_v14 = vld.sshfl [vmem:[#allocation1] sm:$0xff pattern:$0x75316420] }
 0x270   : > { %v1813_v38 = vrot.slane %v1808_v52, 4  ;;  %v3905_v48 = vsel %vm222_vm0, %v1825_v53, %v1800_v29  ;;  %v3908_v20 = vsel %vm222_vm0, %v1808_v52, %v1815_v59  ;;  %v577_v21 = vperm.slane %v569_v5, %v3107_v12  ;;  %v4324_v52 = vld [vmem:[#allocation19_spill] sm:$0xff] }
 0x271   : > { %v661_v0 = vsel %vm222_vm0, %v645_v1, %v660_v50  ;;  %v665_v57 = vperm.slane %v659_v40, %v3120_v23  ;;  %v602_v39 = vrot.slane %v589_v7, 4  ;;  %v635_v31 = vsel %vm222_vm0, %v634_v17, %v3792_v30  ;;  %v4325_v9 = vld [vmem:[#allocation23_spill] sm:$0xff] }
 0x272   : > { %683 = vrot.lane.b32.xlu0 %v601_v44, %s2932_s24  ;;  %v2119_v8 = vld.sshfl [vmem:[#allocation1 + $0x20] sm:$0xff pattern:$0x75316420]  ;;  %v3913_v35 = vsel %vm222_vm0, %v1813_v38, %v1796_v22  ;;  %v669_v2 = vperm.slane %v661_v0, %v3120_v23  ;;  %v604_v29 = vrot.slane %v577_v21, 4  ;;  %v623_v49 = vsel %vm222_vm0, %v622_v26, %v3779_v55  ;;  %v4328_v0 = vld [vmem:[#allocation18_spill] sm:$0xff] }
 0x273   : > { %2133 = vrot.lane.b32.xlu1 %v2119_v8, %s2936_s26  ;;  %v603_v51 = vsel %vm222_vm0, %v602_v39, %v577_v21  ;;  %v641_v46 = vperm.slane %v635_v31, %v3107_v12  ;;  %v629_v13 = vperm.slane %v623_v49, %v3107_v12  ;;  %v616_v3 = vrot.slane %v601_v44, 4  ;;  %v4329_v21 = vld [vmem:[#allocation21_spill] sm:$0xff] }
 0x274   : > { %v2120_v11 = vld.sshfl [vmem:[#allocation1 + $0x30] sm:$0xff pattern:$0x75316420]  ;;  %v676_v41 = vrot.slane %v669_v2, 4  ;;  %v605_v16 = vsel %vm222_vm0, %v589_v7, %v604_v29  ;;  %v609_v62 = vperm.slane %v603_v51, %v3120_v23  ;;  %v590_v37 = vrot.slane %v3859_v58, 4  ;;  %v4330_v31 = vld [vmem:[#allocation25_spill] sm:$0xff] }
 0x275   : > { %2135 = vrot.lane.b32.xlu2 %v2120_v11, %s2936_s26  ;;  %v613_v30 = vperm.slane %v605_v16, %v3120_v23  ;;  %v646_v55 = vrot.slane %v641_v46, 4  ;;  %v648_v27 = vrot.slane %v629_v13, 4  ;;  %v617_v24 = vsel %vm222_vm0, 0.0, %v616_v3  ;;  %v4327_v11 = vld [vmem:[#allocation22_spill] sm:$0xff] }
 0x276   : > { %v677_v19 = vsel %vm222_vm0, 0.0, %v676_v41  ;;  %v618_v25 = vrot.slane %v609_v62, 4  ;;  %v674_v59 = vrot.slane %v665_v57, 4  ;;  %v1208_v53 = vperm.slane %v4324_v52, %v3120_v23 }
 0x277   : > { %v649_v22 = vsel %vm222_vm0, %v641_v46, %v648_v27  ;;  %v647_v61 = vsel %vm222_vm0, %v646_v55, %v629_v13  ;;  %v620_v33 = vrot.slane %v613_v30, 4  ;;  %v591_v38 = vsel %vm222_vm0, %v590_v37, %v3821_v15  ;;  %v4326_v15 = vld [vmem:[#allocation24_spill] sm:$0xff] }
 0x278   : > { %v619_v63 = vsel %vm222_vm0, 0.0, %v618_v25  ;;  %v657_v56 = vperm.slane %v649_v22, %v3120_v23  ;;  %v675_v44 = vsel %vm222_vm0, 0.0, %v674_v59  ;;  %v3974_v58 = vperm.slane %v591_v38, %v3120_v23  ;;  %v4331_v13 = vld [vmem:[#allocation20_spill] sm:$0xff] }
 0x279   : > { %v621_v43 = vsel %vm222_vm0, 0.0, %v620_v33  ;;  %v1148_v8 = vperm.slane %v4325_v9, %v3120_v23  ;;  %v1140_v10 = vperm.slane %v4326_v15, %v3120_v23  ;;  %v1152_v50 = vperm.slane %v4327_v11, %v3120_v23 }
 0x27a   : > { %719 = vrot.lane.b32.xlu0 %v665_v57, %s2931_s18  ;;  %v672_v32 = vrot.slane %v657_v56, 4  ;;  %v614_v28 = vrot.slane %v3974_v58, 4  ;;  %v1204_v17 = vperm.slane %v4328_v0, %v3120_v23  ;;  %v1196_v57 = vperm.slane %v4329_v21, %v3120_v23 }
 0x27b   : > { %2127 = vrot.lane.b32.xlu1 %v2108_v6, %s2936_s26  ;;  %v3952_v6 = vperm.slane %v647_v61, %v3120_v23  ;;  %v1159_v40 = vrot.slane %v1152_v50, 4  ;;  %v1157_v41 = vrot.slane %v1148_v8, 4  ;;  %v1155_v16 = vrot.slane %v1140_v10, 4 }
 0x27c   : > { %v673_v34 = vsel %vm222_vm0, 0.0, %v672_v32  ;;  %v615_v5 = vsel %vm222_vm0, 0.0, %v614_v28  ;;  %v1211_v26 = vrot.slane %v1196_v57, 4  ;;  %v1768_v55 = vperm.slane %v3881_v18, %v3120_v23 }
 0x27d   : > { %2129 = vrot.lane.b32.xlu2 %v2113_v14, %s2936_s26  ;;  %v670_v42 = vrot.slane %v3952_v6, 4  ;;  %v1160_v7 = vsel %vm222_vm0, 0.0, %v1159_v40  ;;  %v3999_v14 = vperm.slane %v4330_v31, %v3120_v23  ;;  %v1158_v46 = vsel %vm222_vm0, 0.0, %v1157_v41 }
 0x27e   : > { %v1212_v39 = vsel %vm222_vm0, 0.0, %v1211_v26  ;;  %v1213_v27 = vrot.slane %v1204_v17, 4  ;;  %v1832_v61 = vperm.slane %v3905_v48, %v3120_v23  ;;  %v1776_v18 = vperm.slane %v3875_v4, %v3120_v23 }
 0x27f   : > { %v671_v1 = vsel %vm222_vm0, 0.0, %v670_v42  ;;  %v1153_v49 = vrot.slane %v3999_v14, 4  ;;  %v1824_v48 = vperm.slane %v3908_v20, %v3120_v23  ;;  %v1836_v15 = vperm.slane %v3901_v45, %v3120_v23 }
 0x280   : > { %v1214_v22 = vsel %vm222_vm0, 0.0, %v1213_v27 }
 0x281   : > { %v1154_v51 = vsel %vm222_vm0, 0.0, %v1153_v49  ;;  %v1839_v37 = vrot.slane %v1824_v48, 4 }
 0x282   : > { %731 = vrot.lane.b32.xlu0 %v677_v19, %s2928_s17  ;;  %v4011_v19 = vperm.slane %v4331_v13, %v3120_v23 }
 0x283   : > { %699 = vrot.lane.b32.xlu1 %v613_v30, %s2930_s23  ;;  %v1156_v30 = vsel %vm222_vm0, 0.0, %v1155_v16  ;;  %v1840_v52 = vsel %vm222_vm0, 0.0, %v1839_v37 }
 0x285   : > { %727 = vrot.lane.b32.xlu2 %v669_v2, %s2930_s23  ;;  %v1215_v2 = vrot.slane %v1208_v53, 4 }
 0x287   : > { %v1216_v29 = vsel %vm222_vm0, 0.0, %v1215_v2 }
 0x28a   : > { %695 = vrot.lane.b32.xlu0 %v619_v63, %s2927_s16  ;;  %v1780_v63 = vperm.slane %v3865_v36, %v3120_v23  ;;  %v4039_v36 = vperm.slane %v3913_v35, %v3120_v23 }
 0x28b   : > { %711 = vrot.lane.b32.xlu1 %v657_v56, %s2932_s24  ;;  %v1785_v56 = vrot.slane %v1776_v18, 4 }
 0x28c   : > { %v1787_v3 = vrot.slane %v1780_v63, 4 }
 0x28d   : > { %691 = vrot.lane.b32.xlu2 %v609_v62, %s2931_s18  ;;  %v1209_v62 = vrot.slane %v4011_v19, 4  ;;  %v1786_v33 = vsel %vm222_vm0, 0.0, %v1785_v56 }
 0x28e   : > { %v1788_v4 = vsel %vm222_vm0, 0.0, %v1787_v3 }
 0x28f   : > { %v1210_v25 = vsel %vm222_vm0, 0.0, %v1209_v62 }
 0x292   : > { %707 = vrot.lane.b32.xlu0 %v671_v1, %s2933_s25  ;;  %v1837_v1 = vrot.slane %v4039_v36, 4 }
 0x293   : > { %687 = vrot.lane.b32.xlu1 %v617_v24, %s2929_s22  ;;  %v1783_v24 = vrot.slane %v1768_v55, 4 }
 0x294   : > { %v1838_v20 = vsel %vm222_vm0, 0.0, %v1837_v1 }
 0x295   : > { %703 = vrot.lane.b32.xlu2 %v621_v43, %s2928_s17  ;;  %v1784_v35 = vsel %vm222_vm0, 0.0, %v1783_v24 }
 0x29a   : > { %1266 = vrot.lane.b32.xlu0 %v1208_v53, %s2930_s23  ;;  %v4054_v53 = vperm.slane %v3891_v54, %v3120_v23 }
 0x29b   : > { %723 = vrot.lane.b32.xlu1 %v675_v44, %s2927_s16  ;;  %v2114_v44 = vld.sshfl [vmem:[#allocation1 + $0x10] sm:$0xff pattern:$0x75316420] }
 0x29c   : > { %v1781_v38 = vrot.slane %v4054_v53, 4 }
 0x29d   : > { %715 = vrot.lane.b32.xlu2 %v673_v34, %s2929_s22 }
 0x29e   : > { %v1782_v9 = vsel %vm222_vm0, 0.0, %v1781_v38 }
 0x2a2   : > { %1230 = vrot.lane.b32.xlu0 %v1148_v8, %s2931_s18  ;;  %v1841_v8 = vrot.slane %v1832_v61, 4 }
 0x2a3   : > { %1222 = vrot.lane.b32.xlu1 %v1140_v10, %s2932_s24 }
 0x2a4   : > { %v1842_v10 = vsel %vm222_vm0, 0.0, %v1841_v8 }
 0x2a5   : > { %679 = vrot.lane.b32.xlu2 %v615_v5, %s2933_s25  ;;  %v1843_v5 = vrot.slane %v1836_v15, 4 }
 0x2aa   : > { %1242 = vrot.lane.b32.xlu0 %v1160_v7, %s2928_s17  ;;  %v1844_v7 = vsel %vm222_vm0, 0.0, %v1843_v5 }
 0x2ab   : > { %1258 = vrot.lane.b32.xlu1 %v1204_v17, %s2931_s18 }
 0x2ad   : > { %1238 = vrot.lane.b32.xlu2 %v1152_v50, %s2930_s23 }
 0x2b2   : > { %1254 = vrot.lane.b32.xlu0 %v1212_v39, %s2929_s22 }
 0x2b3   : > { %1270 = vrot.lane.b32.xlu1 %v1216_v29, %s2928_s17 }
 0x2b5   : > { %1250 = vrot.lane.b32.xlu2 %v1196_v57, %s2932_s24 }
 0x2ba   : > { %1218 = vrot.lane.b32.xlu0 %v1154_v51, %s2933_s25 }
 0x2bb   : > { %1234 = vrot.lane.b32.xlu1 %v1158_v46, %s2927_s16 }
 0x2bd   : > { %1226 = vrot.lane.b32.xlu2 %v1156_v30, %s2929_s22 }
 0x2c2   : > { %1850 = vrot.lane.b32.xlu0 %v1768_v55, %s2932_s24 }
 0x2c3   : > { %1246 = vrot.lane.b32.xlu1 %v1210_v25, %s2933_s25 }
 0x2c5   : > { %1262 = vrot.lane.b32.xlu2 %v1214_v22, %s2927_s16 }
 0x2ca   : > { %1886 = vrot.lane.b32.xlu0 %v1832_v61, %s2931_s18 }
 0x2cb   : > { %1866 = vrot.lane.b32.xlu1 %v1780_v63, %s2930_s23 }
 0x2cd   : > { %1858 = vrot.lane.b32.xlu2 %v1776_v18, %s2931_s18 }
 0x2cf   : > { %v2136_v42 = vpop.permute.xlu2 %2135 }
 0x2d0   : > { %2152 = vst.msk [vmem:[#allocation2 + $0x52] sm:$0xff] %vm405_vm3, %v2136_v42 }
 0x2d2   : > { %1862 = vrot.lane.b32.xlu0 %v1786_v33, %s2927_s16 }
 0x2d3   : > { %1878 = vrot.lane.b32.xlu1 %v1824_v48, %s2932_s24 }
 0x2d5   : > { %1870 = vrot.lane.b32.xlu2 %v1788_v4, %s2928_s17 }
 0x2d7   : > { %v2130_v43 = vpop.permute.xlu2 %2129  ;;  %v2224_v30 = vld [vmem:[#allocation2 + $0x52] sm:$0xff] }
 0x2d8   : > { %2149 = vst.msk [vmem:[#allocation2 + $0x32] sm:$0xff] %vm405_vm3, %v2130_v43 }
 0x2da   : > { %1874 = vrot.lane.b32.xlu0 %v1838_v20, %s2933_s25 }
 0x2db   : > { %1854 = vrot.lane.b32.xlu1 %v1784_v35, %s2929_s22 }
 0x2dc   : > { %v2126_v59 = vpop.permute.xlu0 %2125 }
 0x2dd   : > { %2147 = vst.msk [vmem:[#allocation2 + $0x1a] sm:$0xff] %vm405_vm3, %v2126_v59  ;;  %1882 = vrot.lane.b32.xlu2 %v1840_v52, %s2929_s22 }
 0x2df   : > { %v728_v32 = vpop.permute.xlu2 %727 }
 0x2e2   : > { %2131 = vrot.lane.b32.xlu0 %v2114_v44, %s2936_s26 }
 0x2e3   : > { %2121 = vrot.lane.b32.xlu1 %v3853_v60, %s2936_s26 }
 0x2e4   : > { %v684_v34 = vpop.permute.xlu0 %683  ;;  %v2171_v21 = vld [vmem:[#allocation2 + $0x19] sm:$0xff] }
 0x2e5   : > { %1846 = vrot.lane.b32.xlu2 %v1782_v9, %s2933_s25  ;;  %v2134_v54 = vpop.permute.xlu1 %2133  ;;  %v2219_v24 = vld [vmem:[#allocation2 + $0x1a] sm:$0xff] }
 0x2e6   : > { %2151 = vst.msk [vmem:[#allocation2 + $0x4a] sm:$0xff] %vm405_vm3, %v2134_v54 }
 0x2e7   : > { %v692_v28 = vpop.permute.xlu2 %691 }
 0x2ea   : > { %1890 = vrot.lane.b32.xlu0 %v1842_v10, %s2927_s16 }
 0x2eb   : > { %1894 = vrot.lane.b32.xlu1 %v1836_v15, %s2930_s23 }
 0x2ec   : > { %v720_v60 = vpop.permute.xlu0 %719 }
 0x2ed   : > { %2123 = vrot.lane.b32.xlu2 %v3877_v47, %s2936_s26  ;;  %v2128_v11 = vpop.permute.xlu1 %2127  ;;  %v2176_v39 = vld [vmem:[#allocation2 + $0x51] sm:$0xff] }
 0x2ee   : > { %2148 = vst.msk [vmem:[#allocation2 + $0x22] sm:$0xff] %vm405_vm3, %v2128_v11  ;;  %v2223_v33 = vld [vmem:[#allocation2 + $0x4a] sm:$0xff] }
 0x2ef   : > { %v704_v50 = vpop.permute.xlu2 %703 }
 0x2f4   : > { %v732_v40 = vpop.permute.xlu0 %731 }
 0x2f5   : > { %1898 = vrot.lane.b32.xlu2 %v1844_v7, %s2928_s17  ;;  %v700_v45 = vpop.permute.xlu1 %699 }
 0x2f7   : > { %v716_v0 = vpop.permute.xlu2 %715 }
 0x2fc   : > { %v696_v17 = vpop.permute.xlu0 %695 }
 0x2fd   : > { %2189 = vrot.lane.b32.xlu2 %v2171_v21, %s2942_s2  ;;  %v712_v57 = vpop.permute.xlu1 %711 }
 0x2ff   : > { %v680_v47 = vpop.permute.xlu2 %679 }
 0x300   : > { %v735_v26 = vsel %vm734_vm5, %v3974_v58, %v680_v47 }
 0x301   : > { %v737_v29 = vsel %vm736_vm6, %v735_v26, %v684_v34 }
 0x304   : > { %v708_v2 = vpop.permute.xlu0 %707 }
 0x305   : > { %v748_v31 = vsel %vm734_vm5, %v3952_v6, %v708_v2  ;;  %2199 = vrot.lane.b32.xlu2 %v2176_v39, %s2942_s2  ;;  %v688_v49 = vpop.permute.xlu1 %687 }
 0x306   : > { %v739_v41 = vsel %vm738_vm7, %v737_v29, %v688_v49  ;;  %v749_v16 = vsel %vm736_vm6, %v748_v31, %v712_v57 }
 0x307   : > { %v1239_v51 = vpop.permute.xlu2 %1238  ;;  %v741_v58 = vsel %vm740_vm8, %v739_v41, %v692_v28  ;;  %v750_v46 = vsel %vm738_vm7, %v749_v16, %v716_v0 }
 0x308   : > { %v743_v13 = vsel %vm742_vm9, %v741_v58, %v696_v17  ;;  %v751_v62 = vsel %vm740_vm8, %v750_v46, %v720_v60 }
 0x309   : > { %v745_v25 = vsel %vm744_vm10, %v743_v13, %v700_v45 }
 0x30a   : > { %v747_v56 = vsel %vm746_vm11, %v745_v25, %v704_v50 }
 0x30c   : > { %v1267_v6 = vpop.permute.xlu0 %1266 }
 0x30d   : > { %2247 = vrot.lane.b32.xlu2 %v2224_v30, %s2936_s26  ;;  %v724_v55 = vpop.permute.xlu1 %723 }
 0x30e   : > { %v752_v27 = vsel %vm742_vm9, %v751_v62, %v724_v55 }
 0x30f   : > { %v753_v22 = vsel %vm744_vm10, %v752_v27, %v728_v32  ;;  %v1251_v61 = vpop.permute.xlu2 %1250 }
 0x310   : > { %v754_v63 = vsel %vm746_vm11, %v753_v22, %v732_v40 }
 0x311   : > { %v757_v18 = vrot.slane %v754_v63, 4 }
 0x313   : > { %v759_v42 = vsel %vm758_vm12, %v747_v56, %v757_v18 }
 0x314   : > { %v1231_v3 = vpop.permute.xlu0 %1230  ;;  %761 = vst [vmem:[%s4097_s3] sm:$0xff] %v759_v42 }
 0x315   : > { %2245 = vrot.lane.b32.xlu2 %v2223_v33, %s2936_s26  ;;  %v1223_v48 = vpop.permute.xlu1 %1222 }
 0x317   : > { %v1227_v4 = vpop.permute.xlu2 %1226 }
 0x31c   : > { %v1243_v1 = vpop.permute.xlu0 %1242 }
 0x31d   : > { %2237 = vrot.lane.b32.xlu2 %v2219_v24, %s2936_s26  ;;  %v1259_v43 = vpop.permute.xlu1 %1258  ;;  %v2172_v24 = vld [vmem:[#allocation2 + $0x21] sm:$0xff] }
 0x31f   : > { %v1263_v37 = vpop.permute.xlu2 %1262 }
 0x324   : > { %v1255_v20 = vpop.permute.xlu0 %1254 }
 0x325   : > { %v1271_v35 = vpop.permute.xlu1 %1270 }
 0x327   : > { %v1859_v59 = vpop.permute.xlu2 %1858 }
 0x32c   : > { %v1219_v52 = vpop.permute.xlu0 %1218 }
 0x32d   : > { %v1273_v32 = vsel %vm734_vm5, %v3999_v14, %v1219_v52  ;;  %v1235_v38 = vpop.permute.xlu1 %1234  ;;  %v2220_v52 = vld [vmem:[#allocation2 + $0x22] sm:$0xff] }
 0x32e   : > { %v1274_v44 = vsel %vm736_vm6, %v1273_v32, %v1223_v48  ;;  %v2315_v32 = vld [vmem:[#allocation2 + $0x1c] sm:$0xff] }
 0x32f   : > { %v1871_v34 = vpop.permute.xlu2 %1870  ;;  %v1275_v9 = vsel %vm738_vm7, %v1274_v44, %v1227_v4  ;;  %v2272_v44 = vld [vmem:[#allocation2 + $0x53] sm:$0xff] }
 0x330   : > { %v1276_v8 = vsel %vm740_vm8, %v1275_v9, %v1231_v3  ;;  %v2221_v9 = vld [vmem:[#allocation2 + $0x32] sm:$0xff] }
 0x331   : > { %v1277_v11 = vsel %vm742_vm9, %v1276_v8, %v1235_v38  ;;  %v2271_v8 = vld [vmem:[#allocation2 + $0x4b] sm:$0xff] }
 0x332   : > { %v1278_v40 = vsel %vm744_vm10, %v1277_v11, %v1239_v51 }
 0x333   : > { %v1279_v21 = vsel %vm746_vm11, %v1278_v40, %v1243_v1  ;;  %v2173_v1 = vld [vmem:[#allocation2 + $0x31] sm:$0xff] }
 0x334   : > { %v1851_v54 = vpop.permute.xlu0 %1850 }
 0x335   : > { %v1247_v28 = vpop.permute.xlu1 %1246 }
 0x336   : > { %v1280_v15 = vsel %vm734_vm5, %v4011_v19, %v1247_v28  ;;  %v2267_v28 = vld [vmem:[#allocation2 + $0x1b] sm:$0xff] }
 0x337   : > { %v1281_v10 = vsel %vm736_vm6, %v1280_v15, %v1251_v61  ;;  %v1883_v60 = vpop.permute.xlu2 %1882 }
 0x338   : > { %v1282_v14 = vsel %vm738_vm7, %v1281_v10, %v1255_v20 }
 0x339   : > { %v1283_v50 = vsel %vm740_vm8, %v1282_v14, %v1259_v43 }
 0x33a   : > { %v1284_v5 = vsel %vm742_vm9, %v1283_v50, %v1263_v37  ;;  %v2175_v37 = vld [vmem:[#allocation2 + $0x49] sm:$0xff] }
 0x33b   : > { %v1285_v7 = vsel %vm744_vm10, %v1284_v5, %v1267_v6 }
 0x33c   : > { %v1286_v45 = vsel %vm746_vm11, %v1285_v7, %v1271_v35  ;;  %v1887_v0 = vpop.permute.xlu0 %1886  ;;  %v2319_v35 = vld [vmem:[#allocation2 + $0x4c] sm:$0xff] }
 0x33d   : > { %v1289_v19 = vrot.slane %v1286_v45, 4  ;;  %v1867_v17 = vpop.permute.xlu1 %1866 }
 0x33f   : > { %v1847_v57 = vpop.permute.xlu2 %1846  ;;  %v1290_v47 = vsel %vm758_vm12, %v1279_v21, %v1289_v19 }
 0x340   : > { %2706 = vst [vmem:[%s4097_s3 + $0x8] sm:$0xff] %v1290_v47  ;;  %v1901_v49 = vsel %vm734_vm5, %v4054_v53, %v1847_v57 }
 0x341   : > { %v1902_v16 = vsel %vm736_vm6, %v1901_v49, %v1851_v54  ;;  %v2320_v54 = vld [vmem:[#allocation2 + $0x54] sm:$0xff] }
 0x344   : > { %v1863_v26 = vpop.permute.xlu0 %1862 }
 0x345   : > { %v1879_v2 = vpop.permute.xlu1 %1878 }
 0x347   : > { %v2124_v39 = vpop.permute.xlu2 %2123 }
 0x348   : > { %2146 = vst.msk [vmem:[#allocation2 + $0xa] sm:$0xff] %vm405_vm3, %v2124_v39 }
 0x34c   : > { %v1875_v31 = vpop.permute.xlu0 %1874 }
 0x34d   : > { %v1855_v29 = vpop.permute.xlu1 %1854  ;;  %v1908_v41 = vsel %vm734_vm5, %v4039_v36, %v1875_v31 }
 0x34e   : > { %v1903_v58 = vsel %vm738_vm7, %v1902_v16, %v1855_v29  ;;  %v1909_v13 = vsel %vm736_vm6, %v1908_v41, %v1879_v2 }
 0x34f   : > { %v1904_v6 = vsel %vm740_vm8, %v1903_v58, %v1859_v59  ;;  %v1910_v30 = vsel %vm738_vm7, %v1909_v13, %v1883_v60  ;;  %v1899_v18 = vpop.permute.xlu2 %1898  ;;  %v2218_v38 = vld [vmem:[#allocation2 + $0xa] sm:$0xff] }
 0x350   : > { %v1905_v53 = vsel %vm742_vm9, %v1904_v6, %v1863_v26  ;;  %v1911_v36 = vsel %vm740_vm8, %v1910_v30, %v1887_v0  ;;  %v2266_v15 = vld [vmem:[#allocation2 + $0xb] sm:$0xff] }
 0x351   : > { %v1906_v63 = vsel %vm744_vm10, %v1905_v53, %v1867_v17  ;;  %v2316_v60 = vld [vmem:[#allocation2 + $0x24] sm:$0xff]  ;;  %v2314_v11 = vld [vmem:[#allocation2 + $0xc] sm:$0xff] }
 0x352   : > { %v1907_v33 = vsel %vm746_vm11, %v1906_v63, %v1871_v34  ;;  %v2268_v34 = vld [vmem:[#allocation2 + $0x23] sm:$0xff] }
 0x353   : > { %v2159_v53 = vld [vmem:[#allocation2 + $0x48] sm:$0xff] }
 0x354   : > { %v2132_v51 = vpop.permute.xlu0 %2131 }
 0x355   : > { %2150 = vst.msk [vmem:[#allocation2 + $0x3a] sm:$0xff] %vm405_vm3, %v2132_v51  ;;  %v2122_v46 = vpop.permute.xlu1 %2121 }
 0x356   : > { %2145 = vst.msk [vmem:[#allocation2 + $0x2] sm:$0xff] %vm405_vm3, %v2122_v46  ;;  %v2160_v46 = vld [vmem:[#allocation2 + $0x50] sm:$0xff] }
 0x357   : > { %v2190_v40 = vpop.permute.xlu2 %2189 }
 0x35c   : > { %v1891_v62 = vpop.permute.xlu0 %1890  ;;  %v2270_v55 = vld [vmem:[#allocation2 + $0x3b] sm:$0xff]  ;;  %v2269_v43 = vld [vmem:[#allocation2 + $0x33] sm:$0xff] }
 0x35d   : > { %v1912_v27 = vsel %vm742_vm9, %v1911_v36, %v1891_v62  ;;  %v1895_v25 = vpop.permute.xlu1 %1894  ;;  %2291 = vrot.lane.b32.xlu2 %v2270_v55, %s2943_s4  ;;  %v2170_v22 = vld [vmem:[#allocation2 + $0x9] sm:$0xff]  ;;  %v2169_v61 = vld [vmem:[#allocation2 + $0x1] sm:$0xff]  ;;  %v2174_v20 = vld [vmem:[#allocation2 + $0x39] sm:$0xff] }
 0x35e   : > { %v1913_v56 = vsel %vm744_vm10, %v1912_v27, %v1895_v25  ;;  %2187 = vrot.lane.b32.xlu1 %v2170_v22, %s2942_s2  ;;  %2185 = vrot.lane.b32.xlu0 %v2169_v61, %s2942_s2  ;;  %v2217_v4 = vld [vmem:[#allocation2 + $0x2] sm:$0xff]  ;;  %v2222_v59 = vld [vmem:[#allocation2 + $0x3a] sm:$0xff] }
 0x35f   : > { %v1914_v42 = vsel %vm746_vm11, %v1913_v56, %v1899_v18  ;;  %v2318_v10 = vld [vmem:[#allocation2 + $0x3c] sm:$0xff]  ;;  %v2313_v50 = vld [vmem:[#allocation2 + $0x4] sm:$0xff]  ;;  %v2317_v5 = vld [vmem:[#allocation2 + $0x34] sm:$0xff]  ;;  %v2200_v7 = vpop.permute.xlu2 %2199 }
 0x360   : > { %v1917_v3 = vrot.slane %v1914_v42, 4  ;;  %v2265_v14 = vld [vmem:[#allocation2 + $0x3] sm:$0xff]  ;;  %v2216_v13 = vadd.f32 %v2200_v7, %v2160_v46  ;;  %v2158_v18 = vld [vmem:[#allocation2 + $0x38] sm:$0xff] }
 0x362   : > { %v1918_v48 = vsel %vm758_vm12, %v1907_v33, %v1917_v3 }
 0x363   : > { %2712 = vst [vmem:[%s4097_s3 + $0x10] sm:$0xff] %v1918_v48  ;;  %v2156_v48 = vld [vmem:[#allocation2 + $0x20] sm:$0xff] }
 0x365   : > { %2233 = vrot.lane.b32.xlu2 %v2217_v4, %s2936_s26 }
 0x366   : > { %2193 = vrot.lane.b32.xlu1 %v2173_v1, %s2942_s2  ;;  %2191 = vrot.lane.b32.xlu0 %v2172_v24, %s2942_s2 }
 0x367   : > { %v2248_v45 = vpop.permute.xlu2 %2247 }
 0x368   : > { %v2264_v6 = vadd.f32 %v2248_v45, %v2216_v13 }
 0x36d   : > { %2289 = vrot.lane.b32.xlu2 %v2269_v43, %s2943_s4 }
 0x36e   : > { %2197 = vrot.lane.b32.xlu1 %v2175_v37, %s2942_s2  ;;  %2195 = vrot.lane.b32.xlu0 %v2174_v20, %s2942_s2  ;;  %v2155_v20 = vld [vmem:[#allocation2 + $0x18] sm:$0xff] }
 0x36f   : > { %v2246_v17 = vpop.permute.xlu2 %2245 }
 0x375   : > { %2341 = vrot.lane.b32.xlu2 %v2319_v35, %s2944_s12 }
 0x376   : > { %2243 = vrot.lane.b32.xlu1 %v2222_v59, %s2936_s26  ;;  %2239 = vrot.lane.b32.xlu0 %v2220_v52, %s2936_s26  ;;  %v2211_v52 = vadd.f32 %v2190_v40, %v2155_v20 }
 0x377   : > { %v2238_v2 = vpop.permute.xlu2 %2237 }
 0x37d   : > { %2333 = vrot.lane.b32.xlu2 %v2315_v32, %s2944_s12 }
 0x37e   : > { %2235 = vrot.lane.b32.xlu1 %v2218_v38, %s2936_s26  ;;  %2295 = vrot.lane.b32.xlu0 %v2272_v44, %s2943_s4  ;;  %v2154_v44 = vld [vmem:[#allocation2 + $0x8] sm:$0xff] }
 0x386   : > { %2287 = vrot.lane.b32.xlu1 %v2268_v34, %s2943_s4  ;;  %2241 = vrot.lane.b32.xlu0 %v2221_v9, %s2936_s26  ;;  %v2259_v34 = vadd.f32 %v2238_v2, %v2211_v52 }
 0x38e   : > { %2343 = vrot.lane.b32.xlu1 %v2320_v54, %s2944_s12  ;;  %2293 = vrot.lane.b32.xlu0 %v2271_v8, %s2943_s4 }
 0x396   : > { %2285 = vrot.lane.b32.xlu1 %v2267_v28, %s2943_s4  ;;  %2283 = vrot.lane.b32.xlu0 %v2266_v15, %s2943_s4 }
 0x39e   : > { %2339 = vrot.lane.b32.xlu1 %v2318_v10, %s2944_s12  ;;  %2335 = vrot.lane.b32.xlu0 %v2316_v60, %s2944_s12  ;;  %v2153_v10 = vld [vmem:[#allocation2] sm:$0xff]  ;;  %v2157_v60 = vld [vmem:[#allocation2 + $0x30] sm:$0xff] }
 0x3a6   : > { %2331 = vrot.lane.b32.xlu1 %v2314_v11, %s2944_s12  ;;  %2281 = vrot.lane.b32.xlu0 %v2265_v14, %s2943_s4 }
 0x3ae   : > { %2329 = vrot.lane.b32.xlu1 %v2313_v50, %s2944_s12  ;;  %2337 = vrot.lane.b32.xlu0 %v2317_v5, %s2944_s12 }
 0x3b7   : > { %v2292_v29 = vpop.permute.xlu2 %2291 }
 0x3bf   : > { %v2234_v16 = vpop.permute.xlu2 %2233 }
 0x3c7   : > { %v2290_v30 = vpop.permute.xlu2 %2289 }
 0x3cf   : > { %v2342_v63 = vpop.permute.xlu2 %2341 }
 0x3d0   : > { %v2186_v0 = vpop.permute.xlu0 %2185  ;;  %v2188_v19 = vpop.permute.xlu1 %2187 }
 0x3d1   : > { %v2210_v9 = vadd.f32 %v2188_v19, %v2154_v44  ;;  %v2209_v50 = vadd.f32 %v2186_v0, %v2153_v10 }
 0x3d3   : > { %v2257_v19 = vadd.f32 %v2234_v16, %v2209_v50 }
 0x3d7   : > { %v2334_v28 = vpop.permute.xlu2 %2333 }
 0x3d8   : > { %v2192_v21 = vpop.permute.xlu0 %2191  ;;  %v2194_v57 = vpop.permute.xlu1 %2193 }
 0x3d9   : > { %v2212_v4 = vadd.f32 %v2192_v21, %v2156_v48  ;;  %v2213_v5 = vadd.f32 %v2194_v57, %v2157_v60 }
 0x3e0   : > { %v2196_v47 = vpop.permute.xlu0 %2195  ;;  %v2198_v26 = vpop.permute.xlu1 %2197 }
 0x3e1   : > { %v2215_v62 = vadd.f32 %v2198_v26, %v2159_v53  ;;  %v2214_v3 = vadd.f32 %v2196_v47, %v2158_v18 }
 0x3e3   : > { %v2263_v22 = vadd.f32 %v2246_v17, %v2215_v62 }
 0x3e8   : > { %v2240_v39 = vpop.permute.xlu0 %2239  ;;  %v2244_v31 = vpop.permute.xlu1 %2243 }
 0x3e9   : > { %v2262_v1 = vadd.f32 %v2244_v31, %v2214_v3  ;;  %v2260_v24 = vadd.f32 %v2240_v39, %v2212_v4 }
 0x3eb   : > { %v2310_v37 = vadd.f32 %v2292_v29, %v2262_v1 }
 0x3f0   : > { %v2296_v49 = vpop.permute.xlu0 %2295  ;;  %v2236_v41 = vpop.permute.xlu1 %2235 }
 0x3f1   : > { %v2312_v36 = vadd.f32 %v2296_v49, %v2264_v6  ;;  %v2258_v54 = vadd.f32 %v2236_v41, %v2210_v9 }
 0x3f8   : > { %v2242_v51 = vpop.permute.xlu0 %2241  ;;  %v2288_v58 = vpop.permute.xlu1 %2287 }
 0x3f9   : > { %v2308_v43 = vadd.f32 %v2288_v58, %v2260_v24  ;;  %v2261_v45 = vadd.f32 %v2242_v51, %v2213_v5 }
 0x3fb   : > { %v2309_v21 = vadd.f32 %v2290_v30, %v2261_v45 }
 0x400   : > { %v2294_v55 = vpop.permute.xlu0 %2293  ;;  %v2344_v27 = vpop.permute.xlu1 %2343 }
 0x401   : > { %v2360_v25 = vadd.f32 %v2344_v27, %v2312_v36  ;;  %v2311_v61 = vadd.f32 %v2294_v55, %v2263_v22 }
 0x403   : > { %2383 = vrot.lane.b32.xlu2 %v2360_v25, %s2941_s30  ;;  %v2359_v33 = vadd.f32 %v2342_v63, %v2311_v61 }
 0x408   : > { %v2284_v56 = vpop.permute.xlu0 %2283  ;;  %v2286_v42 = vpop.permute.xlu1 %2285 }
 0x409   : > { %v2307_v8 = vadd.f32 %v2286_v42, %v2259_v34  ;;  %v2306_v15 = vadd.f32 %v2284_v56, %v2258_v54 }
 0x40b   : > { %2381 = vrot.lane.b32.xlu2 %v2359_v33, %s2941_s30  ;;  %v2355_v40 = vadd.f32 %v2334_v28, %v2307_v8 }
 0x410   : > { %v2336_v35 = vpop.permute.xlu0 %2335  ;;  %v2340_v59 = vpop.permute.xlu1 %2339 }
 0x411   : > { %v2356_v32 = vadd.f32 %v2336_v35, %v2308_v43  ;;  %v2358_v38 = vadd.f32 %v2340_v59, %v2310_v37 }
 0x413   : > { %2375 = vrot.lane.b32.xlu0 %v2356_v32, %s2941_s30  ;;  %2379 = vrot.lane.b32.xlu1 %v2358_v38, %s2941_s30 }
 0x418   : > { %v2282_v11 = vpop.permute.xlu0 %2281  ;;  %v2332_v14 = vpop.permute.xlu1 %2331 }
 0x419   : > { %v2354_v7 = vadd.f32 %v2332_v14, %v2306_v15  ;;  %v2305_v17 = vadd.f32 %v2282_v11, %v2257_v19 }
 0x41b   : > { %2373 = vrot.lane.b32.xlu1 %v2355_v40, %s2941_s30  ;;  %2371 = vrot.lane.b32.xlu0 %v2354_v7, %s2941_s30 }
 0x420   : > { %v2338_v47 = vpop.permute.xlu0 %2337  ;;  %v2330_v26 = vpop.permute.xlu1 %2329 }
 0x421   : > { %v2357_v2 = vadd.f32 %v2338_v47, %v2309_v21  ;;  %v2353_v39 = vadd.f32 %v2330_v26, %v2305_v17 }
 0x423   : > { %2377 = vrot.lane.b32.xlu2 %v2357_v2, %s2941_s30  ;;  %2369 = vrot.lane.b32.xlu0 %v2353_v39, %s2941_s30 }
 0x45d   : > { %v2384_v0 = vpop.permute.xlu2 %2383 }
 0x45e   : > { %v2461_v29 = vrot.slane %v2384_v0, 4 }
 0x465   : > { %v2382_v41 = vpop.permute.xlu2 %2381 }
 0x466   : > { %v2405_v6 = vrot.slane %v2382_v41, 4 }
 0x47d   : > { %v2378_v27 = vpop.permute.xlu2 %2377 }
 0x47e   : > { %v2393_v3 = vrot.slane %v2378_v27, 4 }
 0x485   : > { %v2376_v57 = vpop.permute.xlu0 %2375  ;;  %v2380_v31 = vpop.permute.xlu1 %2379 }
 0x486   : > { %v2462_v49 = vsel %vm222_vm0, %v2461_v29, %v2376_v57  ;;  %v2449_v16 = vrot.slane %v2380_v31, 4  ;;  %v2463_v58 = vrot.slane %v2376_v57, 4 }
 0x487   : > { %v2468_v51 = vperm.slane %v2462_v49, %v3107_v12 }
 0x488   : > { %v2464_v25 = vsel %vm222_vm0, %v2384_v0, %v2463_v58 }
 0x489   : > { %v2473_v53 = vrot.slane %v2468_v51, 4  ;;  %v2472_v33 = vperm.slane %v2464_v25, %v3107_v12 }
 0x48b   : > { %v2485_v32 = vrot.slane %v2472_v33, 4 }
 0x48d   : > { %v2372_v46 = vpop.permute.xlu0 %2371  ;;  %v2374_v13 = vpop.permute.xlu1 %2373 }
 0x48e   : > { %v2450_v30 = vsel %vm222_vm0, %v2449_v16, %v2372_v46  ;;  %v2451_v62 = vrot.slane %v2372_v46, 4  ;;  %v2406_v55 = vsel %vm222_vm0, %v2405_v6, %v2374_v13  ;;  %v2407_v1 = vrot.slane %v2374_v13, 4 }
 0x48f   : > { %v2456_v36 = vperm.slane %v2450_v30, %v3107_v12  ;;  %v2412_v56 = vperm.slane %v2406_v55, %v3107_v12 }
 0x490   : > { %v2452_v18 = vsel %vm222_vm0, %v2380_v31, %v2451_v62  ;;  %v2408_v38 = vsel %vm222_vm0, %v2382_v41, %v2407_v1 }
 0x491   : > { %v2474_v22 = vsel %vm222_vm0, %v2473_v53, %v2456_v36  ;;  %v2475_v61 = vrot.slane %v2456_v36, 4  ;;  %v2460_v43 = vperm.slane %v2452_v18, %v3107_v12  ;;  %v2417_v35 = vrot.slane %v2412_v56, 4 }
 0x492   : > { %v4184_v63 = vperm.slane %v2474_v22, %v3120_v23  ;;  %v2416_v10 = vperm.slane %v2408_v38, %v3107_v12 }
 0x493   : > { %v2476_v42 = vsel %vm222_vm0, %v2468_v51, %v2475_v61  ;;  %v2486_v8 = vsel %vm222_vm0, %v2485_v32, %v2460_v43 }
 0x494   : > { %v2484_v48 = vperm.slane %v2476_v42, %v3120_v23  ;;  %v2497_v4 = vrot.slane %v4184_v63, 4  ;;  %v2492_v14 = vperm.slane %v2486_v8, %v3120_v23  ;;  %v2429_v7 = vrot.slane %v2416_v10, 4 }
 0x495   : > { %v2370_v24 = vpop.permute.xlu0 %2369 }
 0x496   : > { %v2394_v37 = vsel %vm222_vm0, %v2393_v3, %v2370_v24  ;;  %2538 = vrot.lane.b32.xlu2 %v2484_v48, %s2932_s24  ;;  %v2498_v20 = vsel %vm222_vm0, 0.0, %v2497_v4  ;;  %v2395_v59 = vrot.slane %v2370_v24, 4  ;;  %v2499_v9 = vrot.slane %v2484_v48, 4 }
 0x497   : > { %v2400_v52 = vperm.slane %v2394_v37, %v3107_v12  ;;  %2534 = vrot.lane.b32.xlu1 %v2498_v20, %s2933_s25  ;;  %v2501_v45 = vrot.slane %v2492_v14, 4 }
 0x498   : > { %v2396_v28 = vsel %vm222_vm0, %v2378_v27, %v2395_v59  ;;  %v2500_v5 = vsel %vm222_vm0, 0.0, %v2499_v9 }
 0x499   : > { %v2418_v44 = vsel %vm222_vm0, %v2417_v35, %v2400_v52  ;;  %v2419_v34 = vrot.slane %v2400_v52, 4  ;;  %v2404_v50 = vperm.slane %v2396_v28, %v3107_v12  ;;  %v2502_v21 = vsel %vm222_vm0, 0.0, %v2501_v45 }
 0x49a   : > { %v2424_v54 = vperm.slane %v2418_v44, %v3120_v23  ;;  %v2487_v12 = vrot.slane %v2460_v43, 4 }
 0x49b   : > { %v2420_v15 = vsel %vm222_vm0, %v2412_v56, %v2419_v34  ;;  %v2430_v17 = vsel %vm222_vm0, %v2429_v7, %v2404_v50  ;;  %v2431_v26 = vrot.slane %v2404_v50, 4 }
 0x49c   : > { %v2428_v60 = vperm.slane %v2420_v15, %v3120_v23  ;;  %v2441_v11 = vrot.slane %v2424_v54, 4  ;;  %v2436_v47 = vperm.slane %v2430_v17, %v3120_v23  ;;  %v2488_v0 = vsel %vm222_vm0, %v2472_v33, %v2487_v12 }
 0x49d   : > { %v2432_v57 = vsel %vm222_vm0, %v2416_v10, %v2431_v26  ;;  %v2496_v29 = vperm.slane %v2488_v0, %v3120_v23 }
 0x49e   : > { %2510 = vrot.lane.b32.xlu2 %v2428_v60, %s2932_s24  ;;  %v2442_v40 = vsel %vm222_vm0, 0.0, %v2441_v11  ;;  %v2443_v19 = vrot.slane %v2428_v60, 4  ;;  %v2445_v39 = vrot.slane %v2436_v47, 4  ;;  %v2440_v49 = vperm.slane %v2432_v57, %v3120_v23 }
 0x49f   : > { %2542 = vrot.lane.b32.xlu1 %v2500_v5, %s2929_s22  ;;  %2506 = vrot.lane.b32.xlu0 %v2442_v40, %s2933_s25  ;;  %v2503_v51 = vrot.slane %v2496_v29, 4 }
 0x4a0   : > { %v2444_v2 = vsel %vm222_vm0, 0.0, %v2443_v19  ;;  %v2446_v31 = vsel %vm222_vm0, 0.0, %v2445_v39  ;;  %v2447_v41 = vrot.slane %v2440_v49, 4 }
 0x4a1   : > { %v2504_v58 = vsel %vm222_vm0, 0.0, %v2503_v51 }
 0x4a2   : > { %v2448_v16 = vsel %vm222_vm0, 0.0, %v2447_v41 }
 0x4a6   : > { %2550 = vrot.lane.b32.xlu2 %v2502_v21, %s2927_s16 }
 0x4a7   : > { %2514 = vrot.lane.b32.xlu1 %v2444_v2, %s2929_s22  ;;  %2546 = vrot.lane.b32.xlu0 %v2492_v14, %s2931_s18  ;;  %s2597_s22 = sshll.u32 %s4097_s3, 4  ;;  %s2598_s22 = int_to_ptr.vmem [resolvable:$true] %s2597_s22 }
 0x4ae   : > { %2522 = vrot.lane.b32.xlu2 %v2446_v31, %s2927_s16 }
 0x4af   : > { %2554 = vrot.lane.b32.xlu1 %v2496_v29, %s2930_s23  ;;  %2518 = vrot.lane.b32.xlu0 %v2436_v47, %s2931_s18 }
 0x4b6   : > { %2530 = vrot.lane.b32.xlu2 %v2448_v16, %s2928_s17 }
 0x4b7   : > { %2526 = vrot.lane.b32.xlu1 %v2440_v49, %s2930_s23  ;;  %2558 = vrot.lane.b32.xlu0 %v2504_v58, %s2928_s17  ;;  %s2596_s17 = scalar_lea.hbm %s4290_s1, %s2725_s13  ;;  %s2583_s23 = scalar_lea.sflag [#allocation5], %s3031_s5 }
 0x4b8   : > { %s2599_s9 = sshll.u32 %s2596_s17, 4  ;;  %s2600_s9 = int_to_ptr.hbm [resolvable:$true] %s2599_s9 }
 0x4b9   : > { %s2855_s18 = sshra.s32 %s2600_s9, 4  ;;  %s2856_s18 = int_to_ptr.hbm [resolvable:$true] %s2855_s18 }
 0x4ba   : > { %s2857_s24 = scalar_lea.hbm %s2856_s18, 32  ;;  %p2862_p7 = scmp.lt.s32.totalorder %s2856_s18, %s4290_s1 }
 0x4bb   : > { %p2858_p4 = scmp.ne.s32.totalorder %s2856_s18, %s2857_s24  ;;  %p2863_p8 = scmp.lt.s32.totalorder %s2861_s27, %s2857_s24 }
 0x4bd   : > { %p2859_p5 = pnand %p2858_p4, %p3008_p9  ;;  %p2864_p10 = por %p2863_p8, %p2862_p7 }
 0x4bf   : > { %p2860_p6 = pneg %p2859_p5 }
 0x4c1   : > { %p2865_p13 = pnand %p2864_p10, %p2860_p6 }
 0x4f0   : > { %v2539_v23 = vpop.permute.xlu2 %2538 }
 0x4f8   : > { %v2511_v13 = vpop.permute.xlu2 %2510 }
 0x500   : > { %v2551_v53 = vpop.permute.xlu2 %2550 }
 0x508   : > { %v2523_v55 = vpop.permute.xlu2 %2522 }
 0x509   : > { %v2535_v46 = vpop.permute.xlu1 %2534 }
 0x50a   : > { %v2568_v27 = vsel %vm734_vm5, %v4184_v63, %v2535_v46 }
 0x50b   : > { %v2569_v18 = vsel %vm736_vm6, %v2568_v27, %v2539_v23 }
 0x510   : > { %v2531_v37 = vpop.permute.xlu2 %2530 }
 0x511   : > { %v2507_v6 = vpop.permute.xlu0 %2506  ;;  %v2543_v30 = vpop.permute.xlu1 %2542 }
 0x512   : > { %v2561_v25 = vsel %vm734_vm5, %v2424_v54, %v2507_v6  ;;  %v2570_v56 = vsel %vm738_vm7, %v2569_v18, %v2543_v30 }
 0x513   : > { %v2562_v42 = vsel %vm736_vm6, %v2561_v25, %v2511_v13 }
 0x519   : > { %v2547_v62 = vpop.permute.xlu0 %2546  ;;  %v2515_v36 = vpop.permute.xlu1 %2514 }
 0x51a   : > { %v2571_v3 = vsel %vm740_vm8, %v2570_v56, %v2547_v62  ;;  %v2563_v33 = vsel %vm738_vm7, %v2562_v42, %v2515_v36 }
 0x51b   : > { %v2572_v63 = vsel %vm742_vm9, %v2571_v3, %v2551_v53 }
 0x521   : > { %v2519_v22 = vpop.permute.xlu0 %2518  ;;  %v2555_v61 = vpop.permute.xlu1 %2554 }
 0x522   : > { %v2564_v48 = vsel %vm740_vm8, %v2563_v33, %v2519_v22  ;;  %v2573_v4 = vsel %vm744_vm10, %v2572_v63, %v2555_v61 }
 0x523   : > { %v2565_v24 = vsel %vm742_vm9, %v2564_v48, %v2523_v55 }
 0x529   : > { %v2559_v1 = vpop.permute.xlu0 %2558  ;;  %v2527_v43 = vpop.permute.xlu1 %2526 }
 0x52a   : > { %v2574_v20 = vsel %vm746_vm11, %v2573_v4, %v2559_v1  ;;  %v2566_v35 = vsel %vm744_vm10, %v2565_v24, %v2527_v43 }
 0x52b   : > { %v2577_v59 = vrot.slane %v2574_v20, 4  ;;  %v2567_v52 = vsel %vm746_vm11, %v2566_v35, %v2531_v37 }
 0x52d   : > { %v2578_v32 = vsel %vm758_vm12, %v2567_v52, %v2577_v59 }
 0x52e   : > { %2718 = vst [vmem:[%s4097_s3 + $0x18] sm:$0xff] %v2578_v32 }
 0x52f   : > { %2868 = shalt.err (!%p2865_p13)
}
 0x530   : > { %s2945_s5 = smov 128   ;;  %s2946_s30 = smov 8  }
 0x531   : > { %2728 = dma.vmem_to_hbm [thread:$0]  (%p3008_p9), %s2598_s22, 512, %s2600_s9, %s2583_s23, %s2945_s5, %s2945_s5, %s2946_s30  }
 0x532 PF: > { %s2614_s2 = sand.u32 1, %s2903_s6   ;;  %p2735_p0 = pnand %p2690_p12, %p3015_p11 }
 0x533   : > { %s2615_s3 = scalar_lea.sflag [#allocation5], %s2614_s2 }
 0x534   : > { %p2736_p1 = pneg %p2735_p0 }
 0x536   : > { %2898 = dma.done.wait (%p2736_p1), %s2615_s3, 512  }
 0x537   : > { %2900 = vsyncadd (%p2736_p1), %s2615_s3, 4294966784  ;;  %s17_s11 = sadd.s32 1, %s2923_s11   ;;  %s4332_s6 = smov %s2907_s7 }
 0x538   : > { %p14_p2 = scmp.ge.s32.totalorder %s17_s11, 4   ;;  %s4333_s7 = smov %s2911_s8 }
 0x539   : > { %s4334_s8 = smov %s3013_s20  ;;  %s4335_s9 = smov %s2919_s10 }
 0x53a   : > { %s4336_s10 = smov %s4338_s14  ;;  %16 = sbr.rel (!%p14_p2) target bundleno = 6 (0x6), region = 103 }
 0x53f   :  { %2621 = vsyncpa [#allocation4], 1 }
 0x540   :  { %2623 = vsyncpa [#allocation4 + $0x1], 1 }
 0x541   :  { %2624 = vsyncpa [#allocation5], 1 }
 0x542   :  { %2626 = vsyncpa [#allocation5 + $0x1], 1 }

// kernel: tpu_custom_call.1
= control target key start
LH: loop header
LB: loop body
LE: loop exit
PB: predicated region body
PF: predicated region fallthrough
CT: control target
= control target key end

     0   :  { %6 = vsyncpa [#allocation4], 0  ;;  %s2017_s0 = inlined_call_operand.hbm [shape: f32[2,4,4,16,16], index: 0, kind: input, shape index: {}]   ;;  %s2018_s1 = inlined_call_operand.hbm [shape: f32[2,4,4,16,16], index: 1, kind: output, shape index: {}]  }
   0x1   :  { %8 = vsyncpa [#allocation4 + $0x1], 0 }
   0x2   :  { %9 = vsyncpa [#allocation5], 0 }
   0x3   :  { %11 = vsyncpa [#allocation5 + $0x1], 0  ;;  %s1512_s6 = smov 0   ;;  %s1514_s7 = smov 0  }
   0x4   :  { %s1516_s8 = smov 0   ;;  %s1518_s9 = smov 0  }
   0x5   :  { %s1520_s10 = smov 0   ;;  %s1522_s11 = smov 0  }
   0x6 LB: > { %s1235_s12 = sadd.s32 4294967295, %s1487_s11   ;;  %s1236_s13 = sadd.s32 4294967294, %s1487_s11   ;;  %s1487_s11 = sphi %s1522_s11, %s17_s11   ;;  %s1483_s10 = sphi %s1520_s10, %s2027_s10   ;;  %s1479_s9 = sphi %s1518_s9, %s2026_s9   ;;  %s1475_s8 = sphi %s1516_s8, %s2025_s8   ;;  %s1471_s7 = sphi %s1514_s7, %s2024_s7   ;;  %s1467_s6 = sphi %s1512_s6, %s2023_s6  }
   0x7   : > { %s29_s14 = sadd.s32 1, %s1483_s10  ;;  %s38_s15 = sadd.s32 1, %s1475_s8 }
   0x8   : > { %p31_p0 = scmp.ge.s32.totalorder %s29_s14, 2  ;;  %p45_p1 = scmp.ne.s32.totalorder %s1475_s8, %s1471_s7 }
   0x9   : > { %p46_p2 = scmp.eq.s32.totalorder %s1487_s11, 0  ;;  %p51_p3 = scmp.ne.s32.totalorder %s1471_s7, %s1467_s6 }
   0xa   : > { %s2029_s14 = smov (%p31_p0, %s29_s14), 0  ;;  %p52_p5 = scmp.eq.s32.totalorder %s1235_s12, 0 }
   0xb   : > { %p1553_p4 = por %p46_p2, %p45_p1  ;;  %s33_s17 = ssub.s32 %s1483_s10, %s2029_s14 }
   0xc   : > { %p77_p6 = scmp.eq.s32.totalorder %s1235_s12, 1  ;;  %p36_p7 = scmp.eq.s32.totalorder %s33_s17, 0 }
   0xd   : > { %p1559_p8 = por %p52_p5, %p51_p3  ;;  %p83_p10 = scmp.eq.s32.totalorder %s1236_s13, 1 }
   0xe   : > { %p1563_p9 = por %p77_p6, %p45_p1  ;;  %p1238_p12 = scmp.ge.s32.totalorder %s1487_s11, 2 }
   0xf   : > { %s1568_s20 = scalar_select %p36_p7, %s1475_s8, %s38_s15  }
  0x10   : > { %p1570_p11 = por %p83_p10, %p51_p3  ;;  %p1312_p13 = scmp.lt.s32.totalorder %s1487_s11, 2 }
  0x11   : > { %s103_s22 = sand.u32 1, %s1475_s8   ;;  %s1298_s24 = sshll.u32 %s1483_s10, 8 }
  0x12   : > { %s1239_s23 = sshll.u32 %s103_s22, 8  ;;  %s115_s27 = scalar_lea.hbm %s2017_s0, %s1298_s24 }
  0x13   : > { %s107_s28 = scalar_lea.vmem [#allocation3], %s1239_s23  ;;  %s116_s30 = sshll.u32 %s115_s27, 4  ;;  %s117_s30 = int_to_ptr.hbm [resolvable:$true] %s116_s30 }
  0x14   : > { %s118_s29 = sshll.u32 %s107_s28, 4  ;;  %p1305_p0 = pnand %p1312_p13, %p1553_p4  ;;  %s119_s29 = int_to_ptr.vmem [resolvable:$true] %s118_s29 }
  0x15   : > { %p1242_p1 = scmp.ge.s32.totalorder %s1487_s11, 1  ;;  %s104_s2 = scalar_lea.sflag [#allocation4], %s103_s22 }
  0x16   : > { %s1489_s3 = smov 128   ;;  %s1490_s4 = smov 8  }
  0x17   : > { %1307 = dma.hbm_to_vmem [thread:$0]  (!%p1305_p0), %s117_s30, 4096, %s119_s29, %s104_s2, %s1489_s3, %s1489_s3, %s1490_s4  }
  0x18   : > { %p126_p2 = scmp.lt.s32.totalorder %s1487_s11, 3 }
  0x1a   : > { %p127_p3 = pnand %p1242_p1, %p126_p2 }
  0x1b   : > { %s1586_s5 = sand.u32 (!%p127_p3), 1, %s1471_s7  }
  0x1c   : > { %130 = sbr.rel (%p127_p3) target bundleno = 901 (0x385), region = 24  ;;  %s1243_s12 = sshll.u32 (!%p127_p3), %s1586_s5, 8 }
  0x1d   : > { %s133_s13 = scalar_lea.sflag (!%p127_p3), [#allocation4], %s1586_s5  ;;  %s1592_s15 = scalar_lea.vmem (!%p127_p3), [#allocation3], %s1243_s12 }
  0x21   : > { %1458 = dma.done.wait (%p1559_p8), %s133_s13, 4096  }
  0x22   : > { %1460 = vsyncadd (%p1559_p8), %s133_s13, 4294963200  ;;  %v187_v0 = vld [vmem:[%s1592_s15 + $0x10] sm:$0xff]  ;;  %v185_v1 = vld [vmem:[%s1592_s15] sm:$0xff]  ;;  %s1491_s16 = smov 2   ;;  %vm167_vm0 = vcmask 15360   ;;  %vm176_vm1 = vcmask 162960  }
  0x23   : > { %205 = vrot.lane.b32.xlu1 %v187_v0, %s1491_s16  ;;  %201 = vrot.lane.b32.xlu0 %v185_v1, %s1491_s16  ;;  %v189_v2 = vld [vmem:[%s1592_s15 + $0x20] sm:$0xff]  ;;  %v188_v3 = vld [vmem:[%s1592_s15 + $0x18] sm:$0xff]  ;;  %v1492_v6 = vmov 0.0   ;;  %vm225_vm2 = vcmask 146448   ;;  %s1493_s17 = smov 127   ;;  %s1494_s18 = smov 126  }
  0x24   : > { %209 = vrot.lane.b32.xlu2 %v189_v2, %s1491_s16  ;;  %v186_v4 = vld [vmem:[%s1592_s15 + $0x8] sm:$0xff]  ;;  %172 = vst.msk [vmem:[#allocation2 + $0x32] sm:$0xff] %vm167_vm0, %v1492_v6  ;;  %v191_v7 = vld [vmem:[%s1592_s15 + $0x30] sm:$0xff]  ;;  %v192_v8 = vld [vmem:[%s1592_s15 + $0x38] sm:$0xff]  ;;  %vm158_vm3 = vcmask 156672   ;;  %s1495_s22 = smov 125  }
  0x25   : > { %v190_v5 = vld [vmem:[%s1592_s15 + $0x28] sm:$0xff]  ;;  %181 = vst.msk [vmem:[#allocation2 + $0x32] sm:$0xff] %vm176_vm1, %v1492_v6  ;;  %v1245_v10 = vld [vmem:[%s1592_s15 + $0x40] sm:$0xff]  ;;  %v1247_v11 = vld [vmem:[%s1592_s15 + $0x50] sm:$0xff]  ;;  %s1496_s23 = smov 124   ;;  %vm386_vm4 = vcmask 130048  }
  0x26   : > { %168 = vst.msk [vmem:[#allocation2 + $0x2] sm:$0xff] %vm167_vm0, %v1492_v6  ;;  %v1246_v9 = vld [vmem:[%s1592_s15 + $0x48] sm:$0xff]  ;;  %v1249_v12 = vld [vmem:[%s1592_s15 + $0x60] sm:$0xff]  ;;  %v1248_v13 = vld [vmem:[%s1592_s15 + $0x58] sm:$0xff]  ;;  %s1817_s24 = scalar_lea.vmem [#allocation6], %s1243_s12  ;;  %s1497_s25 = smov 1  }
  0x27   : > { %169 = vst.msk [vmem:[#allocation2 + $0xa] sm:$0xff] %vm167_vm0, %v1492_v6  ;;  %v1250_v14 = vld [vmem:[%s1592_s15 + $0x68] sm:$0xff]  ;;  %v1252_v15 = vld [vmem:[%s1592_s15 + $0x78] sm:$0xff]  ;;  %v1251_v16 = vld [vmem:[%s1592_s15 + $0x70] sm:$0xff]  ;;  %s1498_s26 = smov 3   ;;  %s1499_s27 = smov 4  }
  0x28   : > { %170 = vst.msk [vmem:[#allocation2 + $0x1a] sm:$0xff] %vm167_vm0, %v1492_v6  ;;  %v1261_v17 = vld [vmem:[%s1592_s15 + $0x80] sm:$0xff]  ;;  %s1299_s28 = sshll.u32 %s1479_s9, 8  ;;  %s1145_s3 = sshll.u32 %s1817_s24, 4  ;;  %s1146_s3 = int_to_ptr.vmem [resolvable:$true] %s1145_s3 }
  0x29   : > { %171 = vst.msk [vmem:[#allocation2 + $0x22] sm:$0xff] %vm167_vm0, %v1492_v6  ;;  %s1144_s2 = scalar_lea.hbm %s2018_s1, %s1299_s28  ;;  %s1130_s9 = scalar_lea.sflag [#allocation5], %s1586_s5 }
  0x2a   : > { %173 = vst.msk [vmem:[#allocation2 + $0x3a] sm:$0xff] %vm167_vm0, %v1492_v6  ;;  %s1147_s4 = sshll.u32 %s1144_s2, 4  ;;  %s1148_s4 = int_to_ptr.hbm [resolvable:$true] %s1147_s4 }
  0x2b   : > { %207 = vrot.lane.b32.xlu1 %v188_v3, %s1491_s16  ;;  %203 = vrot.lane.b32.xlu0 %v186_v4, %s1491_s16  ;;  %174 = vst.msk [vmem:[#allocation2 + $0x4a] sm:$0xff] %vm167_vm0, %v1492_v6  ;;  %s1419_s12 = sshra.s32 %s1148_s4, 4  ;;  %s1420_s12 = int_to_ptr.hbm [resolvable:$true] %s1419_s12 }
  0x2c   : > { %211 = vrot.lane.b32.xlu2 %v190_v5, %s1491_s16  ;;  %175 = vst.msk [vmem:[#allocation2 + $0x52] sm:$0xff] %vm167_vm0, %v1492_v6  ;;  %s1421_s13 = scalar_lea.hbm %s1420_s12, 256  ;;  %p1426_p7 = scmp.lt.s32.totalorder %s1420_s12, %s2018_s1 }
  0x2d   : > { %179 = vst.msk [vmem:[#allocation2 + $0x1a] sm:$0xff] %vm176_vm1, %v1492_v6  ;;  %p1422_p4 = scmp.ne.s32.totalorder %s1420_s12, %s1421_s13 }
  0x2e   : > { %177 = vst.msk [vmem:[#allocation2 + $0x2] sm:$0xff] %vm176_vm1, %v1492_v6 }
  0x2f   : > { %178 = vst.msk [vmem:[#allocation2 + $0xa] sm:$0xff] %vm176_vm1, %v1492_v6  ;;  %p1423_p5 = pnand %p1422_p4, %p1563_p9 }
  0x30   : > { %180 = vst.msk [vmem:[#allocation2 + $0x22] sm:$0xff] %vm176_vm1, %v1492_v6 }
  0x31   : > { %182 = vst.msk [vmem:[#allocation2 + $0x3a] sm:$0xff] %vm176_vm1, %v1492_v6  ;;  %p1424_p6 = pneg %p1423_p5 }
  0x32   : > { %183 = vst.msk [vmem:[#allocation2 + $0x4a] sm:$0xff] %vm176_vm1, %v1492_v6 }
  0x33   : > { %213 = vrot.lane.b32.xlu0 %v191_v7, %s1491_s16  ;;  %215 = vrot.lane.b32.xlu1 %v192_v8, %s1491_s16  ;;  %184 = vst.msk [vmem:[#allocation2 + $0x52] sm:$0xff] %vm176_vm1, %v1492_v6 }
  0x34   : > { %414 = vrot.lane.b32.xlu2 %v1246_v9, %s1491_s16  ;;  %163 = vst.msk [vmem:[#allocation2 + $0x12] sm:$0x3] %vm158_vm3, %v1492_v6 }
  0x35   : > { %159 = vst.msk [vmem:[#allocation2] sm:$0x3] %vm158_vm3, %v1492_v6 }
  0x36   : > { %160 = vst.msk [vmem:[#allocation2 + $0x18] sm:$0x3] %vm158_vm3, %v1492_v6 }
  0x37   : > { %161 = vst.msk [vmem:[#allocation2 + $0x30] sm:$0x3] %vm158_vm3, %v1492_v6 }
  0x38   : > { %162 = vst.msk [vmem:[#allocation2 + $0x48] sm:$0x3] %vm158_vm3, %v1492_v6 }
  0x39   : > { %164 = vst.msk [vmem:[#allocation2 + $0x2a] sm:$0x3] %vm158_vm3, %v1492_v6 }
  0x3a   : > { %165 = vst.msk [vmem:[#allocation2 + $0x42] sm:$0x3] %vm158_vm3, %v1492_v6 }
  0x3b   : > { %412 = vrot.lane.b32.xlu1 %v1245_v10, %s1491_s16  ;;  %416 = vrot.lane.b32.xlu0 %v1247_v11, %s1491_s16  ;;  %166 = vst.msk [vmem:[#allocation2 + $0x5a] sm:$0x3] %vm158_vm3, %v1492_v6 }
  0x3c   : > { %420 = vrot.lane.b32.xlu2 %v1249_v12, %s1491_s16 }
  0x43   : > { %418 = vrot.lane.b32.xlu1 %v1248_v13, %s1491_s16  ;;  %422 = vrot.lane.b32.xlu0 %v1250_v14, %s1491_s16 }
  0x44   : > { %426 = vrot.lane.b32.xlu2 %v1252_v15, %s1491_s16 }
  0x4b   : > { %424 = vrot.lane.b32.xlu1 %v1251_v16, %s1491_s16 }
  0x4c   : > { %582 = vrot.lane.b32.xlu2 %v1261_v17, %s1491_s16 }
  0x7e   : > { %v210_v18 = vpop.permute.xlu2 %209 }
  0x7f   : > { %230 = vst.msk [vmem:[#allocation2 + $0x32] sm:$0xff] %vm225_vm2, %v210_v18 }
  0x86   : > { %v212_v19 = vpop.permute.xlu2 %211  ;;  %v1694_v32 = vld [vmem:[#allocation2 + $0x32] sm:$0xff] }
  0x87   : > { %231 = vst.msk [vmem:[#allocation2 + $0x3a] sm:$0xff] %vm225_vm2, %v212_v19 }
  0x8e   : > { %v1678_v26 = vld [vmem:[#allocation2 + $0x3a] sm:$0xff]  ;;  %v415_v34 = vpop.permute.xlu2 %414 }
  0x95   : > { %v206_v20 = vpop.permute.xlu1 %205  ;;  %v202_v21 = vpop.permute.xlu0 %201 }
  0x96   : > { %228 = vst.msk [vmem:[#allocation2 + $0x1a] sm:$0xff] %vm225_vm2, %v206_v20  ;;  %v421_v37 = vpop.permute.xlu2 %420 }
  0x97   : > { %226 = vst.msk [vmem:[#allocation2 + $0x2] sm:$0xff] %vm225_vm2, %v202_v21 }
  0x98   : > { %440 = vst.msk [vmem:[#allocation2 + $0x32] sm:$0xff] %vm225_vm2, %v421_v37 }
  0x9d   : > { %v208_v22 = vpop.permute.xlu1 %207  ;;  %v204_v23 = vpop.permute.xlu0 %203  ;;  %v1668_v24 = vld [vmem:[#allocation2 + $0x1a] sm:$0xff] }
  0x9e   : > { %229 = vst.msk [vmem:[#allocation2 + $0x22] sm:$0xff] %vm225_vm2, %v208_v22  ;;  %262 = vrot.lane.b32.xlu1 %v1668_v24, %s1493_s17  ;;  %v1673_v25 = vld [vmem:[#allocation2 + $0x2] sm:$0xff]  ;;  %v427_v40 = vpop.permute.xlu2 %426 }
  0x9f   : > { %227 = vst.msk [vmem:[#allocation2 + $0xa] sm:$0xff] %vm225_vm2, %v204_v23  ;;  %258 = vrot.lane.b32.xlu2 %v1673_v25, %s1493_s17  ;;  %v448_v54 = vld [vmem:[#allocation2 + $0x30] sm:$0xff] }
  0xa0   : > { %v464_v55 = vld [vmem:[#allocation2 + $0x31] sm:$0xff] }
  0xa1   : > { %v472_v59 = vadd.f32 %v464_v55, %v448_v54  ;;  %v480_v61 = vld [vmem:[#allocation2 + $0x32] sm:$0xff] }
  0xa3   : > { %v488_v1 = vadd.f32 %v480_v61, %v472_v59 }
  0xa5   : > { %v214_v27 = vpop.permute.xlu0 %213  ;;  %v1680_v28 = vld [vmem:[#allocation2 + $0x22] sm:$0xff]  ;;  %v216_v29 = vpop.permute.xlu1 %215 }
  0xa6   : > { %232 = vst.msk [vmem:[#allocation2 + $0x4a] sm:$0xff] %vm225_vm2, %v214_v27  ;;  %268 = vrot.lane.b32.xlu1 %v1678_v26, %s1493_s17  ;;  %v1685_v30 = vld [vmem:[#allocation2 + $0xa] sm:$0xff]  ;;  %v583_v46 = vpop.permute.xlu2 %582 }
  0xa7   : > { %260 = vrot.lane.b32.xlu0 %v1685_v30, %s1493_s17  ;;  %264 = vrot.lane.b32.xlu2 %v1680_v28, %s1493_s17  ;;  %233 = vst.msk [vmem:[#allocation2 + $0x52] sm:$0xff] %vm225_vm2, %v216_v29 }
  0xa8   : > { %437 = vst.msk [vmem:[#allocation2 + $0xa] sm:$0xff] %vm225_vm2, %v415_v34 }
  0xad   : > { %v1692_v31 = vld [vmem:[#allocation2 + $0x4a] sm:$0xff]  ;;  %v413_v35 = vpop.permute.xlu1 %412  ;;  %v417_v36 = vpop.permute.xlu0 %416 }
  0xae   : > { %290 = vrot.lane.b32.xlu1 %v1673_v25, %s1494_s18  ;;  %v1702_v33 = vld [vmem:[#allocation2 + $0x52] sm:$0xff]  ;;  %436 = vst.msk [vmem:[#allocation2 + $0x2] sm:$0xff] %vm225_vm2, %v413_v35 }
  0xaf   : > { %266 = vrot.lane.b32.xlu0 %v1694_v32, %s1493_s17  ;;  %270 = vrot.lane.b32.xlu2 %v1692_v31, %s1493_s17  ;;  %438 = vst.msk [vmem:[#allocation2 + $0x1a] sm:$0xff] %vm225_vm2, %v417_v36  ;;  %v477_v51 = vld [vmem:[#allocation2 + $0xa] sm:$0xff] }
  0xb0   : > { %443 = vst.msk [vmem:[#allocation2 + $0x52] sm:$0xff] %vm225_vm2, %v427_v40  ;;  %v493_v53 = vld [vmem:[#allocation2 + $0xb] sm:$0xff] }
  0xb1   : > { %v509_v60 = vld [vmem:[#allocation2 + $0xc] sm:$0xff] }
  0xb5   : > { %v419_v38 = vpop.permute.xlu1 %418  ;;  %v423_v39 = vpop.permute.xlu0 %422  ;;  %v445_v42 = vld [vmem:[#allocation2 + $0x8] sm:$0xff]  ;;  %v444_v44 = vld [vmem:[#allocation2] sm:$0xff] }
  0xb6   : > { %296 = vrot.lane.b32.xlu1 %v1680_v28, %s1494_s18  ;;  %439 = vst.msk [vmem:[#allocation2 + $0x22] sm:$0xff] %vm225_vm2, %v419_v38  ;;  %v461_v43 = vld [vmem:[#allocation2 + $0x9] sm:$0xff]  ;;  %v460_v45 = vld [vmem:[#allocation2 + $0x1] sm:$0xff]  ;;  %v446_v56 = vld [vmem:[#allocation2 + $0x18] sm:$0xff] }
  0xb7   : > { %272 = vrot.lane.b32.xlu0 %v1702_v33, %s1493_s17  ;;  %292 = vrot.lane.b32.xlu2 %v1685_v30, %s1494_s18  ;;  %441 = vst.msk [vmem:[#allocation2 + $0x3a] sm:$0xff] %vm225_vm2, %v423_v39  ;;  %v476_v47 = vld [vmem:[#allocation2 + $0x2] sm:$0xff]  ;;  %v469_v50 = vadd.f32 %v461_v43, %v445_v42  ;;  %v462_v57 = vld [vmem:[#allocation2 + $0x19] sm:$0xff]  ;;  %v468_v15 = vadd.f32 %v460_v45, %v444_v44 }
  0xb8   : > { %v1752_v48 = vld [vmem:[#allocation2 + $0x3] sm:$0xff]  ;;  %v470_v62 = vadd.f32 %v462_v57, %v446_v56  ;;  %v478_v63 = vld [vmem:[#allocation2 + $0x1a] sm:$0xff]  ;;  %v483_v13 = vld [vmem:[#allocation2 + $0x52] sm:$0xff] }
  0xb9   : > { %v1754_v49 = vld [vmem:[#allocation2 + $0x4] sm:$0xff]  ;;  %v485_v52 = vadd.f32 %v477_v51, %v469_v50  ;;  %v499_v21 = vld [vmem:[#allocation2 + $0x53] sm:$0xff]  ;;  %v484_v23 = vadd.f32 %v476_v47, %v468_v15 }
  0xba   : > { %606 = vst.msk [vmem:[#allocation2 + $0x2] sm:$0xff] %vm225_vm2, %v583_v46  ;;  %v486_v3 = vadd.f32 %v478_v63, %v470_v62  ;;  %v515_v37 = vld [vmem:[#allocation2 + $0x54] sm:$0xff]  ;;  %v1266_v63 = vld [vmem:[%s1592_s15 + $0xa8] sm:$0xff] }
  0xbb   : > { %v501_v58 = vadd.f32 %v493_v53, %v485_v52  ;;  %v500_v39 = vadd.f32 %v1752_v48, %v484_v23  ;;  %v1263_v56 = vld [vmem:[%s1592_s15 + $0x90] sm:$0xff]  ;;  %v1264_v57 = vld [vmem:[%s1592_s15 + $0x98] sm:$0xff] }
  0xbd   : > { %v425_v41 = vpop.permute.xlu1 %424  ;;  %v517_v0 = vadd.f32 %v509_v60, %v501_v58  ;;  %v494_v6 = vld [vmem:[#allocation2 + $0x1b] sm:$0xff]  ;;  %v516_v45 = vadd.f32 %v1754_v49, %v500_v39  ;;  %v495_v47 = vld [vmem:[#allocation2 + $0x23] sm:$0xff] }
  0xbe   : > { %302 = vrot.lane.b32.xlu1 %v1692_v31, %s1494_s18  ;;  %442 = vst.msk [vmem:[#allocation2 + $0x4a] sm:$0xff] %vm225_vm2, %v425_v41  ;;  %v496_v2 = vld [vmem:[#allocation2 + $0x33] sm:$0xff]  ;;  %v502_v12 = vadd.f32 %v494_v6, %v486_v3  ;;  %v510_v16 = vld [vmem:[#allocation2 + $0x1c] sm:$0xff]  ;;  %v511_v54 = vld [vmem:[#allocation2 + $0x24] sm:$0xff] }
  0xbf   : > { %294 = vrot.lane.b32.xlu0 %v1668_v24, %s1494_s18  ;;  %298 = vrot.lane.b32.xlu2 %v1694_v32, %s1494_s18  ;;  %v449_v7 = vld [vmem:[#allocation2 + $0x38] sm:$0xff]  ;;  %v504_v9 = vadd.f32 %v496_v2, %v488_v1  ;;  %v447_v29 = vld [vmem:[#allocation2 + $0x20] sm:$0xff] }
  0xc0   : > { %v465_v8 = vld [vmem:[#allocation2 + $0x39] sm:$0xff]  ;;  %v518_v20 = vadd.f32 %v510_v16, %v502_v12  ;;  %v463_v34 = vld [vmem:[#allocation2 + $0x21] sm:$0xff] }
  0xc1   : > { %v512_v11 = vld [vmem:[#allocation2 + $0x34] sm:$0xff]  ;;  %v473_v14 = vadd.f32 %v465_v8, %v449_v7  ;;  %v471_v40 = vadd.f32 %v463_v34, %v447_v29  ;;  %v513_v41 = vld [vmem:[#allocation2 + $0x3c] sm:$0xff] }
  0xc2   : > { %v481_v17 = vld [vmem:[#allocation2 + $0x3a] sm:$0xff]  ;;  %v520_v18 = vadd.f32 %v512_v11, %v504_v9  ;;  %v479_v42 = vld [vmem:[#allocation2 + $0x22] sm:$0xff] }
  0xc3   : > { %v489_v22 = vadd.f32 %v481_v17, %v473_v14  ;;  %v497_v27 = vld [vmem:[#allocation2 + $0x3b] sm:$0xff]  ;;  %v487_v46 = vadd.f32 %v479_v42, %v471_v40 }
  0xc4   : > { %v1265_v9 = vld [vmem:[%s1592_s15 + $0xa0] sm:$0xff] }
  0xc5   : > { %v451_v4 = vld [vmem:[#allocation2 + $0x50] sm:$0xff]  ;;  %v505_v38 = vadd.f32 %v497_v27, %v489_v22  ;;  %v450_v50 = vld [vmem:[#allocation2 + $0x48] sm:$0xff]  ;;  %v503_v52 = vadd.f32 %v495_v47, %v487_v46 }
  0xc6   : > { %324 = vrot.lane.b32.xlu1 %v1685_v30, %s1495_s22  ;;  %v467_v5 = vld [vmem:[#allocation2 + $0x51] sm:$0xff]  ;;  %v466_v51 = vld [vmem:[#allocation2 + $0x49] sm:$0xff] }
  0xc7   : > { %300 = vrot.lane.b32.xlu0 %v1678_v26, %s1494_s18  ;;  %304 = vrot.lane.b32.xlu2 %v1702_v33, %s1494_s18  ;;  %v475_v10 = vadd.f32 %v467_v5, %v451_v4  ;;  %v521_v44 = vadd.f32 %v513_v41, %v505_v38  ;;  %v474_v53 = vadd.f32 %v466_v51, %v450_v50  ;;  %v482_v55 = vld [vmem:[#allocation2 + $0x4a] sm:$0xff]  ;;  %v630_v5 = vld [vmem:[#allocation2 + $0x1] sm:$0xff] }
  0xc8   : > { %v519_v49 = vadd.f32 %v511_v54, %v503_v52  ;;  %v498_v59 = vld [vmem:[#allocation2 + $0x4b] sm:$0xff] }
  0xc9   : > { %v491_v19 = vadd.f32 %v483_v13, %v475_v10  ;;  %v490_v58 = vadd.f32 %v482_v55, %v474_v53  ;;  %v514_v62 = vld [vmem:[#allocation2 + $0x4c] sm:$0xff]  ;;  %v1268_v13 = vld [vmem:[%s1592_s15 + $0xb8] sm:$0xff] }
  0xca   : > { %v1262_v4 = vld [vmem:[%s1592_s15 + $0x88] sm:$0xff] }
  0xcb   : > { %v507_v35 = vadd.f32 %v499_v21, %v491_v19  ;;  %v506_v61 = vadd.f32 %v498_v59, %v490_v58 }
  0xcd   : > { %v523_v43 = vadd.f32 %v515_v37, %v507_v35  ;;  %v522_v1 = vadd.f32 %v514_v62, %v506_v61 }
  0xce   : > { %330 = vrot.lane.b32.xlu1 %v1694_v32, %s1495_s22 }
  0xcf   : > { %322 = vrot.lane.b32.xlu0 %v1673_v25, %s1495_s22  ;;  %326 = vrot.lane.b32.xlu2 %v1668_v24, %s1495_s22 }
  0xd6   : > { %336 = vrot.lane.b32.xlu1 %v1702_v33, %s1495_s22 }
  0xd7   : > { %328 = vrot.lane.b32.xlu0 %v1680_v28, %s1495_s22  ;;  %332 = vrot.lane.b32.xlu2 %v1678_v26, %s1495_s22 }
  0xde   : > { %358 = vrot.lane.b32.xlu1 %v1668_v24, %s1496_s23 }
  0xdf   : > { %334 = vrot.lane.b32.xlu0 %v1692_v31, %s1495_s22  ;;  %354 = vrot.lane.b32.xlu2 %v1673_v25, %s1496_s23 }
  0xe6   : > { %364 = vrot.lane.b32.xlu1 %v1678_v26, %s1496_s23 }
  0xe7   : > { %356 = vrot.lane.b32.xlu0 %v1685_v30, %s1496_s23  ;;  %360 = vrot.lane.b32.xlu2 %v1680_v28, %s1496_s23 }
  0xee   : > { %534 = vrot.lane.b32.xlu1 %v517_v0, %s1494_s18  ;;  %v1267_v0 = vld [vmem:[%s1592_s15 + $0xb0] sm:$0xff] }
  0xef   : > { %362 = vrot.lane.b32.xlu0 %v1694_v32, %s1496_s23  ;;  %366 = vrot.lane.b32.xlu2 %v1692_v31, %s1496_s23 }
  0xf6   : > { %540 = vrot.lane.b32.xlu1 %v520_v18, %s1494_s18 }
  0xf7   : > { %368 = vrot.lane.b32.xlu0 %v1702_v33, %s1496_s23  ;;  %536 = vrot.lane.b32.xlu2 %v518_v20, %s1494_s18 }
  0xf9   : > { %v1784_v36 = vpop.permute.xlu2 %258 }
  0xfa   : > { %v282_v23 = vadd.f32 %v1784_v36, %v1673_v25 }
  0xfe   : > { %546 = vrot.lane.b32.xlu1 %v523_v43, %s1494_s18 }
  0xff   : > { %542 = vrot.lane.b32.xlu2 %v521_v44, %s1494_s18  ;;  %532 = vrot.lane.b32.xlu0 %v516_v45, %s1494_s18 }
 0x101   : > { %v265_v48 = vpop.permute.xlu2 %264 }
 0x102   : > { %v285_v39 = vadd.f32 %v265_v48, %v1680_v28 }
 0x106   : > { %586 = vrot.lane.b32.xlu1 %v1263_v56, %s1491_s16 }
 0x107   : > { %538 = vrot.lane.b32.xlu0 %v519_v49, %s1494_s18  ;;  %588 = vrot.lane.b32.xlu2 %v1264_v57, %s1491_s16 }
 0x109   : > { %v271_v60 = vpop.permute.xlu2 %270 }
 0x10a   : > { %v288_v28 = vadd.f32 %v271_v60, %v1692_v31 }
 0x10e   : > { %592 = vrot.lane.b32.xlu1 %v1266_v63, %s1491_s16 }
 0x10f   : > { %544 = vrot.lane.b32.xlu0 %v522_v1, %s1494_s18  ;;  %594 = vrot.lane.b32.xlu2 %v1267_v0, %s1491_s16 }
 0x110   : > { %v263_v2 = vpop.permute.xlu1 %262 }
 0x111   : > { %v293_v3 = vpop.permute.xlu2 %292  ;;  %v284_v25 = vadd.f32 %v263_v2, %v1668_v24 }
 0x116   : > { %646 = vrot.lane.b32.xlu1 %v630_v5, %s1493_s17 }
 0x117   : > { %584 = vrot.lane.b32.xlu0 %v1262_v4, %s1491_s16 }
 0x118   : > { %v269_v6 = vpop.permute.xlu1 %268 }
 0x119   : > { %v261_v7 = vpop.permute.xlu0 %260  ;;  %v1804_v8 = vpop.permute.xlu2 %298  ;;  %v287_v51 = vadd.f32 %v269_v6, %v1678_v26 }
 0x11a   : > { %v283_v53 = vadd.f32 %v261_v7, %v1685_v30 }
 0x11c   : > { %v315_v56 = vadd.f32 %v293_v3, %v283_v53  ;;  %v1281_v53 = vld [vmem:[%s1592_s15 + $0xe0] sm:$0xff] }
 0x11f   : > { %590 = vrot.lane.b32.xlu0 %v1265_v9, %s1491_s16 }
 0x120   : > { %v291_v10 = vpop.permute.xlu1 %290 }
 0x121   : > { %v267_v11 = vpop.permute.xlu0 %266  ;;  %v1808_v12 = vpop.permute.xlu2 %304  ;;  %v314_v27 = vadd.f32 %v291_v10, %v282_v23 }
 0x122   : > { %v286_v60 = vadd.f32 %v267_v11, %v1694_v32 }
 0x124   : > { %v318_v62 = vadd.f32 %v1804_v8, %v286_v60  ;;  %v1282_v60 = vld [vmem:[%s1592_s15 + $0xe8] sm:$0xff] }
 0x127   : > { %596 = vrot.lane.b32.xlu0 %v1268_v13, %s1491_s16 }
 0x128   : > { %v297_v14 = vpop.permute.xlu1 %296 }
 0x129   : > { %v273_v15 = vpop.permute.xlu0 %272  ;;  %v327_v16 = vpop.permute.xlu2 %326  ;;  %v317_v40 = vadd.f32 %v297_v14, %v285_v39 }
 0x12a   : > { %v289_v32 = vadd.f32 %v273_v15, %v1702_v33 }
 0x12c   : > { %v321_v4 = vadd.f32 %v1808_v12, %v289_v32 }
 0x130   : > { %v303_v17 = vpop.permute.xlu1 %302 }
 0x131   : > { %v295_v18 = vpop.permute.xlu0 %294  ;;  %v333_v19 = vpop.permute.xlu2 %332  ;;  %v320_v47 = vadd.f32 %v303_v17, %v288_v28 }
 0x132   : > { %v316_v44 = vadd.f32 %v295_v18, %v284_v25 }
 0x134   : > { %v348_v46 = vadd.f32 %v327_v16, %v316_v44 }
 0x138   : > { %v325_v20 = vpop.permute.xlu1 %324 }
 0x139   : > { %v301_v21 = vpop.permute.xlu0 %300  ;;  %v355_v22 = vpop.permute.xlu2 %354  ;;  %v347_v57 = vadd.f32 %v325_v20, %v315_v56  ;;  %v1284_v56 = vld [vmem:[%s1592_s15 + $0xf8] sm:$0xff] }
 0x13a   : > { %v319_v31 = vadd.f32 %v301_v21, %v287_v51 }
 0x13c   : > { %v351_v26 = vadd.f32 %v333_v19, %v319_v31 }
 0x140   : > { %v331_v29 = vpop.permute.xlu1 %330 }
 0x141   : > { %v323_v34 = vpop.permute.xlu0 %322  ;;  %v361_v35 = vpop.permute.xlu2 %360  ;;  %v350_v63 = vadd.f32 %v331_v29, %v318_v62 }
 0x142   : > { %v346_v37 = vadd.f32 %v323_v34, %v314_v27  ;;  %v678_v34 = vld [vmem:[#allocation2 + $0x2] sm:$0xff] }
 0x144   : > { %v378_v38 = vadd.f32 %v355_v22, %v346_v37 }
 0x146   : > { %387 = vst.msk [vmem:[%s1817_s24] sm:$0xff] %vm386_vm4, %v378_v38 }
 0x148   : > { %v337_v41 = vpop.permute.xlu1 %336 }
 0x149   : > { %v329_v36 = vpop.permute.xlu0 %328  ;;  %v367_v42 = vpop.permute.xlu2 %366  ;;  %v353_v5 = vadd.f32 %v337_v41, %v321_v4 }
 0x14a   : > { %v349_v43 = vadd.f32 %v329_v36, %v317_v40 }
 0x14c   : > { %v381_v45 = vadd.f32 %v361_v35, %v349_v43 }
 0x14e   : > { %390 = vst.msk [vmem:[%s1817_s24 + $0x18] sm:$0xff] %vm386_vm4, %v381_v45 }
 0x150   : > { %v359_v50 = vpop.permute.xlu1 %358 }
 0x151   : > { %v335_v48 = vpop.permute.xlu0 %334  ;;  %v380_v52 = vadd.f32 %v359_v50, %v348_v46  ;;  %v537_v24 = vpop.permute.xlu2 %536 }
 0x152   : > { %v352_v54 = vadd.f32 %v335_v48, %v320_v47  ;;  %1255 = vst.msk [vmem:[%s1817_s24 + $0x50] sm:$0xff] %vm386_vm4, %v537_v24  ;;  %v1278_v48 = vld [vmem:[%s1592_s15 + $0xc8] sm:$0xff] }
 0x153   : > { %389 = vst.msk [vmem:[%s1817_s24 + $0x10] sm:$0xff] %vm386_vm4, %v380_v52 }
 0x154   : > { %v384_v55 = vadd.f32 %v367_v42, %v352_v54 }
 0x156   : > { %393 = vst.msk [vmem:[%s1817_s24 + $0x30] sm:$0xff] %vm386_vm4, %v384_v55  ;;  %v1277_v55 = vld [vmem:[%s1592_s15 + $0xc0] sm:$0xff] }
 0x158   : > { %v365_v49 = vpop.permute.xlu1 %364 }
 0x159   : > { %v357_v58 = vpop.permute.xlu0 %356  ;;  %v383_v59 = vadd.f32 %v365_v49, %v351_v26  ;;  %v543_v30 = vpop.permute.xlu2 %542  ;;  %v1279_v49 = vld [vmem:[%s1592_s15 + $0xd0] sm:$0xff] }
 0x15a   : > { %v379_v61 = vadd.f32 %v357_v58, %v347_v57  ;;  %1258 = vst.msk [vmem:[%s1817_s24 + $0x68] sm:$0xff] %vm386_vm4, %v543_v30  ;;  %v1280_v57 = vld [vmem:[%s1592_s15 + $0xd8] sm:$0xff]  ;;  %v1283_v30 = vld [vmem:[%s1592_s15 + $0xf0] sm:$0xff] }
 0x15b   : > { %392 = vst.msk [vmem:[%s1817_s24 + $0x28] sm:$0xff] %vm386_vm4, %v383_v59 }
 0x15c   : > { %388 = vst.msk [vmem:[%s1817_s24 + $0x8] sm:$0xff] %vm386_vm4, %v379_v61 }
 0x160   : > { %v535_v0 = vpop.permute.xlu1 %534 }
 0x161   : > { %v363_v1 = vpop.permute.xlu0 %362  ;;  %1254 = vst.msk [vmem:[%s1817_s24 + $0x48] sm:$0xff] %vm386_vm4, %v535_v0  ;;  %v589_v2 = vpop.permute.xlu2 %588 }
 0x162   : > { %v382_v3 = vadd.f32 %v363_v1, %v350_v63  ;;  %609 = vst.msk [vmem:[#allocation2 + $0x22] sm:$0xff] %vm225_vm2, %v589_v2 }
 0x164   : > { %391 = vst.msk [vmem:[%s1817_s24 + $0x20] sm:$0xff] %vm386_vm4, %v382_v3 }
 0x168   : > { %v541_v6 = vpop.permute.xlu1 %540 }
 0x169   : > { %v369_v7 = vpop.permute.xlu0 %368  ;;  %1257 = vst.msk [vmem:[%s1817_s24 + $0x60] sm:$0xff] %vm386_vm4, %v541_v6  ;;  %v595_v8 = vpop.permute.xlu2 %594  ;;  %v681_v38 = vld [vmem:[#allocation2 + $0x22] sm:$0xff] }
 0x16a   : > { %v385_v9 = vadd.f32 %v369_v7, %v353_v5  ;;  %612 = vst.msk [vmem:[#allocation2 + $0x4a] sm:$0xff] %vm225_vm2, %v595_v8  ;;  %v777_v28 = vld [vmem:[#allocation2 + $0x24] sm:$0xff] }
 0x16b   : > { %v729_v46 = vld [vmem:[#allocation2 + $0x23] sm:$0xff] }
 0x16c   : > { %394 = vst.msk [vmem:[%s1817_s24 + $0x38] sm:$0xff] %vm386_vm4, %v385_v9 }
 0x170   : > { %v547_v33 = vpop.permute.xlu1 %546 }
 0x171   : > { %1260 = vst.msk [vmem:[%s1817_s24 + $0x78] sm:$0xff] %vm386_vm4, %v547_v33  ;;  %v533_v10 = vpop.permute.xlu0 %532  ;;  %v636_v17 = vld [vmem:[#allocation2 + $0x49] sm:$0xff] }
 0x172   : > { %1253 = vst.msk [vmem:[%s1817_s24 + $0x40] sm:$0xff] %vm386_vm4, %v533_v10  ;;  %v684_v41 = vld [vmem:[#allocation2 + $0x4a] sm:$0xff] }
 0x178   : > { %v587_v11 = vpop.permute.xlu1 %586 }
 0x179   : > { %608 = vst.msk [vmem:[#allocation2 + $0x1a] sm:$0xff] %vm225_vm2, %v587_v11  ;;  %v539_v12 = vpop.permute.xlu0 %538  ;;  %v614_v11 = vld [vmem:[#allocation2] sm:$0xff] }
 0x17a   : > { %1256 = vst.msk [vmem:[%s1817_s24 + $0x58] sm:$0xff] %vm386_vm4, %v539_v12 }
 0x180   : > { %v593_v13 = vpop.permute.xlu1 %592  ;;  %v633_v14 = vld [vmem:[#allocation2 + $0x21] sm:$0xff]  ;;  %v632_v15 = vld [vmem:[#allocation2 + $0x19] sm:$0xff] }
 0x181   : > { %611 = vst.msk [vmem:[#allocation2 + $0x3a] sm:$0xff] %vm225_vm2, %v593_v13  ;;  %v545_v16 = vpop.permute.xlu0 %544  ;;  %652 = vrot.lane.b32.xlu1 %v633_v14, %s1493_s17  ;;  %650 = vrot.lane.b32.xlu0 %v632_v15, %s1493_s17  ;;  %v728_v39 = vld [vmem:[#allocation2 + $0x1b] sm:$0xff] }
 0x182   : > { %1259 = vst.msk [vmem:[%s1817_s24 + $0x70] sm:$0xff] %vm386_vm4, %v545_v16  ;;  %v680_v40 = vld [vmem:[#allocation2 + $0x1a] sm:$0xff] }
 0x183   : > { %v776_v52 = vld [vmem:[#allocation2 + $0x1c] sm:$0xff] }
 0x188   : > { %v731_v25 = vld [vmem:[#allocation2 + $0x3b] sm:$0xff]  ;;  %v647_v58 = vpop.permute.xlu1 %646 }
 0x189   : > { %v585_v18 = vpop.permute.xlu0 %584  ;;  %658 = vrot.lane.b32.xlu1 %v636_v17, %s1493_s17  ;;  %v683_v36 = vld [vmem:[#allocation2 + $0x3a] sm:$0xff]  ;;  %v670_v14 = vadd.f32 %v647_v58, %v614_v11 }
 0x18a   : > { %607 = vst.msk [vmem:[#allocation2 + $0xa] sm:$0xff] %vm225_vm2, %v585_v18  ;;  %v779_v54 = vld [vmem:[#allocation2 + $0x3c] sm:$0xff] }
 0x191   : > { %v591_v19 = vpop.permute.xlu0 %590  ;;  %v679_v20 = vld [vmem:[#allocation2 + $0xa] sm:$0xff] }
 0x192   : > { %v631_v21 = vld [vmem:[#allocation2 + $0x9] sm:$0xff]  ;;  %610 = vst.msk [vmem:[#allocation2 + $0x32] sm:$0xff] %vm225_vm2, %v591_v19  ;;  %696 = vrot.lane.b32.xlu1 %v679_v20, %s1494_s18 }
 0x193   : > { %648 = vrot.lane.b32.xlu2 %v631_v21, %s1493_s17  ;;  %v727_v42 = vld [vmem:[#allocation2 + $0xb] sm:$0xff]  ;;  %v726_v44 = vld [vmem:[#allocation2 + $0x3] sm:$0xff] }
 0x194   : > { %v774_v43 = vld [vmem:[#allocation2 + $0x4] sm:$0xff]  ;;  %v775_v24 = vld [vmem:[#allocation2 + $0xc] sm:$0xff] }
 0x195   : > { %v615_v17 = vld [vmem:[#allocation2 + $0x8] sm:$0xff]  ;;  %v617_v21 = vld [vmem:[#allocation2 + $0x20] sm:$0xff] }
 0x199   : > { %v597_v22 = vpop.permute.xlu0 %596  ;;  %v682_v23 = vld [vmem:[#allocation2 + $0x32] sm:$0xff] }
 0x19a   : > { %v635_v27 = vld [vmem:[#allocation2 + $0x39] sm:$0xff]  ;;  %v634_v29 = vld [vmem:[#allocation2 + $0x31] sm:$0xff]  ;;  %613 = vst.msk [vmem:[#allocation2 + $0x52] sm:$0xff] %vm225_vm2, %v597_v22  ;;  %702 = vrot.lane.b32.xlu1 %v682_v23, %s1494_s18 }
 0x19b   : > { %656 = vrot.lane.b32.xlu0 %v635_v27, %s1493_s17  ;;  %654 = vrot.lane.b32.xlu2 %v634_v29, %s1493_s17  ;;  %v730_v45 = vld [vmem:[#allocation2 + $0x33] sm:$0xff] }
 0x19c   : > { %v778_v31 = vld [vmem:[#allocation2 + $0x34] sm:$0xff] }
 0x1a1   : > { %v685_v35 = vld [vmem:[#allocation2 + $0x52] sm:$0xff] }
 0x1a2   : > { %v637_v37 = vld [vmem:[#allocation2 + $0x51] sm:$0xff]  ;;  %708 = vrot.lane.b32.xlu1 %v685_v35, %s1494_s18 }
 0x1a3   : > { %694 = vrot.lane.b32.xlu0 %v678_v34, %s1494_s18  ;;  %660 = vrot.lane.b32.xlu2 %v637_v37, %s1493_s17  ;;  %v733_v47 = vld [vmem:[#allocation2 + $0x53] sm:$0xff]  ;;  %v732_v51 = vld [vmem:[#allocation2 + $0x4b] sm:$0xff]  ;;  %s1425_s17 = scalar_lea.hbm %s2018_s1, 512 }
 0x1a4   : > { %v780_v50 = vld [vmem:[#allocation2 + $0x4c] sm:$0xff]  ;;  %v781_v26 = vld [vmem:[#allocation2 + $0x54] sm:$0xff]  ;;  %p1427_p8 = scmp.lt.s32.totalorder %s1425_s17, %s1421_s13 }
 0x1a6   : > { %p1428_p10 = por %p1427_p8, %p1426_p7 }
 0x1a8   : > { %p1429_p13 = pnand %p1428_p10, %p1424_p6 }
 0x1aa   : > { %746 = vrot.lane.b32.xlu1 %v728_v39, %s1495_s22  ;;  %v618_v39 = vld [vmem:[#allocation2 + $0x30] sm:$0xff] }
 0x1ab   : > { %700 = vrot.lane.b32.xlu0 %v681_v38, %s1494_s18  ;;  %698 = vrot.lane.b32.xlu2 %v680_v40, %s1494_s18 }
 0x1b2   : > { %752 = vrot.lane.b32.xlu1 %v731_v25, %s1495_s22 }
 0x1b3   : > { %706 = vrot.lane.b32.xlu0 %v684_v41, %s1494_s18  ;;  %704 = vrot.lane.b32.xlu2 %v683_v36, %s1494_s18  ;;  %v620_v36 = vld [vmem:[#allocation2 + $0x48] sm:$0xff] }
 0x1ba   : > { %790 = vrot.lane.b32.xlu1 %v774_v43, %s1496_s23 }
 0x1bb   : > { %744 = vrot.lane.b32.xlu0 %v727_v42, %s1495_s22  ;;  %742 = vrot.lane.b32.xlu2 %v726_v44, %s1495_s22 }
 0x1c2   : > { %796 = vrot.lane.b32.xlu1 %v777_v28, %s1496_s23 }
 0x1c3   : > { %750 = vrot.lane.b32.xlu0 %v730_v45, %s1495_s22  ;;  %748 = vrot.lane.b32.xlu2 %v729_v46, %s1495_s22 }
 0x1ca   : > { %802 = vrot.lane.b32.xlu1 %v780_v50, %s1496_s23 }
 0x1cb   : > { %756 = vrot.lane.b32.xlu0 %v733_v47, %s1495_s22  ;;  %754 = vrot.lane.b32.xlu2 %v732_v51, %s1495_s22  ;;  %v621_v51 = vld [vmem:[#allocation2 + $0x50] sm:$0xff] }
 0x1d2   : > { %850 = vrot.lane.b32.xlu1 %v1278_v48, %s1491_s16 }
 0x1d3   : > { %794 = vrot.lane.b32.xlu0 %v776_v52, %s1496_s23  ;;  %792 = vrot.lane.b32.xlu2 %v775_v24, %s1496_s23 }
 0x1da   : > { %856 = vrot.lane.b32.xlu1 %v1281_v53, %s1491_s16 }
 0x1db   : > { %800 = vrot.lane.b32.xlu0 %v779_v54, %s1496_s23  ;;  %798 = vrot.lane.b32.xlu2 %v778_v31, %s1496_s23 }
 0x1e2   : > { %862 = vrot.lane.b32.xlu1 %v1284_v56, %s1491_s16 }
 0x1e3   : > { %848 = vrot.lane.b32.xlu0 %v1277_v55, %s1491_s16  ;;  %804 = vrot.lane.b32.xlu2 %v781_v26, %s1496_s23  ;;  %v616_v26 = vld [vmem:[#allocation2 + $0x18] sm:$0xff] }
 0x1eb   : > { %854 = vrot.lane.b32.xlu0 %v1280_v57, %s1491_s16  ;;  %852 = vrot.lane.b32.xlu2 %v1279_v49, %s1491_s16 }
 0x1ed   : > { %v649_v59 = vpop.permute.xlu2 %648 }
 0x1ee   : > { %v671_v18 = vadd.f32 %v649_v59, %v615_v17 }
 0x1f3   : > { %860 = vrot.lane.b32.xlu0 %v1283_v30, %s1491_s16  ;;  %858 = vrot.lane.b32.xlu2 %v1282_v60, %s1491_s16  ;;  %v653_v61 = vpop.permute.xlu1 %652  ;;  %v651_v1 = vpop.permute.xlu0 %650  ;;  %v619_v30 = vld [vmem:[#allocation2 + $0x38] sm:$0xff] }
 0x1f4   : > { %v673_v27 = vadd.f32 %v653_v61, %v617_v21  ;;  %v672_v57 = vadd.f32 %v651_v1, %v616_v26 }
 0x1f5   : > { %v655_v62 = vpop.permute.xlu2 %654 }
 0x1f6   : > { %v674_v40 = vadd.f32 %v655_v62, %v618_v39 }
 0x1fb   : > { %v659_v63 = vpop.permute.xlu1 %658 }
 0x1fc   : > { %v676_v44 = vadd.f32 %v659_v63, %v620_v36 }
 0x1fd   : > { %v661_v0 = vpop.permute.xlu2 %660 }
 0x1fe   : > { %v677_v48 = vadd.f32 %v661_v0, %v621_v51 }
 0x204   : > { %v697_v2 = vpop.permute.xlu1 %696 }
 0x205   : > { %v699_v32 = vpop.permute.xlu2 %698  ;;  %v719_v19 = vadd.f32 %v697_v2, %v671_v18 }
 0x206   : > { %v720_v58 = vadd.f32 %v699_v32, %v672_v57 }
 0x20c   : > { %v703_v3 = vpop.permute.xlu1 %702 }
 0x20d   : > { %v1913_v4 = vpop.permute.xlu0 %656  ;;  %v1915_v5 = vpop.permute.xlu2 %704  ;;  %v722_v41 = vadd.f32 %v703_v3, %v674_v40 }
 0x20e   : > { %v675_v62 = vadd.f32 %v1913_v4, %v619_v30 }
 0x210   : > { %v723_v1 = vadd.f32 %v1915_v5, %v675_v62 }
 0x214   : > { %v709_v6 = vpop.permute.xlu1 %708 }
 0x215   : > { %v695_v7 = vpop.permute.xlu0 %694  ;;  %v743_v8 = vpop.permute.xlu2 %742  ;;  %v725_v52 = vadd.f32 %v709_v6, %v677_v48 }
 0x216   : > { %v718_v16 = vadd.f32 %v695_v7, %v670_v14 }
 0x218   : > { %v766_v20 = vadd.f32 %v743_v8, %v718_v16 }
 0x21c   : > { %v747_v9 = vpop.permute.xlu1 %746 }
 0x21d   : > { %v701_v33 = vpop.permute.xlu0 %700  ;;  %v749_v10 = vpop.permute.xlu2 %748  ;;  %v768_v59 = vadd.f32 %v747_v9, %v720_v58 }
 0x21e   : > { %v721_v37 = vadd.f32 %v701_v33, %v673_v27 }
 0x220   : > { %v769_v25 = vadd.f32 %v749_v10, %v721_v37 }
 0x224   : > { %v753_v12 = vpop.permute.xlu1 %752 }
 0x225   : > { %v707_v13 = vpop.permute.xlu0 %706  ;;  %v755_v15 = vpop.permute.xlu2 %754  ;;  %v771_v2 = vadd.f32 %v753_v12, %v723_v1 }
 0x226   : > { %v724_v47 = vadd.f32 %v707_v13, %v676_v44 }
 0x228   : > { %v772_v24 = vadd.f32 %v755_v15, %v724_v47 }
 0x22c   : > { %v791_v22 = vpop.permute.xlu1 %790 }
 0x22d   : > { %v745_v23 = vpop.permute.xlu0 %744  ;;  %v814_v29 = vadd.f32 %v791_v22, %v766_v20  ;;  %v793_v34 = vpop.permute.xlu2 %792 }
 0x22e   : > { %v767_v35 = vadd.f32 %v745_v23, %v719_v19 }
 0x22f   : > { %1269 = vst.msk [vmem:[%s1817_s24 + $0x80] sm:$0xff] %vm386_vm4, %v814_v29 }
 0x230   : > { %v815_v38 = vadd.f32 %v793_v34, %v767_v35 }
 0x232   : > { %1270 = vst.msk [vmem:[%s1817_s24 + $0x88] sm:$0xff] %vm386_vm4, %v815_v38 }
 0x234   : > { %v797_v42 = vpop.permute.xlu1 %796 }
 0x235   : > { %v751_v43 = vpop.permute.xlu0 %750  ;;  %v817_v45 = vadd.f32 %v797_v42, %v769_v25  ;;  %v799_v28 = vpop.permute.xlu2 %798 }
 0x236   : > { %v770_v46 = vadd.f32 %v751_v43, %v722_v41 }
 0x237   : > { %1272 = vst.msk [vmem:[%s1817_s24 + $0x98] sm:$0xff] %vm386_vm4, %v817_v45 }
 0x238   : > { %v818_v50 = vadd.f32 %v799_v28, %v770_v46 }
 0x23a   : > { %1273 = vst.msk [vmem:[%s1817_s24 + $0xa0] sm:$0xff] %vm386_vm4, %v818_v50 }
 0x23c   : > { %v803_v53 = vpop.permute.xlu1 %802 }
 0x23d   : > { %v757_v54 = vpop.permute.xlu0 %756  ;;  %v820_v31 = vadd.f32 %v803_v53, %v772_v24  ;;  %v805_v55 = vpop.permute.xlu2 %804 }
 0x23e   : > { %v773_v56 = vadd.f32 %v757_v54, %v725_v52 }
 0x23f   : > { %1275 = vst.msk [vmem:[%s1817_s24 + $0xb0] sm:$0xff] %vm386_vm4, %v820_v31 }
 0x240   : > { %v821_v49 = vadd.f32 %v805_v55, %v773_v56 }
 0x242   : > { %1276 = vst.msk [vmem:[%s1817_s24 + $0xb8] sm:$0xff] %vm386_vm4, %v821_v49 }
 0x244   : > { %v851_v60 = vpop.permute.xlu1 %850 }
 0x245   : > { %v795_v61 = vpop.permute.xlu0 %794  ;;  %873 = vst.msk [vmem:[#allocation2 + $0xa] sm:$0xff] %vm225_vm2, %v851_v60  ;;  %v853_v63 = vpop.permute.xlu2 %852 }
 0x246   : > { %v816_v0 = vadd.f32 %v795_v61, %v768_v59  ;;  %874 = vst.msk [vmem:[#allocation2 + $0x1a] sm:$0xff] %vm225_vm2, %v853_v63 }
 0x248   : > { %1271 = vst.msk [vmem:[%s1817_s24 + $0x90] sm:$0xff] %vm386_vm4, %v816_v0 }
 0x24c   : > { %v857_v32 = vpop.permute.xlu1 %856  ;;  %v945_v21 = vld [vmem:[#allocation2 + $0xa] sm:$0xff] }
 0x24d   : > { %v801_v3 = vpop.permute.xlu0 %800  ;;  %876 = vst.msk [vmem:[#allocation2 + $0x32] sm:$0xff] %vm225_vm2, %v857_v32  ;;  %v859_v6 = vpop.permute.xlu2 %858  ;;  %v898_v8 = vld [vmem:[#allocation2 + $0x19] sm:$0xff]  ;;  %v993_v22 = vld [vmem:[#allocation2 + $0xb] sm:$0xff] }
 0x24e   : > { %v819_v7 = vadd.f32 %v801_v3, %v771_v2  ;;  %877 = vst.msk [vmem:[#allocation2 + $0x3a] sm:$0xff] %vm225_vm2, %v859_v6  ;;  %916 = vrot.lane.b32.xlu1 %v898_v8, %s1497_s25  ;;  %v946_v20 = vld [vmem:[#allocation2 + $0x1a] sm:$0xff]  ;;  %v1041_v42 = vld [vmem:[#allocation2 + $0xc] sm:$0xff] }
 0x24f   : > { %v882_v3 = vld [vmem:[#allocation2 + $0x18] sm:$0xff] }
 0x250   : > { %1274 = vst.msk [vmem:[%s1817_s24 + $0xa8] sm:$0xff] %vm386_vm4, %v819_v7 }
 0x254   : > { %v863_v9 = vpop.permute.xlu1 %862  ;;  %v900_v14 = vld [vmem:[#allocation2 + $0x31] sm:$0xff] }
 0x255   : > { %v849_v4 = vpop.permute.xlu0 %848  ;;  %v901_v33 = vld [vmem:[#allocation2 + $0x39] sm:$0xff]  ;;  %879 = vst.msk [vmem:[#allocation2 + $0x52] sm:$0xff] %vm225_vm2, %v863_v9 }
 0x256   : > { %872 = vst.msk [vmem:[#allocation2 + $0x2] sm:$0xff] %vm225_vm2, %v849_v4  ;;  %922 = vrot.lane.b32.xlu1 %v901_v33, %s1497_s25  ;;  %v949_v23 = vld [vmem:[#allocation2 + $0x3a] sm:$0xff]  ;;  %v948_v27 = vld [vmem:[#allocation2 + $0x32] sm:$0xff] }
 0x257   : > { %v996_v29 = vld [vmem:[#allocation2 + $0x33] sm:$0xff]  ;;  %v997_v25 = vld [vmem:[#allocation2 + $0x3b] sm:$0xff] }
 0x258   : > { %v1045_v36 = vld [vmem:[#allocation2 + $0x3c] sm:$0xff]  ;;  %v1044_v44 = vld [vmem:[#allocation2 + $0x34] sm:$0xff] }
 0x25c   : > { %v951_v35 = vld [vmem:[#allocation2 + $0x52] sm:$0xff] }
 0x25d   : > { %v855_v5 = vpop.permute.xlu0 %854  ;;  %v944_v10 = vld [vmem:[#allocation2 + $0x2] sm:$0xff]  ;;  %v999_v37 = vld [vmem:[#allocation2 + $0x53] sm:$0xff] }
 0x25e   : > { %v897_v11 = vld [vmem:[#allocation2 + $0x9] sm:$0xff]  ;;  %v896_v12 = vld [vmem:[#allocation2 + $0x1] sm:$0xff]  ;;  %875 = vst.msk [vmem:[#allocation2 + $0x22] sm:$0xff] %vm225_vm2, %v855_v5  ;;  %960 = vrot.lane.b32.xlu1 %v944_v10, %s1491_s16  ;;  %v1047_v28 = vld [vmem:[#allocation2 + $0x54] sm:$0xff] }
 0x25f   : > { %914 = vrot.lane.b32.xlu0 %v897_v11, %s1497_s25  ;;  %912 = vrot.lane.b32.xlu2 %v896_v12, %s1497_s25  ;;  %v992_v34 = vld [vmem:[#allocation2 + $0x3] sm:$0xff] }
 0x260   : > { %v1040_v43 = vld [vmem:[#allocation2 + $0x4] sm:$0xff] }
 0x261   : > { %v880_v63 = vld [vmem:[#allocation2] sm:$0xff] }
 0x265   : > { %v861_v13 = vpop.permute.xlu0 %860  ;;  %v947_v15 = vld [vmem:[#allocation2 + $0x22] sm:$0xff] }
 0x266   : > { %v899_v16 = vld [vmem:[#allocation2 + $0x21] sm:$0xff]  ;;  %878 = vst.msk [vmem:[#allocation2 + $0x4a] sm:$0xff] %vm225_vm2, %v861_v13  ;;  %966 = vrot.lane.b32.xlu1 %v947_v15, %s1491_s16 }
 0x267   : > { %920 = vrot.lane.b32.xlu0 %v900_v14, %s1497_s25  ;;  %918 = vrot.lane.b32.xlu2 %v899_v16, %s1497_s25  ;;  %v995_v38 = vld [vmem:[#allocation2 + $0x23] sm:$0xff]  ;;  %v994_v39 = vld [vmem:[#allocation2 + $0x1b] sm:$0xff] }
 0x268   : > { %v1042_v40 = vld [vmem:[#allocation2 + $0x1c] sm:$0xff]  ;;  %v1043_v45 = vld [vmem:[#allocation2 + $0x24] sm:$0xff] }
 0x269   : > { %v883_v9 = vld [vmem:[#allocation2 + $0x20] sm:$0xff]  ;;  %v885_v14 = vld [vmem:[#allocation2 + $0x38] sm:$0xff] }
 0x26d   : > { %v950_v17 = vld [vmem:[#allocation2 + $0x4a] sm:$0xff] }
 0x26e   : > { %v903_v18 = vld [vmem:[#allocation2 + $0x51] sm:$0xff]  ;;  %v902_v19 = vld [vmem:[#allocation2 + $0x49] sm:$0xff]  ;;  %972 = vrot.lane.b32.xlu1 %v950_v17, %s1491_s16 }
 0x26f   : > { %926 = vrot.lane.b32.xlu0 %v903_v18, %s1497_s25  ;;  %924 = vrot.lane.b32.xlu2 %v902_v19, %s1497_s25  ;;  %v998_v41 = vld [vmem:[#allocation2 + $0x4b] sm:$0xff] }
 0x270   : > { %v1046_v46 = vld [vmem:[#allocation2 + $0x4c] sm:$0xff] }
 0x276   : > { %1010 = vrot.lane.b32.xlu1 %v993_v22, %s1498_s26 }
 0x277   : > { %964 = vrot.lane.b32.xlu0 %v946_v20, %s1491_s16  ;;  %962 = vrot.lane.b32.xlu2 %v945_v21, %s1491_s16  ;;  %v886_v20 = vld [vmem:[#allocation2 + $0x48] sm:$0xff] }
 0x27e   : > { %1016 = vrot.lane.b32.xlu1 %v996_v29, %s1498_s26 }
 0x27f   : > { %970 = vrot.lane.b32.xlu0 %v949_v23, %s1491_s16  ;;  %968 = vrot.lane.b32.xlu2 %v948_v27, %s1491_s16  ;;  %v881_v27 = vld [vmem:[#allocation2 + $0x8] sm:$0xff] }
 0x286   : > { %1022 = vrot.lane.b32.xlu1 %v999_v37, %s1498_s26 }
 0x287   : > { %1008 = vrot.lane.b32.xlu0 %v992_v34, %s1498_s26  ;;  %974 = vrot.lane.b32.xlu2 %v951_v35, %s1491_s16 }
 0x28e   : > { %1060 = vrot.lane.b32.xlu1 %v1042_v40, %s1499_s27 }
 0x28f   : > { %1014 = vrot.lane.b32.xlu0 %v995_v38, %s1498_s26  ;;  %1012 = vrot.lane.b32.xlu2 %v994_v39, %s1498_s26 }
 0x296   : > { %1066 = vrot.lane.b32.xlu1 %v1045_v36, %s1499_s27 }
 0x297   : > { %1020 = vrot.lane.b32.xlu0 %v998_v41, %s1498_s26  ;;  %1018 = vrot.lane.b32.xlu2 %v997_v25, %s1498_s26 }
 0x29f   : > { %1058 = vrot.lane.b32.xlu0 %v1041_v42, %s1499_s27  ;;  %1056 = vrot.lane.b32.xlu2 %v1040_v43, %s1499_s27  ;;  %v884_v42 = vld [vmem:[#allocation2 + $0x30] sm:$0xff] }
 0x2a7   : > { %1064 = vrot.lane.b32.xlu0 %v1044_v44, %s1499_s27  ;;  %1062 = vrot.lane.b32.xlu2 %v1043_v45, %s1499_s27 }
 0x2af   : > { %1070 = vrot.lane.b32.xlu0 %v1047_v28, %s1499_s27  ;;  %1068 = vrot.lane.b32.xlu2 %v1046_v46, %s1499_s27 }
 0x2b9   : > { %v913_v47 = vpop.permute.xlu2 %912 }
 0x2ba   : > { %v936_v0 = vadd.f32 %v913_v47, %v880_v63  ;;  %v887_v47 = vld [vmem:[#allocation2 + $0x50] sm:$0xff] }
 0x2c0   : > { %v917_v51 = vpop.permute.xlu1 %916 }
 0x2c1   : > { %v919_v50 = vpop.permute.xlu2 %918  ;;  %v938_v8 = vadd.f32 %v917_v51, %v882_v3 }
 0x2c2   : > { %v939_v5 = vadd.f32 %v919_v50, %v883_v9 }
 0x2c8   : > { %v923_v52 = vpop.permute.xlu1 %922 }
 0x2c9   : > { %v925_v48 = vpop.permute.xlu2 %924  ;;  %v941_v17 = vadd.f32 %v923_v52, %v885_v14 }
 0x2ca   : > { %v942_v22 = vadd.f32 %v925_v48, %v886_v20 }
 0x2d0   : > { %v961_v54 = vpop.permute.xlu1 %960 }
 0x2d1   : > { %v963_v24 = vpop.permute.xlu2 %962  ;;  %v915_v53 = vpop.permute.xlu0 %914  ;;  %v984_v1 = vadd.f32 %v961_v54, %v936_v0 }
 0x2d2   : > { %v937_v35 = vadd.f32 %v915_v53, %v881_v27 }
 0x2d4   : > { %v985_v25 = vadd.f32 %v963_v24, %v937_v35 }
 0x2d8   : > { %v967_v56 = vpop.permute.xlu1 %966 }
 0x2d9   : > { %v969_v31 = vpop.permute.xlu2 %968  ;;  %v921_v55 = vpop.permute.xlu0 %920  ;;  %v987_v10 = vadd.f32 %v967_v56, %v939_v5 }
 0x2da   : > { %v940_v44 = vadd.f32 %v921_v55, %v884_v42 }
 0x2dc   : > { %v988_v28 = vadd.f32 %v969_v31, %v940_v44 }
 0x2e0   : > { %v973_v49 = vpop.permute.xlu1 %972 }
 0x2e1   : > { %v1951_v26 = vpop.permute.xlu2 %974  ;;  %v927_v57 = vpop.permute.xlu0 %926  ;;  %v990_v23 = vadd.f32 %v973_v49, %v942_v22 }
 0x2e2   : > { %v943_v51 = vadd.f32 %v927_v57, %v887_v47 }
 0x2e4   : > { %v991_v52 = vadd.f32 %v1951_v26, %v943_v51 }
 0x2e8   : > { %v1011_v30 = vpop.permute.xlu1 %1010 }
 0x2e9   : > { %v1013_v58 = vpop.permute.xlu2 %1012  ;;  %v965_v59 = vpop.permute.xlu0 %964  ;;  %v1033_v36 = vadd.f32 %v1011_v30, %v985_v25 }
 0x2ea   : > { %v986_v33 = vadd.f32 %v965_v59, %v938_v8 }
 0x2ec   : > { %v1034_v11 = vadd.f32 %v1013_v58, %v986_v33 }
 0x2f0   : > { %v1017_v62 = vpop.permute.xlu1 %1016 }
 0x2f1   : > { %v1019_v60 = vpop.permute.xlu2 %1018  ;;  %v971_v61 = vpop.permute.xlu0 %970  ;;  %v1036_v46 = vadd.f32 %v1017_v62, %v988_v28 }
 0x2f2   : > { %v989_v21 = vadd.f32 %v971_v61, %v941_v17 }
 0x2f4   : > { %v1037_v29 = vadd.f32 %v1019_v60, %v989_v21 }
 0x2f8   : > { %v1023_v6 = vpop.permute.xlu1 %1022 }
 0x2f9   : > { %v1057_v2 = vpop.permute.xlu2 %1056  ;;  %v1009_v32 = vpop.permute.xlu0 %1008  ;;  %v1039_v24 = vadd.f32 %v1023_v6, %v991_v52 }
 0x2fa   : > { %v1032_v7 = vadd.f32 %v1009_v32, %v984_v1 }
 0x2fc   : > { %v1080_v4 = vadd.f32 %v1057_v2, %v1032_v7 }
 0x2fe   : > { %1096 = vrot.lane.b32.xlu1 %v1080_v4, %s1496_s23 }
 0x300   : > { %v1061_v15 = vpop.permute.xlu1 %1060 }
 0x301   : > { %v1063_v12 = vpop.permute.xlu2 %1062  ;;  %v1015_v13 = vpop.permute.xlu0 %1014  ;;  %v1082_v18 = vadd.f32 %v1061_v15, %v1034_v11 }
 0x302   : > { %v1035_v16 = vadd.f32 %v1015_v13, %v987_v10 }
 0x303   : > { %1100 = vrot.lane.b32.xlu0 %v1082_v18, %s1496_s23 }
 0x304   : > { %v1083_v19 = vadd.f32 %v1063_v12, %v1035_v16 }
 0x306   : > { %1102 = vrot.lane.b32.xlu1 %v1083_v19, %s1496_s23 }
 0x308   : > { %v1067_v37 = vpop.permute.xlu1 %1066 }
 0x309   : > { %v1021_v34 = vpop.permute.xlu0 %1020  ;;  %v1085_v39 = vadd.f32 %v1067_v37, %v1037_v29  ;;  %v1069_v40 = vpop.permute.xlu2 %1068 }
 0x30a   : > { %v1038_v38 = vadd.f32 %v1021_v34, %v990_v23 }
 0x30b   : > { %1106 = vrot.lane.b32.xlu0 %v1085_v39, %s1496_s23 }
 0x30c   : > { %v1086_v41 = vadd.f32 %v1069_v40, %v1038_v38 }
 0x30e   : > { %1108 = vrot.lane.b32.xlu1 %v1086_v41, %s1496_s23 }
 0x311   : > { %v1059_v43 = vpop.permute.xlu0 %1058 }
 0x312   : > { %v1081_v45 = vadd.f32 %v1059_v43, %v1033_v36 }
 0x314   : > { %1098 = vrot.lane.b32.xlu2 %v1081_v45, %s1496_s23 }
 0x319   : > { %v1065_v50 = vpop.permute.xlu0 %1064 }
 0x31a   : > { %v1084_v48 = vadd.f32 %v1065_v50, %v1036_v46 }
 0x31c   : > { %1104 = vrot.lane.b32.xlu2 %v1084_v48, %s1496_s23 }
 0x321   : > { %v1071_v53 = vpop.permute.xlu0 %1070 }
 0x322   : > { %v1087_v54 = vadd.f32 %v1071_v53, %v1039_v24 }
 0x324   : > { %1110 = vrot.lane.b32.xlu2 %v1087_v54, %s1496_s23 }
 0x36e   : > { %v1099_v31 = vpop.permute.xlu2 %1098 }
 0x36f   : > { %1286 = vst.msk [vmem:[%s1817_s24 + $0xc8] sm:$0xff] %vm386_vm4, %v1099_v31 }
 0x370   : > { %v1097_v55 = vpop.permute.xlu1 %1096 }
 0x371   : > { %1285 = vst.msk [vmem:[%s1817_s24 + $0xc0] sm:$0xff] %vm386_vm4, %v1097_v55 }
 0x375   : > { %v1101_v26 = vpop.permute.xlu0 %1100 }
 0x376   : > { %v1105_v56 = vpop.permute.xlu2 %1104  ;;  %1287 = vst.msk [vmem:[%s1817_s24 + $0xd0] sm:$0xff] %vm386_vm4, %v1101_v26 }
 0x377   : > { %1289 = vst.msk [vmem:[%s1817_s24 + $0xe0] sm:$0xff] %vm386_vm4, %v1105_v56 }
 0x378   : > { %v1103_v57 = vpop.permute.xlu1 %1102 }
 0x379   : > { %1288 = vst.msk [vmem:[%s1817_s24 + $0xd8] sm:$0xff] %vm386_vm4, %v1103_v57 }
 0x37d   : > { %v1107_v58 = vpop.permute.xlu0 %1106 }
 0x37e   : > { %v1111_v49 = vpop.permute.xlu2 %1110  ;;  %1290 = vst.msk [vmem:[%s1817_s24 + $0xe8] sm:$0xff] %vm386_vm4, %v1107_v58 }
 0x37f   : > { %1292 = vst.msk [vmem:[%s1817_s24 + $0xf8] sm:$0xff] %vm386_vm4, %v1111_v49 }
 0x380   : > { %v1109_v59 = vpop.permute.xlu1 %1108 }
 0x381   : > { %1291 = vst.msk [vmem:[%s1817_s24 + $0xf0] sm:$0xff] %vm386_vm4, %v1109_v59 }
 0x382   : > { %1432 = shalt.err (!%p1429_p13)
}
 0x383   : > { %s1500_s5 = smov 128   ;;  %s1501_s23 = smov 8  }
 0x384   : > { %1302 = dma.vmem_to_hbm [thread:$0]  (%p1563_p9), %s1146_s3, 4096, %s1148_s4, %s1130_s9, %s1500_s5, %s1500_s5, %s1501_s23  }
 0x385 PF: > { %s1162_s24 = sand.u32 1, %s1467_s6   ;;  %p1309_p0 = pnand %p1238_p12, %p1570_p11 }
 0x386   : > { %s1163_s25 = scalar_lea.sflag [#allocation5], %s1162_s24 }
 0x387   : > { %p1310_p1 = pneg %p1309_p0 }
 0x389   : > { %1462 = dma.done.wait (%p1310_p1), %s1163_s25, 4096  }
 0x38a   : > { %1464 = vsyncadd (%p1310_p1), %s1163_s25, 4294963200  ;;  %s17_s11 = sadd.s32 1, %s1487_s11   ;;  %s2023_s6 = smov %s1471_s7 }
 0x38b   : > { %p14_p2 = scmp.ge.s32.totalorder %s17_s11, 4   ;;  %s2024_s7 = smov %s1475_s8 }
 0x38c   : > { %s2025_s8 = smov %s1568_s20  ;;  %s2026_s9 = smov %s1483_s10 }
 0x38d   : > { %s2027_s10 = smov %s2029_s14  ;;  %16 = sbr.rel (!%p14_p2) target bundleno = 6 (0x6), region = 75 }
 0x392   :  { %1169 = vsyncpa [#allocation4], 1 }
 0x393   :  { %1171 = vsyncpa [#allocation4 + $0x1], 1 }
 0x394   :  { %1172 = vsyncpa [#allocation5], 1 }
 0x395   :  { %1174 = vsyncpa [#allocation5 + $0x1], 1 }

</bundles_post_ra>
